<compile_context>
chip_gen: v7x
topology: tpu7x:2x2x1
jax: 0.10.0
libtpu: 0.0.40
codegen_flags: <defaults>
</compile_context>

<pallas_src>
import functools

import jax
import jax.numpy as jnp
from jax.experimental import pallas as pl
from jax.experimental.pallas import tpu as pltpu

_VMEM_LIMIT = 32 * 1024 * 1024   # explicit, safe on v5e/v6e/v7x (v7x scoped default)


# ----------------------------------------------------------------------------
# Pallas kernel 1: fused (phase-batched) GEMM + bias + optional ReLU
#   o^T[p] (Cout, TM) = relu( W[p](Cout, K) @ a^T[p](K, TM) + b )
#   - M (= B*OH*OW) sits on the lane axis -> lane-dense, unmasked stores.
#   - Operands are bf16 (MXU-native); accumulate/bias/ReLU stay in f32 (v5e).
# ----------------------------------------------------------------------------
def _gemm_bias_act_kernel(w_ref, a_ref, b_ref, o_ref, *, relu):
    acc = jnp.dot(w_ref[0], a_ref[0], preferred_element_type=jnp.float32)
    acc = acc + b_ref[...]
    if relu:
        acc = jnp.maximum(acc, 0.0)
    o_ref[0] = acc.astype(o_ref.dtype)


def _pick_tm(m):
    if m % 256 == 0 and m >= 512:
        return 256          # bounded block (v7x VMEM) with >=2 grid steps
    if m % 128 == 0:
        return 128
    return m                # small fallback (only tiny M at these shapes)


def batched_gemm_bias_act(w, a_t, b, relu):
    """w: (P, Cout, K), a_t: (P, K, M), b: (Cout,)  ->  (P, Cout, M) f32."""
    P, Cout, K = w.shape
    M = a_t.shape[2]
    Mp = M
    if M > 256 and M % 128 != 0:          # keep blocks bounded & lane-aligned
        Mp = ((M + 127) // 128) * 128
        a_t = jnp.pad(a_t, ((0, 0), (0, 0), (0, Mp - M)))
    TM = _pick_tm(Mp)
    grid = (P, Mp // TM)
    out = pl.pallas_call(
        functools.partial(_gemm_bias_act_kernel, relu=relu),
        out_shape=jax.ShapeDtypeStruct((P, Cout, Mp), jnp.float32),
        grid=grid,
        in_specs=[
            pl.BlockSpec((1, Cout, K), lambda p, i: (p, 0, 0)),
            pl.BlockSpec((1, K, TM), lambda p, i: (p, 0, i)),
            pl.BlockSpec((Cout, 1), lambda p, i: (0, 0)),
        ],
        out_specs=pl.BlockSpec((1, Cout, TM), lambda p, i: (p, 0, i)),
        compiler_params=pltpu.CompilerParams(
            dimension_semantics=("parallel", "parallel"),
            vmem_limit_bytes=_VMEM_LIMIT),
    )(w.astype(jnp.bfloat16), a_t.astype(jnp.bfloat16),
      b.reshape(Cout, 1).astype(jnp.float32))
    if Mp != M:
        out = out[:, :, :M]
    return out


# ----------------------------------------------------------------------------
# Pallas kernel 2: SOM nearest-neighbour search + in-kernel codebook lookup
#   - full codebook resident in VMEM as (K//CK, D, CK) chunks (lane-dense CK),
#     precomputed ||c||^2 passed in, ||x||^2 dropped (constant per row).
#   - fori_loop over 512-lane chunks carrying (min, argmin) -> register-resident.
#   - quantized output gathered via one-hot MXU matmul against resident chunks.
# ----------------------------------------------------------------------------
def _som_kernel(x_ref, cb_ref, sq_ref, q_ref, *, ck):
    x = x_ref[...]                                    # (TN, D) f32
    tn = x_ref.shape[0]
    d = x_ref.shape[1]
    n_chunks = cb_ref.shape[0]
    hi = jax.lax.Precision.HIGHEST

    def search(c, carry):
        minv, arg = carry
        cb_c = cb_ref[c]                              # (D, CK)
        sq_c = sq_ref[c]                              # (1, CK)
        xw = jnp.dot(x, cb_c, precision=hi,
                     preferred_element_type=jnp.float32)          # (TN, CK)
        dist = sq_c - 2.0 * xw
        local_min = jnp.min(dist, axis=1, keepdims=True)
        iota = jax.lax.broadcasted_iota(jnp.int32, dist.shape, 1)
        local_arg = jnp.min(jnp.where(dist == local_min, iota, ck),
                            axis=1, keepdims=True) + c * ck
        better = local_min < minv
        return (jnp.where(better, local_min, minv),
                jnp.where(better, local_arg, arg))

    _, arg = jax.lax.fori_loop(
        0, n_chunks, search,
        (jnp.full((tn, 1), jnp.inf, jnp.float32),
         jnp.zeros((tn, 1), jnp.int32)))

    def gather(c, q):
        cb_c = cb_ref[c]                              # (D, CK)
        iota = jax.lax.broadcasted_iota(jnp.int32, (tn, ck), 1) + c * ck
        onehot = (iota == arg).astype(jnp.float32)    # (TN, CK)
        return q + jax.lax.dot_general(
            onehot, cb_c, (((1,), (1,)), ((), ())),
            precision=hi, preferred_element_type=jnp.float32)     # (TN, D)

    q_ref[...] = jax.lax.fori_loop(
        0, n_chunks, gather, jnp.zeros((tn, d), jnp.float32))


def som_quantize(x_flat, codebook, ck=512):
    """x_flat: (N, D) f32, codebook: (K, D) f32 -> quantized (N, D) f32."""
    N, D = x_flat.shape
    K = codebook.shape[0]
    assert K % ck == 0
    nc = K // ck
    cb_chunks = jnp.transpose(codebook.reshape(nc, ck, D), (0, 2, 1))  # (nc,D,ck)
    sq_chunks = jnp.sum(codebook * codebook, axis=1).reshape(nc, 1, ck)

    tn = N
    for cand in (128, 64, 32, 16, 8):     # >=2 grid steps for 2-TC (v7x) chips
        if N % cand == 0 and N // cand >= 2:
            tn = cand
            break

    return pl.pallas_call(
        functools.partial(_som_kernel, ck=ck),
        out_shape=jax.ShapeDtypeStruct((N, D), jnp.float32),
        grid=(N // tn,),
        in_specs=[
            pl.BlockSpec((tn, D), lambda i: (i, 0)),
            pl.BlockSpec((nc, D, ck), lambda i: (0, 0, 0)),   # resident codebook
            pl.BlockSpec((nc, 1, ck), lambda i: (0, 0, 0)),
        ],
        out_specs=pl.BlockSpec((tn, D), lambda i: (i, 0)),
        compiler_params=pltpu.CompilerParams(
            dimension_semantics=("parallel",),
            vmem_limit_bytes=_VMEM_LIMIT),
    )(x_flat, cb_chunks, sq_chunks)


# ----------------------------------------------------------------------------
# Convs in CNHW layout (no activation transposes) via im2col + Pallas GEMM
# ----------------------------------------------------------------------------
def _im2col_cnhw(x, kh, kw, stride, pad):
    """x: (C, B, H, W) -> a^T (kh*kw*C, B*OH*OW); K-order = (kh, kw, C)."""
    C, B, H, W = x.shape
    xp = jnp.pad(x, ((0, 0), (0, 0), (pad, pad), (pad, pad)))
    OH = (H + 2 * pad - kh) // stride + 1
    OW = (W + 2 * pad - kw) // stride + 1
    taps = []
    for i in range(kh):
        for j in range(kw):
            taps.append(xp[:, :, i:i + stride * (OH - 1) + 1:stride,
                           j:j + stride * (OW - 1) + 1:stride])
    a = jnp.stack(taps, axis=0)                       # (kh*kw, C, B, OH, OW)
    return a.reshape(kh * kw * C, B * OH * OW), OH, OW


def conv2d_cnhw(x, weight, bias, stride, pad, relu):
    """x: (Cin, B, H, W); weight: (Cout, Cin, kh, kw) (PyTorch); bias: (Cout,)."""
    Cout, Cin, kh, kw = weight.shape
    B = x.shape[1]
    a_t, OH, OW = _im2col_cnhw(x, kh, kw, stride, pad)
    # flatten the weight once in (kh, kw, Cin) order to match the patch K order
    wmat = jnp.transpose(weight, (0, 2, 3, 1)).reshape(Cout, kh * kw * Cin)
    out = batched_gemm_bias_act(wmat[None], a_t[None], bias, relu)   # (1,Cout,M)
    return out[0].reshape(Cout, B, OH, OW)


# phase parity r (or s) -> kernel tap index at input offset 0 / 1
_PHASE_TAPS = ((3, 1), (2, 0))


def conv_transpose2d_cnhw(x, weight, bias, relu):
    """ConvTranspose2d(kernel=4, stride=2, padding=1) as a 4-way phase
    decomposition into dense 2x2 sub-filter GEMMs (one batched pallas_call).
    x: (Cin, B, H, W); weight: (Cin, Cout, 4, 4) (PyTorch order); bias: (Cout,)."""
    Cin, Cout, kh, kw = weight.shape
    assert (kh, kw) == (4, 4)
    _, B, H, W = x.shape
    xp = jnp.pad(x, ((0, 0), (0, 0), (1, 1), (1, 1)))   # (Cin, B, H+2, W+2)

    a_phases, w_phases = [], []
    for r in range(2):
        for s in range(2):
            taps, wrows = [], []
            for th in range(2):
                for tw in range(2):
                    taps.append(xp[:, :, r + th:r + th + H, s + tw:s + tw + W])
                    wrows.append(weight[:, :, _PHASE_TAPS[r][th],
                                        _PHASE_TAPS[s][tw]])        # (Cin, Cout)
            a_phases.append(jnp.stack(taps, axis=0).reshape(4 * Cin, B * H * W))
            w_p = jnp.stack(wrows, axis=0)                           # (4, Cin, Cout)
            w_phases.append(jnp.transpose(w_p, (2, 0, 1)).reshape(Cout, 4 * Cin))

    a_all = jnp.stack(a_phases, axis=0)                    # (4, 4*Cin, M)
    w_all = jnp.stack(w_phases, axis=0)                    # (4, Cout, 4*Cin)
    out = batched_gemm_bias_act(w_all, a_all, bias, relu)  # (4, Cout, M)
    out = out.reshape(2, 2, Cout, B, H, W)
    # interleave output phases: y[:, :, 2a+r, 2b+s] = out[r, s, :, :, a, b]
    return jnp.transpose(out, (2, 3, 4, 0, 5, 1)).reshape(Cout, B, 2 * H, 2 * W)


# ----------------------------------------------------------------------------
# Parameters (deterministic, PyTorch-style uniform(-1/sqrt(fan_in), ...))
# ----------------------------------------------------------------------------
def _conv_init(key, cout, cin, kh, kw):
    fan_in = cin * kh * kw
    bound = 1.0 / jnp.sqrt(fan_in)
    k1, k2 = jax.random.split(key)
    w = jax.random.uniform(k1, (cout, cin, kh, kw), jnp.float32, -bound, bound)
    b = jax.random.uniform(k2, (cout,), jnp.float32, -bound, bound)
    return w, b


def _convT_init(key, cin, cout, kh, kw):
    fan_in = cout * kh * kw
    bound = 1.0 / jnp.sqrt(fan_in)
    k1, k2 = jax.random.split(key)
    w = jax.random.uniform(k1, (cin, cout, kh, kw), jnp.float32, -bound, bound)
    b = jax.random.uniform(k2, (cout,), jnp.float32, -bound, bound)
    return w, b


def init_params(key, in_channels=3, embedding_dim=16, downscale_steps=2,
                hidden_planes=32, som_width=128, som_height=128):
    keys = jax.random.split(key, 3 + 2 * downscale_steps + 2)
    ki = 0
    enc = []
    c = in_channels
    for _ in range(downscale_steps):
        enc.append(_conv_init(keys[ki], hidden_planes, c, 4, 4)); ki += 1
        c = hidden_planes
    enc.append(_conv_init(keys[ki], embedding_dim, c, 3, 3)); ki += 1

    dec = {"conv_in": _conv_init(keys[ki], hidden_planes, embedding_dim, 3, 3)}; ki += 1
    ups = []
    c = hidden_planes
    for planes in [hidden_planes] * downscale_steps:
        ups.append(_convT_init(keys[ki], c, planes, 4, 4)); ki += 1
        c = planes
    dec["ups"] = ups
    dec["conv_out"] = _conv_init(keys[ki], in_channels, c, 3, 3); ki += 1

    som = 0.1 * jax.random.normal(keys[ki], (som_width * som_height, embedding_dim),
                                  jnp.float32)
    return {"encoder": enc, "decoder": dec, "som": som}


# ----------------------------------------------------------------------------
# SomAutoEncoder forward (pass_through_som=True)
# ----------------------------------------------------------------------------
def som_autoencoder_forward(params, x_nchw):
    x = jnp.transpose(x_nchw, (1, 0, 2, 3))             # NCHW -> CNHW

    # encoder: downscale convs (stride-2, ReLU) then embedding conv
    enc = params["encoder"]
    h = x
    for (w, b) in enc[:-1]:
        h = conv2d_cnhw(h, w, b, stride=2, pad=1, relu=True)
    w, b = enc[-1]
    h = conv2d_cnhw(h, w, b, stride=1, pad=1, relu=False)   # (D, B, H', W')

    # SOM vector quantization (reference: h_in = h.permute(0,2,3,1) i.e. NHWC)
    D, B, Hh, Wh = h.shape
    h_in = jnp.transpose(h, (1, 2, 3, 0))                # (B, H', W', D)
    q = som_quantize(h_in.reshape(B * Hh * Wh, D), params["som"])
    q_nhwc = q.reshape(B, Hh, Wh, D)
    h_diff = q_nhwc - h_in
    # (straight-through x + (q - x).detach() equals q in the forward pass)
    q_cnhw = jnp.transpose(q_nhwc, (3, 0, 1, 2))         # back to (D, B, H', W')

    # decoder: conv -> transposed-conv upscales -> output conv
    dec = params["decoder"]
    w, b = dec["conv_in"]
    g = conv2d_cnhw(q_cnhw, w, b, stride=1, pad=1, relu=True)
    for (w, b) in dec["ups"]:
        g = conv_transpose2d_cnhw(g, w, b, relu=True)
    w, b = dec["conv_out"]
    g = conv2d_cnhw(g, w, b, stride=1, pad=1, relu=False)

    y = jnp.transpose(g, (1, 0, 2, 3))                   # CNHW -> NCHW
    return y, h_in, h_diff


if __name__ == "__main__":
    key = jax.random.PRNGKey(0)
    k_param, k_x = jax.random.split(key)

    params = init_params(k_param, in_channels=3, embedding_dim=16,
                         downscale_steps=2, hidden_planes=32)
    x = jax.random.normal(k_x, (2, 3, 16, 16), jnp.float32)

    fwd = jax.jit(som_autoencoder_forward)
    y, h_in, h_diff = fwd(params, x)
    jax.block_until_ready((y, h_in, h_diff))

    assert y.shape == (2, 3, 16, 16)
    assert h_in.shape == (2, 4, 4, 16)
    assert h_diff.shape == (2, 4, 4, 16)
    assert bool(jnp.all(jnp.isfinite(y)))
    print("KERNEL_OK")
</pallas_src>

<mosaic_0001>
module attributes {stable_mosaic.version = 11 : i64} {
  func.func @_gemm_bias_act_kernel(%arg0: i32, %arg1: i32, %arg2: memref<1x32x48xbf16, #tpu.memory_space<vmem>>, %arg3: memref<1x48x128xbf16, #tpu.memory_space<vmem>>, %arg4: memref<32x1xf32, #tpu.memory_space<vmem>>, %arg5: memref<1x32x128xf32, #tpu.memory_space<vmem>>) attributes {dimension_semantics = [#tpu.dimension_semantics<parallel>, #tpu.dimension_semantics<parallel>], iteration_bounds = array<i64: 1, 1>, scalar_prefetch = 0 : i64, scratch_operands = 0 : i64, tpu.core_type = #tpu.core_type<tc>, window_params = [{transform_indices = @transform_0, window_bounds = array<i64: 1, 32, 48>}, {transform_indices = @transform_1, window_bounds = array<i64: 1, 48, 128>}, {pipeline_mode = #tpu.pipeline_mode<synchronous>, transform_indices = @transform_2, window_bounds = array<i64: 32, 1>}, {transform_indices = @transform_3, window_bounds = array<i64: 1, 32, 128>}]} {
    %c0 = arith.constant 0 : index
    %c0_0 = arith.constant 0 : index
    %c0_1 = arith.constant 0 : index
    %0 = vector.load %arg2[%c0, %c0_0, %c0_1] : memref<1x32x48xbf16, #tpu.memory_space<vmem>>, vector<1x32x48xbf16>
    %1 = vector.shape_cast %0 : vector<1x32x48xbf16> to vector<32x48xbf16>
    %c0_2 = arith.constant 0 : index
    %c0_3 = arith.constant 0 : index
    %c0_4 = arith.constant 0 : index
    %2 = vector.load %arg3[%c0_2, %c0_3, %c0_4] : memref<1x48x128xbf16, #tpu.memory_space<vmem>>, vector<1x48x128xbf16>
    %3 = vector.shape_cast %2 : vector<1x48x128xbf16> to vector<48x128xbf16>
    %cst = arith.constant dense<0.000000e+00> : vector<32x128xf32>
    %4 = tpu.matmul %1, %3, %cst {dimension_numbers = #tpu.dot_dimension_numbers<[1], [0], [0], [1], [0, 0, 1, 1], [], []>} : vector<32x48xbf16>, vector<48x128xbf16>, vector<32x128xf32> -> vector<32x128xf32>
    %c0_5 = arith.constant 0 : index
    %c0_6 = arith.constant 0 : index
    %5 = vector.load %arg4[%c0_5, %c0_6] : memref<32x1xf32, #tpu.memory_space<vmem>>, vector<32x1xf32>
    %6 = vector.broadcast %5 : vector<32x1xf32> to vector<32x128xf32>
    %7 = arith.addf %4, %6 : vector<32x128xf32>
    %cst_7 = arith.constant 0.000000e+00 : f32
    %8 = vector.broadcast %cst_7 : f32 to vector<32x128xf32>
    %9 = arith.maximumf %7, %8 : vector<32x128xf32>
    %c0_8 = arith.constant 0 : index
    %c0_9 = arith.constant 0 : index
    %c0_10 = arith.constant 0 : index
    %10 = vector.load %arg5[%c0_8, %c0_9, %c0_10] : memref<1x32x128xf32, #tpu.memory_space<vmem>>, vector<1x32x128xf32>
    %11 = vector.shape_cast %10 : vector<1x32x128xf32> to vector<32x128xf32>
    %12 = vector.shape_cast %9 : vector<32x128xf32> to vector<1x32x128xf32>
    tpu.vector_store %arg5[%c0_8, %c0_9, %c0_10], %12 {strides = array<i32>} : memref<1x32x128xf32, #tpu.memory_space<vmem>>, vector<1x32x128xf32>,
    return
  }
  func.func @transform_0(%arg0: i32, %arg1: i32) -> (i32, i32, i32) {
    %c0_i32 = arith.constant 0 : i32
    %c0_i32_0 = arith.constant 0 : i32
    %c0_i32_1 = arith.constant 0 : i32
    return %arg0, %c0_i32, %c0_i32_0 : i32, i32, i32
  }
  func.func @transform_1(%arg0: i32, %arg1: i32) -> (i32, i32, i32) {
    %c0_i32 = arith.constant 0 : i32
    %c0_i32_0 = arith.constant 0 : i32
    return %arg0, %c0_i32, %arg1 : i32, i32, i32
  }
  func.func @transform_2(%arg0: i32, %arg1: i32) -> (i32, i32) {
    %c0_i32 = arith.constant 0 : i32
    %c0_i32_0 = arith.constant 0 : i32
    %c0_i32_1 = arith.constant 0 : i32
    return %c0_i32, %c0_i32_0 : i32, i32
  }
  func.func @transform_3(%arg0: i32, %arg1: i32) -> (i32, i32, i32) {
    %c0_i32 = arith.constant 0 : i32
    %c0_i32_0 = arith.constant 0 : i32
    return %arg0, %c0_i32, %arg1 : i32, i32, i32
  }
}

module attributes {stable_mosaic.version = 11 : i64} {
  func.func @_gemm_bias_act_kernel(%arg0: i32, %arg1: i32, %arg2: memref<1x32x512xbf16, #tpu.memory_space<vmem>>, %arg3: memref<1x512x32xbf16, #tpu.memory_space<vmem>>, %arg4: memref<32x1xf32, #tpu.memory_space<vmem>>, %arg5: memref<1x32x32xf32, #tpu.memory_space<vmem>>) attributes {dimension_semantics = [#tpu.dimension_semantics<parallel>, #tpu.dimension_semantics<parallel>], iteration_bounds = array<i64: 1, 1>, scalar_prefetch = 0 : i64, scratch_operands = 0 : i64, tpu.core_type = #tpu.core_type<tc>, window_params = [{transform_indices = @transform_0, window_bounds = array<i64: 1, 32, 512>}, {transform_indices = @transform_1, window_bounds = array<i64: 1, 512, 32>}, {pipeline_mode = #tpu.pipeline_mode<synchronous>, transform_indices = @transform_2, window_bounds = array<i64: 32, 1>}, {transform_indices = @transform_3, window_bounds = array<i64: 1, 32, 32>}]} {
    %c0 = arith.constant 0 : index
    %c0_0 = arith.constant 0 : index
    %c0_1 = arith.constant 0 : index
    %0 = vector.load %arg2[%c0, %c0_0, %c0_1] : memref<1x32x512xbf16, #tpu.memory_space<vmem>>, vector<1x32x512xbf16>
    %1 = vector.shape_cast %0 : vector<1x32x512xbf16> to vector<32x512xbf16>
    %c0_2 = arith.constant 0 : index
    %c0_3 = arith.constant 0 : index
    %c0_4 = arith.constant 0 : index
    %2 = vector.load %arg3[%c0_2, %c0_3, %c0_4] : memref<1x512x32xbf16, #tpu.memory_space<vmem>>, vector<1x512x32xbf16>
    %3 = vector.shape_cast %2 : vector<1x512x32xbf16> to vector<512x32xbf16>
    %cst = arith.constant dense<0.000000e+00> : vector<32x32xf32>
    %4 = tpu.matmul %1, %3, %cst {dimension_numbers = #tpu.dot_dimension_numbers<[1], [0], [0], [1], [0, 0, 1, 1], [], []>} : vector<32x512xbf16>, vector<512x32xbf16>, vector<32x32xf32> -> vector<32x32xf32>
    %c0_5 = arith.constant 0 : index
    %c0_6 = arith.constant 0 : index
    %5 = vector.load %arg4[%c0_5, %c0_6] : memref<32x1xf32, #tpu.memory_space<vmem>>, vector<32x1xf32>
    %6 = vector.broadcast %5 : vector<32x1xf32> to vector<32x32xf32>
    %7 = arith.addf %4, %6 : vector<32x32xf32>
    %cst_7 = arith.constant 0.000000e+00 : f32
    %8 = vector.broadcast %cst_7 : f32 to vector<32x32xf32>
    %9 = arith.maximumf %7, %8 : vector<32x32xf32>
    %c0_8 = arith.constant 0 : index
    %c0_9 = arith.constant 0 : index
    %c0_10 = arith.constant 0 : index
    %10 = vector.load %arg5[%c0_8, %c0_9, %c0_10] : memref<1x32x32xf32, #tpu.memory_space<vmem>>, vector<1x32x32xf32>
    %11 = vector.shape_cast %10 : vector<1x32x32xf32> to vector<32x32xf32>
    %12 = vector.shape_cast %9 : vector<32x32xf32> to vector<1x32x32xf32>
    tpu.vector_store %arg5[%c0_8, %c0_9, %c0_10], %12 {strides = array<i32>} : memref<1x32x32xf32, #tpu.memory_space<vmem>>, vector<1x32x32xf32>,
    return
  }
  func.func @transform_0(%arg0: i32, %arg1: i32) -> (i32, i32, i32) {
    %c0_i32 = arith.constant 0 : i32
    %c0_i32_0 = arith.constant 0 : i32
    %c0_i32_1 = arith.constant 0 : i32
    return %arg0, %c0_i32, %c0_i32_0 : i32, i32, i32
  }
  func.func @transform_1(%arg0: i32, %arg1: i32) -> (i32, i32, i32) {
    %c0_i32 = arith.constant 0 : i32
    %c0_i32_0 = arith.constant 0 : i32
    return %arg0, %c0_i32, %arg1 : i32, i32, i32
  }
  func.func @transform_2(%arg0: i32, %arg1: i32) -> (i32, i32) {
    %c0_i32 = arith.constant 0 : i32
    %c0_i32_0 = arith.constant 0 : i32
    %c0_i32_1 = arith.constant 0 : i32
    return %c0_i32, %c0_i32_0 : i32, i32
  }
  func.func @transform_3(%arg0: i32, %arg1: i32) -> (i32, i32, i32) {
    %c0_i32 = arith.constant 0 : i32
    %c0_i32_0 = arith.constant 0 : i32
    return %arg0, %c0_i32, %arg1 : i32, i32, i32
  }
}

module attributes {stable_mosaic.version = 11 : i64} {
  func.func @_gemm_bias_act_kernel(%arg0: i32, %arg1: i32, %arg2: memref<1x16x288xbf16, #tpu.memory_space<vmem>>, %arg3: memref<1x288x32xbf16, #tpu.memory_space<vmem>>, %arg4: memref<16x1xf32, #tpu.memory_space<vmem>>, %arg5: memref<1x16x32xf32, #tpu.memory_space<vmem>>) attributes {dimension_semantics = [#tpu.dimension_semantics<parallel>, #tpu.dimension_semantics<parallel>], iteration_bounds = array<i64: 1, 1>, scalar_prefetch = 0 : i64, scratch_operands = 0 : i64, tpu.core_type = #tpu.core_type<tc>, window_params = [{transform_indices = @transform_0, window_bounds = array<i64: 1, 16, 288>}, {transform_indices = @transform_1, window_bounds = array<i64: 1, 288, 32>}, {pipeline_mode = #tpu.pipeline_mode<synchronous>, transform_indices = @transform_2, window_bounds = array<i64: 16, 1>}, {transform_indices = @transform_3, window_bounds = array<i64: 1, 16, 32>}]} {
    %c0 = arith.constant 0 : index
    %c0_0 = arith.constant 0 : index
    %c0_1 = arith.constant 0 : index
    %0 = vector.load %arg2[%c0, %c0_0, %c0_1] : memref<1x16x288xbf16, #tpu.memory_space<vmem>>, vector<1x16x288xbf16>
    %1 = vector.shape_cast %0 : vector<1x16x288xbf16> to vector<16x288xbf16>
    %c0_2 = arith.constant 0 : index
    %c0_3 = arith.constant 0 : index
    %c0_4 = arith.constant 0 : index
    %2 = vector.load %arg3[%c0_2, %c0_3, %c0_4] : memref<1x288x32xbf16, #tpu.memory_space<vmem>>, vector<1x288x32xbf16>
    %3 = vector.shape_cast %2 : vector<1x288x32xbf16> to vector<288x32xbf16>
    %cst = arith.constant dense<0.000000e+00> : vector<16x32xf32>
    %4 = tpu.matmul %1, %3, %cst {dimension_numbers = #tpu.dot_dimension_numbers<[1], [0], [0], [1], [0, 0, 1, 1], [], []>} : vector<16x288xbf16>, vector<288x32xbf16>, vector<16x32xf32> -> vector<16x32xf32>
    %c0_5 = arith.constant 0 : index
    %c0_6 = arith.constant 0 : index
    %5 = vector.load %arg4[%c0_5, %c0_6] : memref<16x1xf32, #tpu.memory_space<vmem>>, vector<16x1xf32>
    %6 = vector.broadcast %5 : vector<16x1xf32> to vector<16x32xf32>
    %7 = arith.addf %4, %6 : vector<16x32xf32>
    %c0_7 = arith.constant 0 : index
    %c0_8 = arith.constant 0 : index
    %c0_9 = arith.constant 0 : index
    %8 = vector.load %arg5[%c0_7, %c0_8, %c0_9] : memref<1x16x32xf32, #tpu.memory_space<vmem>>, vector<1x16x32xf32>
    %9 = vector.shape_cast %8 : vector<1x16x32xf32> to vector<16x32xf32>
    %10 = vector.shape_cast %7 : vector<16x32xf32> to vector<1x16x32xf32>
    tpu.vector_store %arg5[%c0_7, %c0_8, %c0_9], %10 {strides = array<i32>} : memref<1x16x32xf32, #tpu.memory_space<vmem>>, vector<1x16x32xf32>,
    return
  }
  func.func @transform_0(%arg0: i32, %arg1: i32) -> (i32, i32, i32) {
    %c0_i32 = arith.constant 0 : i32
    %c0_i32_0 = arith.constant 0 : i32
    %c0_i32_1 = arith.constant 0 : i32
    return %arg0, %c0_i32, %c0_i32_0 : i32, i32, i32
  }
  func.func @transform_1(%arg0: i32, %arg1: i32) -> (i32, i32, i32) {
    %c0_i32 = arith.constant 0 : i32
    %c0_i32_0 = arith.constant 0 : i32
    return %arg0, %c0_i32, %arg1 : i32, i32, i32
  }
  func.func @transform_2(%arg0: i32, %arg1: i32) -> (i32, i32) {
    %c0_i32 = arith.constant 0 : i32
    %c0_i32_0 = arith.constant 0 : i32
    %c0_i32_1 = arith.constant 0 : i32
    return %c0_i32, %c0_i32_0 : i32, i32
  }
  func.func @transform_3(%arg0: i32, %arg1: i32) -> (i32, i32, i32) {
    %c0_i32 = arith.constant 0 : i32
    %c0_i32_0 = arith.constant 0 : i32
    return %arg0, %c0_i32, %arg1 : i32, i32, i32
  }
}

module attributes {stable_mosaic.version = 11 : i64} {
  func.func @_som_kernel(%arg0: i32, %arg1: memref<16x16xf32, #tpu.memory_space<vmem>>, %arg2: memref<32x16x512xf32, #tpu.memory_space<vmem>>, %arg3: memref<32x1x512xf32, #tpu.memory_space<vmem>>, %arg4: memref<16x16xf32, #tpu.memory_space<vmem>>) attributes {dimension_semantics = [#tpu.dimension_semantics<parallel>], iteration_bounds = array<i64: 2>, scalar_prefetch = 0 : i64, scratch_operands = 0 : i64, tpu.core_type = #tpu.core_type<tc>, window_params = [{transform_indices = @transform_0, window_bounds = array<i64: 16, 16>}, {pipeline_mode = #tpu.pipeline_mode<synchronous>, transform_indices = @transform_1, window_bounds = array<i64: 32, 16, 512>}, {pipeline_mode = #tpu.pipeline_mode<synchronous>, transform_indices = @transform_2, window_bounds = array<i64: 32, 1, 512>}, {transform_indices = @transform_3, window_bounds = array<i64: 16, 16>}]} {
    %c0 = arith.constant 0 : index
    %c0_0 = arith.constant 0 : index
    %0 = vector.load %arg1[%c0, %c0_0] : memref<16x16xf32, #tpu.memory_space<vmem>>, vector<16x16xf32>
    %cst = arith.constant 0x7F800000 : f32
    %1 = vector.broadcast %cst : f32 to vector<16x1xf32>
    %c0_i32 = arith.constant 0 : i32
    %2 = vector.broadcast %c0_i32 : i32 to vector<16x1xi32>
    %c0_i32_1 = arith.constant 0 : i32
    %c32_i32 = arith.constant 32 : i32
    %3 = arith.addi %c0_i32_1, %c32_i32 : i32
    %c1_i32 = arith.constant 1 : i32
    %4:2 = scf.for %arg5 = %c0_i32_1 to %3 step %c1_i32 iter_args(%arg6 = %1, %arg7 = %2) -> (vector<16x1xf32>, vector<16x1xi32>)  : i32 {
      %9 = arith.index_cast %arg5 : i32 to index
      %c0_10 = arith.constant 0 : index
      %c0_11 = arith.constant 0 : index
      %10 = vector.load %arg2[%9, %c0_10, %c0_11] : memref<32x16x512xf32, #tpu.memory_space<vmem>>, vector<1x16x512xf32>
      %11 = vector.shape_cast %10 : vector<1x16x512xf32> to vector<16x512xf32>
      %12 = arith.index_cast %arg5 : i32 to index
      %c0_12 = arith.constant 0 : index
      %c0_13 = arith.constant 0 : index
      %13 = vector.load %arg3[%12, %c0_12, %c0_13] : memref<32x1x512xf32, #tpu.memory_space<vmem>>, vector<1x1x512xf32>
      %14 = vector.shape_cast %13 : vector<1x1x512xf32> to vector<1x512xf32>
      %cst_14 = arith.constant dense<0.000000e+00> : vector<16x512xf32>
      %15 = tpu.matmul %0, %11, %cst_14 {dimension_numbers = #tpu.dot_dimension_numbers<[1], [0], [0], [1], [0, 0, 1, 1], [], []>, precision = #tpu.contract_precision<fp32>} : vector<16x16xf32>, vector<16x512xf32>, vector<16x512xf32> -> vector<16x512xf32>
      %cst_15 = arith.constant 2.000000e+00 : f32
      %16 = vector.broadcast %cst_15 : f32 to vector<16x512xf32>
      %17 = arith.mulf %16, %15 : vector<16x512xf32>
      %18 = vector.broadcast %14 : vector<1x512xf32> to vector<16x512xf32>
      %19 = arith.subf %18, %17 : vector<16x512xf32>
      %cst_16 = arith.constant dense<0x7F800000> : vector<16xf32>
      %20 = vector.multi_reduction <minimumf>, %19, %cst_16 [1] : vector<16x512xf32> to vector<16xf32>
      %21 = vector.shape_cast %20 : vector<16xf32> to vector<16x1xf32>
      %22 = tpu.iota {dimensions = array<i32: 1>} : vector<16x512xi32>
      %23 = vector.broadcast %21 : vector<16x1xf32> to vector<16x512xf32>
      %24 = arith.cmpf oeq, %19, %23 : vector<16x512xf32>
      %c512_i32 = arith.constant 512 : i32
      %25 = vector.broadcast %c512_i32 : i32 to vector<16x512xi32>
      %26 = arith.select %24, %22, %25 : vector<16x512xi1>, vector<16x512xi32>
      %cst_17 = arith.constant dense<2147483647> : vector<16xi32>
      %27 = vector.multi_reduction <minsi>, %26, %cst_17 [1] : vector<16x512xi32> to vector<16xi32>
      %28 = vector.shape_cast %27 : vector<16xi32> to vector<16x1xi32>
      %c512_i32_18 = arith.constant 512 : i32
      %29 = arith.muli %arg5, %c512_i32_18 : i32
      %30 = vector.broadcast %29 : i32 to vector<16x1xi32>
      %31 = arith.addi %28, %30 : vector<16x1xi32>
      %32 = arith.cmpf olt, %21, %arg6 : vector<16x1xf32>
      %33 = arith.select %32, %21, %arg6 : vector<16x1xi1>, vector<16x1xf32>
      %34 = arith.select %32, %31, %arg7 : vector<16x1xi1>, vector<16x1xi32>
      scf.yield %33, %34 : vector<16x1xf32>, vector<16x1xi32>
    }
    %c32_i32_2 = arith.constant 32 : i32
    %cst_3 = arith.constant 0.000000e+00 : f32
    %5 = vector.broadcast %cst_3 : f32 to vector<16x16xf32>
    %c0_i32_4 = arith.constant 0 : i32
    %c32_i32_5 = arith.constant 32 : i32
    %6 = arith.addi %c0_i32_4, %c32_i32_5 : i32
    %c1_i32_6 = arith.constant 1 : i32
    %7 = scf.for %arg5 = %c0_i32_4 to %6 step %c1_i32_6 iter_args(%arg6 = %5) -> (vector<16x16xf32>)  : i32 {
      %9 = arith.index_cast %arg5 : i32 to index
      %c0_10 = arith.constant 0 : index
      %c0_11 = arith.constant 0 : index
      %10 = vector.load %arg2[%9, %c0_10, %c0_11] : memref<32x16x512xf32, #tpu.memory_space<vmem>>, vector<1x16x512xf32>
      %11 = vector.shape_cast %10 : vector<1x16x512xf32> to vector<16x512xf32>
      %12 = tpu.iota {dimensions = array<i32: 1>} : vector<16x512xi32>
      %c512_i32 = arith.constant 512 : i32
      %13 = arith.muli %arg5, %c512_i32 : i32
      %14 = vector.broadcast %13 : i32 to vector<16x512xi32>
      %15 = arith.addi %12, %14 : vector<16x512xi32>
      %16 = vector.broadcast %4#1 : vector<16x1xi32> to vector<16x512xi32>
      %17 = arith.cmpi eq, %15, %16 : vector<16x512xi32>
      %18 = arith.extui %17 : vector<16x512xi1> to vector<16x512xi32>
      %19 = arith.sitofp %18 : vector<16x512xi32> to vector<16x512xf32>
      %cst_12 = arith.constant dense<0.000000e+00> : vector<16x16xf32>
      %20 = tpu.matmul %19, %11, %cst_12 {dimension_numbers = #tpu.dot_dimension_numbers<[1], [1], [0], [0], [0, 0, 1, 0], [], []>, precision = #tpu.contract_precision<fp32>} : vector<16x512xf32>, vector<16x512xf32>, vector<16x16xf32> -> vector<16x16xf32>
      %21 = arith.addf %arg6, %20 : vector<16x16xf32>
      scf.yield %21 : vector<16x16xf32>
    }
    %c32_i32_7 = arith.constant 32 : i32
    %c0_8 = arith.constant 0 : index
    %c0_9 = arith.constant 0 : index
    %8 = vector.load %arg4[%c0_8, %c0_9] : memref<16x16xf32, #tpu.memory_space<vmem>>, vector<16x16xf32>
    tpu.vector_store %arg4[%c0_8, %c0_9], %7 {strides = array<i32>} : memref<16x16xf32, #tpu.memory_space<vmem>>, vector<16x16xf32>,
    return
  }
  func.func @transform_0(%arg0: i32) -> (i32, i32) {
    %c0_i32 = arith.constant 0 : i32
    %c0_i32_0 = arith.constant 0 : i32
    return %arg0, %c0_i32 : i32, i32
  }
  func.func @transform_1(%arg0: i32) -> (i32, i32, i32) {
    %c0_i32 = arith.constant 0 : i32
    %c0_i32_0 = arith.constant 0 : i32
    %c0_i32_1 = arith.constant 0 : i32
    %c0_i32_2 = arith.constant 0 : i32
    return %c0_i32, %c0_i32_0, %c0_i32_1 : i32, i32, i32
  }
  func.func @transform_2(%arg0: i32) -> (i32, i32, i32) {
    %c0_i32 = arith.constant 0 : i32
    %c0_i32_0 = arith.constant 0 : i32
    %c0_i32_1 = arith.constant 0 : i32
    %c0_i32_2 = arith.constant 0 : i32
    return %c0_i32, %c0_i32_0, %c0_i32_1 : i32, i32, i32
  }
  func.func @transform_3(%arg0: i32) -> (i32, i32) {
    %c0_i32 = arith.constant 0 : i32
    %c0_i32_0 = arith.constant 0 : i32
    return %arg0, %c0_i32 : i32, i32
  }
}

module attributes {stable_mosaic.version = 11 : i64} {
  func.func @_gemm_bias_act_kernel(%arg0: i32, %arg1: i32, %arg2: memref<1x32x144xbf16, #tpu.memory_space<vmem>>, %arg3: memref<1x144x32xbf16, #tpu.memory_space<vmem>>, %arg4: memref<32x1xf32, #tpu.memory_space<vmem>>, %arg5: memref<1x32x32xf32, #tpu.memory_space<vmem>>) attributes {dimension_semantics = [#tpu.dimension_semantics<parallel>, #tpu.dimension_semantics<parallel>], iteration_bounds = array<i64: 1, 1>, scalar_prefetch = 0 : i64, scratch_operands = 0 : i64, tpu.core_type = #tpu.core_type<tc>, window_params = [{transform_indices = @transform_0, window_bounds = array<i64: 1, 32, 144>}, {transform_indices = @transform_1, window_bounds = array<i64: 1, 144, 32>}, {pipeline_mode = #tpu.pipeline_mode<synchronous>, transform_indices = @transform_2, window_bounds = array<i64: 32, 1>}, {transform_indices = @transform_3, window_bounds = array<i64: 1, 32, 32>}]} {
    %c0 = arith.constant 0 : index
    %c0_0 = arith.constant 0 : index
    %c0_1 = arith.constant 0 : index
    %0 = vector.load %arg2[%c0, %c0_0, %c0_1] : memref<1x32x144xbf16, #tpu.memory_space<vmem>>, vector<1x32x144xbf16>
    %1 = vector.shape_cast %0 : vector<1x32x144xbf16> to vector<32x144xbf16>
    %c0_2 = arith.constant 0 : index
    %c0_3 = arith.constant 0 : index
    %c0_4 = arith.constant 0 : index
    %2 = vector.load %arg3[%c0_2, %c0_3, %c0_4] : memref<1x144x32xbf16, #tpu.memory_space<vmem>>, vector<1x144x32xbf16>
    %3 = vector.shape_cast %2 : vector<1x144x32xbf16> to vector<144x32xbf16>
    %cst = arith.constant dense<0.000000e+00> : vector<32x32xf32>
    %4 = tpu.matmul %1, %3, %cst {dimension_numbers = #tpu.dot_dimension_numbers<[1], [0], [0], [1], [0, 0, 1, 1], [], []>} : vector<32x144xbf16>, vector<144x32xbf16>, vector<32x32xf32> -> vector<32x32xf32>
    %c0_5 = arith.constant 0 : index
    %c0_6 = arith.constant 0 : index
    %5 = vector.load %arg4[%c0_5, %c0_6] : memref<32x1xf32, #tpu.memory_space<vmem>>, vector<32x1xf32>
    %6 = vector.broadcast %5 : vector<32x1xf32> to vector<32x32xf32>
    %7 = arith.addf %4, %6 : vector<32x32xf32>
    %cst_7 = arith.constant 0.000000e+00 : f32
    %8 = vector.broadcast %cst_7 : f32 to vector<32x32xf32>
    %9 = arith.maximumf %7, %8 : vector<32x32xf32>
    %c0_8 = arith.constant 0 : index
    %c0_9 = arith.constant 0 : index
    %c0_10 = arith.constant 0 : index
    %10 = vector.load %arg5[%c0_8, %c0_9, %c0_10] : memref<1x32x32xf32, #tpu.memory_space<vmem>>, vector<1x32x32xf32>
    %11 = vector.shape_cast %10 : vector<1x32x32xf32> to vector<32x32xf32>
    %12 = vector.shape_cast %9 : vector<32x32xf32> to vector<1x32x32xf32>
    tpu.vector_store %arg5[%c0_8, %c0_9, %c0_10], %12 {strides = array<i32>} : memref<1x32x32xf32, #tpu.memory_space<vmem>>, vector<1x32x32xf32>,
    return
  }
  func.func @transform_0(%arg0: i32, %arg1: i32) -> (i32, i32, i32) {
    %c0_i32 = arith.constant 0 : i32
    %c0_i32_0 = arith.constant 0 : i32
    %c0_i32_1 = arith.constant 0 : i32
    return %arg0, %c0_i32, %c0_i32_0 : i32, i32, i32
  }
  func.func @transform_1(%arg0: i32, %arg1: i32) -> (i32, i32, i32) {
    %c0_i32 = arith.constant 0 : i32
    %c0_i32_0 = arith.constant 0 : i32
    return %arg0, %c0_i32, %arg1 : i32, i32, i32
  }
  func.func @transform_2(%arg0: i32, %arg1: i32) -> (i32, i32) {
    %c0_i32 = arith.constant 0 : i32
    %c0_i32_0 = arith.constant 0 : i32
    %c0_i32_1 = arith.constant 0 : i32
    return %c0_i32, %c0_i32_0 : i32, i32
  }
  func.func @transform_3(%arg0: i32, %arg1: i32) -> (i32, i32, i32) {
    %c0_i32 = arith.constant 0 : i32
    %c0_i32_0 = arith.constant 0 : i32
    return %arg0, %c0_i32, %arg1 : i32, i32, i32
  }
}

module attributes {stable_mosaic.version = 11 : i64} {
  func.func @_gemm_bias_act_kernel(%arg0: i32, %arg1: i32, %arg2: memref<1x32x128xbf16, #tpu.memory_space<vmem>>, %arg3: memref<1x128x32xbf16, #tpu.memory_space<vmem>>, %arg4: memref<32x1xf32, #tpu.memory_space<vmem>>, %arg5: memref<1x32x32xf32, #tpu.memory_space<vmem>>) attributes {dimension_semantics = [#tpu.dimension_semantics<parallel>, #tpu.dimension_semantics<parallel>], iteration_bounds = array<i64: 4, 1>, scalar_prefetch = 0 : i64, scratch_operands = 0 : i64, tpu.core_type = #tpu.core_type<tc>, window_params = [{transform_indices = @transform_0, window_bounds = array<i64: 1, 32, 128>}, {transform_indices = @transform_1, window_bounds = array<i64: 1, 128, 32>}, {pipeline_mode = #tpu.pipeline_mode<synchronous>, transform_indices = @transform_2, window_bounds = array<i64: 32, 1>}, {transform_indices = @transform_3, window_bounds = array<i64: 1, 32, 32>}]} {
    %c0 = arith.constant 0 : index
    %c0_0 = arith.constant 0 : index
    %c0_1 = arith.constant 0 : index
    %0 = vector.load %arg2[%c0, %c0_0, %c0_1] : memref<1x32x128xbf16, #tpu.memory_space<vmem>>, vector<1x32x128xbf16>
    %1 = vector.shape_cast %0 : vector<1x32x128xbf16> to vector<32x128xbf16>
    %c0_2 = arith.constant 0 : index
    %c0_3 = arith.constant 0 : index
    %c0_4 = arith.constant 0 : index
    %2 = vector.load %arg3[%c0_2, %c0_3, %c0_4] : memref<1x128x32xbf16, #tpu.memory_space<vmem>>, vector<1x128x32xbf16>
    %3 = vector.shape_cast %2 : vector<1x128x32xbf16> to vector<128x32xbf16>
    %cst = arith.constant dense<0.000000e+00> : vector<32x32xf32>
    %4 = tpu.matmul %1, %3, %cst {dimension_numbers = #tpu.dot_dimension_numbers<[1], [0], [0], [1], [0, 0, 1, 1], [], []>} : vector<32x128xbf16>, vector<128x32xbf16>, vector<32x32xf32> -> vector<32x32xf32>
    %c0_5 = arith.constant 0 : index
    %c0_6 = arith.constant 0 : index
    %5 = vector.load %arg4[%c0_5, %c0_6] : memref<32x1xf32, #tpu.memory_space<vmem>>, vector<32x1xf32>
    %6 = vector.broadcast %5 : vector<32x1xf32> to vector<32x32xf32>
    %7 = arith.addf %4, %6 : vector<32x32xf32>
    %cst_7 = arith.constant 0.000000e+00 : f32
    %8 = vector.broadcast %cst_7 : f32 to vector<32x32xf32>
    %9 = arith.maximumf %7, %8 : vector<32x32xf32>
    %c0_8 = arith.constant 0 : index
    %c0_9 = arith.constant 0 : index
    %c0_10 = arith.constant 0 : index
    %10 = vector.load %arg5[%c0_8, %c0_9, %c0_10] : memref<1x32x32xf32, #tpu.memory_space<vmem>>, vector<1x32x32xf32>
    %11 = vector.shape_cast %10 : vector<1x32x32xf32> to vector<32x32xf32>
    %12 = vector.shape_cast %9 : vector<32x32xf32> to vector<1x32x32xf32>
    tpu.vector_store %arg5[%c0_8, %c0_9, %c0_10], %12 {strides = array<i32>} : memref<1x32x32xf32, #tpu.memory_space<vmem>>, vector<1x32x32xf32>,
    return
  }
  func.func @transform_0(%arg0: i32, %arg1: i32) -> (i32, i32, i32) {
    %c0_i32 = arith.constant 0 : i32
    %c0_i32_0 = arith.constant 0 : i32
    %c0_i32_1 = arith.constant 0 : i32
    return %arg0, %c0_i32, %c0_i32_0 : i32, i32, i32
  }
  func.func @transform_1(%arg0: i32, %arg1: i32) -> (i32, i32, i32) {
    %c0_i32 = arith.constant 0 : i32
    %c0_i32_0 = arith.constant 0 : i32
    return %arg0, %c0_i32, %arg1 : i32, i32, i32
  }
  func.func @transform_2(%arg0: i32, %arg1: i32) -> (i32, i32) {
    %c0_i32 = arith.constant 0 : i32
    %c0_i32_0 = arith.constant 0 : i32
    %c0_i32_1 = arith.constant 0 : i32
    return %c0_i32, %c0_i32_0 : i32, i32
  }
  func.func @transform_3(%arg0: i32, %arg1: i32) -> (i32, i32, i32) {
    %c0_i32 = arith.constant 0 : i32
    %c0_i32_0 = arith.constant 0 : i32
    return %arg0, %c0_i32, %arg1 : i32, i32, i32
  }
}

module attributes {stable_mosaic.version = 11 : i64} {
  func.func @_gemm_bias_act_kernel(%arg0: i32, %arg1: i32, %arg2: memref<1x32x128xbf16, #tpu.memory_space<vmem>>, %arg3: memref<1x128x128xbf16, #tpu.memory_space<vmem>>, %arg4: memref<32x1xf32, #tpu.memory_space<vmem>>, %arg5: memref<1x32x128xf32, #tpu.memory_space<vmem>>) attributes {dimension_semantics = [#tpu.dimension_semantics<parallel>, #tpu.dimension_semantics<parallel>], iteration_bounds = array<i64: 4, 1>, scalar_prefetch = 0 : i64, scratch_operands = 0 : i64, tpu.core_type = #tpu.core_type<tc>, window_params = [{transform_indices = @transform_0, window_bounds = array<i64: 1, 32, 128>}, {transform_indices = @transform_1, window_bounds = array<i64: 1, 128, 128>}, {pipeline_mode = #tpu.pipeline_mode<synchronous>, transform_indices = @transform_2, window_bounds = array<i64: 32, 1>}, {transform_indices = @transform_3, window_bounds = array<i64: 1, 32, 128>}]} {
    %c0 = arith.constant 0 : index
    %c0_0 = arith.constant 0 : index
    %c0_1 = arith.constant 0 : index
    %0 = vector.load %arg2[%c0, %c0_0, %c0_1] : memref<1x32x128xbf16, #tpu.memory_space<vmem>>, vector<1x32x128xbf16>
    %1 = vector.shape_cast %0 : vector<1x32x128xbf16> to vector<32x128xbf16>
    %c0_2 = arith.constant 0 : index
    %c0_3 = arith.constant 0 : index
    %c0_4 = arith.constant 0 : index
    %2 = vector.load %arg3[%c0_2, %c0_3, %c0_4] : memref<1x128x128xbf16, #tpu.memory_space<vmem>>, vector<1x128x128xbf16>
    %3 = vector.shape_cast %2 : vector<1x128x128xbf16> to vector<128x128xbf16>
    %cst = arith.constant dense<0.000000e+00> : vector<32x128xf32>
    %4 = tpu.matmul %1, %3, %cst {dimension_numbers = #tpu.dot_dimension_numbers<[1], [0], [0], [1], [0, 0, 1, 1], [], []>} : vector<32x128xbf16>, vector<128x128xbf16>, vector<32x128xf32> -> vector<32x128xf32>
    %c0_5 = arith.constant 0 : index
    %c0_6 = arith.constant 0 : index
    %5 = vector.load %arg4[%c0_5, %c0_6] : memref<32x1xf32, #tpu.memory_space<vmem>>, vector<32x1xf32>
    %6 = vector.broadcast %5 : vector<32x1xf32> to vector<32x128xf32>
    %7 = arith.addf %4, %6 : vector<32x128xf32>
    %cst_7 = arith.constant 0.000000e+00 : f32
    %8 = vector.broadcast %cst_7 : f32 to vector<32x128xf32>
    %9 = arith.maximumf %7, %8 : vector<32x128xf32>
    %c0_8 = arith.constant 0 : index
    %c0_9 = arith.constant 0 : index
    %c0_10 = arith.constant 0 : index
    %10 = vector.load %arg5[%c0_8, %c0_9, %c0_10] : memref<1x32x128xf32, #tpu.memory_space<vmem>>, vector<1x32x128xf32>
    %11 = vector.shape_cast %10 : vector<1x32x128xf32> to vector<32x128xf32>
    %12 = vector.shape_cast %9 : vector<32x128xf32> to vector<1x32x128xf32>
    tpu.vector_store %arg5[%c0_8, %c0_9, %c0_10], %12 {strides = array<i32>} : memref<1x32x128xf32, #tpu.memory_space<vmem>>, vector<1x32x128xf32>,
    return
  }
  func.func @transform_0(%arg0: i32, %arg1: i32) -> (i32, i32, i32) {
    %c0_i32 = arith.constant 0 : i32
    %c0_i32_0 = arith.constant 0 : i32
    %c0_i32_1 = arith.constant 0 : i32
    return %arg0, %c0_i32, %c0_i32_0 : i32, i32, i32
  }
  func.func @transform_1(%arg0: i32, %arg1: i32) -> (i32, i32, i32) {
    %c0_i32 = arith.constant 0 : i32
    %c0_i32_0 = arith.constant 0 : i32
    return %arg0, %c0_i32, %arg1 : i32, i32, i32
  }
  func.func @transform_2(%arg0: i32, %arg1: i32) -> (i32, i32) {
    %c0_i32 = arith.constant 0 : i32
    %c0_i32_0 = arith.constant 0 : i32
    %c0_i32_1 = arith.constant 0 : i32
    return %c0_i32, %c0_i32_0 : i32, i32
  }
  func.func @transform_3(%arg0: i32, %arg1: i32) -> (i32, i32, i32) {
    %c0_i32 = arith.constant 0 : i32
    %c0_i32_0 = arith.constant 0 : i32
    return %arg0, %c0_i32, %arg1 : i32, i32, i32
  }
}

module attributes {stable_mosaic.version = 11 : i64} {
  func.func @_gemm_bias_act_kernel(%arg0: i32, %arg1: i32, %arg2: memref<1x3x288xbf16, #tpu.memory_space<vmem>>, %arg3: memref<1x288x256xbf16, #tpu.memory_space<vmem>>, %arg4: memref<3x1xf32, #tpu.memory_space<vmem>>, %arg5: memref<1x3x256xf32, #tpu.memory_space<vmem>>) attributes {dimension_semantics = [#tpu.dimension_semantics<parallel>, #tpu.dimension_semantics<parallel>], iteration_bounds = array<i64: 1, 2>, scalar_prefetch = 0 : i64, scratch_operands = 0 : i64, tpu.core_type = #tpu.core_type<tc>, window_params = [{transform_indices = @transform_0, window_bounds = array<i64: 1, 3, 288>}, {transform_indices = @transform_1, window_bounds = array<i64: 1, 288, 256>}, {pipeline_mode = #tpu.pipeline_mode<synchronous>, transform_indices = @transform_2, window_bounds = array<i64: 3, 1>}, {transform_indices = @transform_3, window_bounds = array<i64: 1, 3, 256>}]} {
    %c0 = arith.constant 0 : index
    %c0_0 = arith.constant 0 : index
    %c0_1 = arith.constant 0 : index
    %0 = vector.load %arg2[%c0, %c0_0, %c0_1] : memref<1x3x288xbf16, #tpu.memory_space<vmem>>, vector<1x3x288xbf16>
    %1 = vector.shape_cast %0 : vector<1x3x288xbf16> to vector<3x288xbf16>
    %c0_2 = arith.constant 0 : index
    %c0_3 = arith.constant 0 : index
    %c0_4 = arith.constant 0 : index
    %2 = vector.load %arg3[%c0_2, %c0_3, %c0_4] : memref<1x288x256xbf16, #tpu.memory_space<vmem>>, vector<1x288x256xbf16>
    %3 = vector.shape_cast %2 : vector<1x288x256xbf16> to vector<288x256xbf16>
    %cst = arith.constant dense<0.000000e+00> : vector<3x256xf32>
    %4 = tpu.matmul %1, %3, %cst {dimension_numbers = #tpu.dot_dimension_numbers<[1], [0], [0], [1], [0, 0, 1, 1], [], []>} : vector<3x288xbf16>, vector<288x256xbf16>, vector<3x256xf32> -> vector<3x256xf32>
    %c0_5 = arith.constant 0 : index
    %c0_6 = arith.constant 0 : index
    %5 = vector.load %arg4[%c0_5, %c0_6] : memref<3x1xf32, #tpu.memory_space<vmem>>, vector<3x1xf32>
    %6 = vector.broadcast %5 : vector<3x1xf32> to vector<3x256xf32>
    %7 = arith.addf %4, %6 : vector<3x256xf32>
    %c0_7 = arith.constant 0 : index
    %c0_8 = arith.constant 0 : index
    %c0_9 = arith.constant 0 : index
    %8 = vector.load %arg5[%c0_7, %c0_8, %c0_9] : memref<1x3x256xf32, #tpu.memory_space<vmem>>, vector<1x3x256xf32>
    %9 = vector.shape_cast %8 : vector<1x3x256xf32> to vector<3x256xf32>
    %10 = vector.shape_cast %7 : vector<3x256xf32> to vector<1x3x256xf32>
    tpu.vector_store %arg5[%c0_7, %c0_8, %c0_9], %10 {strides = array<i32>} : memref<1x3x256xf32, #tpu.memory_space<vmem>>, vector<1x3x256xf32>,
    return
  }
  func.func @transform_0(%arg0: i32, %arg1: i32) -> (i32, i32, i32) {
    %c0_i32 = arith.constant 0 : i32
    %c0_i32_0 = arith.constant 0 : i32
    %c0_i32_1 = arith.constant 0 : i32
    return %arg0, %c0_i32, %c0_i32_0 : i32, i32, i32
  }
  func.func @transform_1(%arg0: i32, %arg1: i32) -> (i32, i32, i32) {
    %c0_i32 = arith.constant 0 : i32
    %c0_i32_0 = arith.constant 0 : i32
    return %arg0, %c0_i32, %arg1 : i32, i32, i32
  }
  func.func @transform_2(%arg0: i32, %arg1: i32) -> (i32, i32) {
    %c0_i32 = arith.constant 0 : i32
    %c0_i32_0 = arith.constant 0 : i32
    %c0_i32_1 = arith.constant 0 : i32
    return %c0_i32, %c0_i32_0 : i32, i32
  }
  func.func @transform_3(%arg0: i32, %arg1: i32) -> (i32, i32, i32) {
    %c0_i32 = arith.constant 0 : i32
    %c0_i32_0 = arith.constant 0 : i32
    return %arg0, %c0_i32, %arg1 : i32, i32, i32
  }
}

</mosaic_0001>

<bundles_post_ra>
// kernel: som_autoencoder_forward.8
= control target key start
LH: loop header
LB: loop body
LE: loop exit
PB: predicated region body
PF: predicated region fallthrough
CT: control target
= control target key end

     0   :  { %v175_v1 = vmov 0   ;;  %vm77_vm0 = vcmask 392192   ;;  %s237_s1 = inlined_call_operand.vmem [shape: bf16[1,48,128], index: 1, kind: input, shape index: {}]   ;;  %s238_s0 = inlined_call_operand.vmem [shape: bf16[1,32,48], index: 0, kind: input, shape index: {}]   ;;  %s239_s2 = inlined_call_operand.vmem [shape: f32[32,1], index: 2, kind: input, shape index: {}]   ;;  %s240_s3 = inlined_call_operand.vmem [shape: f32[1,32,128], index: 3, kind: output, shape index: {}]  }
   0x1   :  { %v170_v0 = vld [vmem:[%s237_s1] sm:$0xff]   ;;  %169 = vset.pattern.permute.xlu1 %v175_v1  ;;  %168 = vset.pattern.permute.xlu0 %v175_v1  ;;  %v171_v2 = vld [vmem:[%s237_s1 + $0x8] sm:$0xff]   ;;  %v172_v4 = vld [vmem:[%s237_s1 + $0x10] sm:$0xff]  }
   0x2   :  { %157 = vmatprep.subr.bf16.mxu0 %v170_v0  ;;  %v173_v3 = vld [vmem:[%s238_s0] sm:$0xff]   ;;  %v27_v5 = vld [vmem:[%s239_s2 + $0x10] sm:$0xff]  ;;  %v28_v7 = vld [vmem:[%s239_s2 + $0x18] sm:$0xff] }
   0x3   :  { %158 = vmatpush3.bf16.msra.mxu0 %v170_v0  ;;  %163 = vmatprep.mubr.msk.bf16.mxu0 %vm77_vm0, %v173_v3  ;;  %v25_v6 = vld [vmem:[%s239_s2] sm:$0xff]  ;;  %v26_v8 = vld [vmem:[%s239_s2 + $0x8] sm:$0xff] }
   0x4   :  { %159 = vmatprep.subr.bf16.mxu0 %v171_v2  ;;  %41 = vperm.xlu1 %169, %v27_v5   ;;  %v174_v9 = vld [vmem:[%s238_s0 + $0x8] sm:$0xff]  }
   0x5   :  { %31 = vperm.xlu0 %168, %v25_v6  }
   0x7   :  { %160 = vmatpush3.bf16.msra.mxu0 %v171_v2 }
   0x8   :  { %161 = vmatprep.subr.bf16.mxu0 %v172_v4  ;;  %46 = vperm.xlu1 %169, %v28_v7  }
   0x9   :  { %36 = vperm.xlu0 %168, %v26_v8  }
   0xb   :  { %162 = vmatpush3.bf16.msra.mxu0 %v172_v4 }
   0xe   :  { %164 = vmatmul.mubr.msk.bf16.vlgmr.msra.gmra.mrb[0].mxu0 %vm77_vm0, %v174_v9 }
  0x83   :  { %v42_v10 = vpop.permute.xlu1 %41 }
  0x84   :  { %v32_v11 = vpop.permute.xlu0 %31 }
  0x87   :  { %v47_v15 = vpop.permute.xlu1 %46 }
  0x88   :  { %v37_v18 = vpop.permute.xlu0 %36 }
  0xe1   :  { %v165_v12 = vpop.f32.mrb[0].mxu0 }
  0xe2   :  { %v127_v13 = vadd.f32 %v165_v12, %v42_v10  ;;  %v118_v14 = vpop.f32.mrb[1].mxu0 }
  0xe3   :  { %v119_v16 = vadd.f32 %v118_v14, %v32_v11  ;;  %v166_v17 = vpop.f32.mrb[2].mxu0 }
  0xe4   :  { %v135_v19 = vmax.f32 %v127_v13, 0.0  ;;  %v130_v20 = vadd.f32 %v166_v17, %v47_v15  ;;  %v121_v21 = vpop.f32.mrb[3].mxu0 }
  0xe5   :  { %v133_v22 = vmax.f32 %v119_v16, 0.0  ;;  %v122_v23 = vadd.f32 %v121_v21, %v37_v18 }
  0xe6   :  { %139 = vst [vmem:[%s240_s3 + $0x10] sm:$0xff] %v135_v19  ;;  %v136_v24 = vmax.f32 %v130_v20, 0.0 }
  0xe7   :  { %137 = vst [vmem:[%s240_s3] sm:$0xff] %v133_v22  ;;  %v134_v25 = vmax.f32 %v122_v23, 0.0 }
  0xe8   :  { %140 = vst [vmem:[%s240_s3 + $0x18] sm:$0xff] %v136_v24 }
  0xe9   :  { %138 = vst [vmem:[%s240_s3 + $0x8] sm:$0xff] %v134_v25 }

// kernel: som_autoencoder_forward.9
= control target key start
LH: loop header
LB: loop body
LE: loop exit
PB: predicated region body
PF: predicated region fallthrough
CT: control target
= control target key end

     0   :  { %v597_v1 = vmov 0   ;;  %vm445_vm0 = vcmask 261120   ;;  %s766_s1 = inlined_call_operand.vmem [shape: bf16[1,512,32], index: 1, kind: input, shape index: {}]   ;;  %s767_s0 = inlined_call_operand.vmem [shape: bf16[1,32,512], index: 0, kind: input, shape index: {}]   ;;  %s768_s2 = inlined_call_operand.vmem [shape: f32[32,1], index: 2, kind: input, shape index: {}]   ;;  %s769_s3 = inlined_call_operand.vmem [shape: f32[1,32,32], index: 3, kind: output, shape index: {}]  }
   0x1   :  { %v553_v0 = vld [vmem:[%s766_s1 + $0x40] sm:$0xff]   ;;  %551 = vset.pattern.permute.xlu0 %v597_v1  ;;  %552 = vset.pattern.permute.xlu1 %v597_v1  ;;  %v557_v5 = vld [vmem:[%s766_s1 + $0x48] sm:$0xff]   ;;  %v561_v9 = vld [vmem:[%s766_s1 + $0x50] sm:$0xff]  }
   0x2   :  { %v554_v2 = vld [vmem:[%s766_s1 + $0xc0] sm:$0xff]   ;;  %494 = vmatprep.subr.bf16.mxu0 %v553_v0  ;;  %v558_v6 = vld [vmem:[%s766_s1 + $0xc8] sm:$0xff]   ;;  %v562_v10 = vld [vmem:[%s766_s1 + $0xd0] sm:$0xff]  }
   0x3   :  { %v555_v3 = vld [vmem:[%s766_s1] sm:$0xff]   ;;  %522 = vmatprep.subr.bf16.mxu1 %v554_v2  ;;  %v559_v7 = vld [vmem:[%s766_s1 + $0x8] sm:$0xff]   ;;  %v563_v11 = vld [vmem:[%s766_s1 + $0x10] sm:$0xff]  }
   0x4   :  { %v556_v4 = vld [vmem:[%s766_s1 + $0x80] sm:$0xff]   ;;  %495 = vmatpush3.bf16.msra.mxu0 %v555_v3  ;;  %v560_v8 = vld [vmem:[%s766_s1 + $0x88] sm:$0xff]   ;;  %v564_v12 = vld [vmem:[%s766_s1 + $0x90] sm:$0xff]  }
   0x5   :  { %523 = vmatpush3.bf16.msra.mxu1 %v556_v4  ;;  %496 = vmatprep.subr.bf16.mxu0 %v557_v5  ;;  %v565_v13 = vld [vmem:[%s766_s1 + $0x58] sm:$0xff]   ;;  %v569_v17 = vld [vmem:[%s766_s1 + $0x60] sm:$0xff]   ;;  %v573_v21 = vld [vmem:[%s766_s1 + $0x68] sm:$0xff]  }
   0x6   :  { %524 = vmatprep.subr.bf16.mxu1 %v558_v6  ;;  %v566_v14 = vld [vmem:[%s766_s1 + $0xd8] sm:$0xff]   ;;  %v570_v18 = vld [vmem:[%s766_s1 + $0xe0] sm:$0xff]   ;;  %v574_v22 = vld [vmem:[%s766_s1 + $0xe8] sm:$0xff]  }
   0x7   :  { %v567_v15 = vld [vmem:[%s766_s1 + $0x18] sm:$0xff]   ;;  %v571_v19 = vld [vmem:[%s766_s1 + $0x20] sm:$0xff]   ;;  %v575_v23 = vld [vmem:[%s766_s1 + $0x28] sm:$0xff]  }
   0x8   :  { %497 = vmatpush3.bf16.msra.mxu0 %v559_v7  ;;  %v568_v16 = vld [vmem:[%s766_s1 + $0x98] sm:$0xff]   ;;  %v572_v20 = vld [vmem:[%s766_s1 + $0xa0] sm:$0xff]   ;;  %v576_v24 = vld [vmem:[%s766_s1 + $0xa8] sm:$0xff]  }
   0x9   :  { %525 = vmatpush3.bf16.msra.mxu1 %v560_v8  ;;  %498 = vmatprep.subr.bf16.mxu0 %v561_v9  ;;  %v577_v25 = vld [vmem:[%s766_s1 + $0x70] sm:$0xff]   ;;  %v581_v29 = vld [vmem:[%s766_s1 + $0x78] sm:$0xff]   ;;  %v87_v39 = vld [vmem:[%s768_s2] sm:$0xff] }
   0xa   :  { %526 = vmatprep.subr.bf16.mxu1 %v562_v10  ;;  %v578_v26 = vld [vmem:[%s766_s1 + $0xf0] sm:$0xff]   ;;  %v582_v30 = vld [vmem:[%s766_s1 + $0xf8] sm:$0xff]   ;;  %93 = vperm.xlu0 %551, %v87_v39   ;;  %v88_v41 = vld [vmem:[%s768_s2 + $0x8] sm:$0xff] }
   0xb   :  { %v579_v27 = vld [vmem:[%s766_s1 + $0x30] sm:$0xff]   ;;  %v583_v31 = vld [vmem:[%s766_s1 + $0x38] sm:$0xff]  }
   0xc   :  { %499 = vmatpush3.bf16.msra.mxu0 %v563_v11  ;;  %v580_v28 = vld [vmem:[%s766_s1 + $0xb0] sm:$0xff]   ;;  %v584_v32 = vld [vmem:[%s766_s1 + $0xb8] sm:$0xff]  }
   0xd   :  { %527 = vmatpush3.bf16.msra.mxu1 %v564_v12  ;;  %500 = vmatprep.subr.bf16.mxu0 %v565_v13  ;;  %v585_v33 = vld [vmem:[%s767_s0] ss:$16 sps:$4 sm:$0xff]   ;;  %v587_v34 = vld [vmem:[%s767_s0 + $0x4] ss:$16 sps:$4 sm:$0xff]   ;;  %v588_v35 = vld [vmem:[%s767_s0 + $0x8] ss:$16 sps:$4 sm:$0xff]  }
   0xe   :  { %528 = vmatprep.subr.bf16.mxu1 %v566_v14  ;;  %v590_v36 = vld [vmem:[%s767_s0 + $0xc] ss:$16 sps:$4 sm:$0xff]   ;;  %375 = vmatprep.mubr.bf16.mxu0 %v587_v34  ;;  %v591_v37 = vld [vmem:[%s767_s0 + $0x24] ss:$16 sps:$4 sm:$0xff]   ;;  %v595_v42 = vld [vmem:[%s767_s0 + $0x20] ss:$16 sps:$4 sm:$0xff]  }
   0xf   :  { %424 = vmatprep.mubr.bf16.mxu1 %v590_v36  ;;  %v593_v38 = vld [vmem:[%s767_s0 + $0x2c] ss:$16 sps:$4 sm:$0xff]   ;;  %v89_v40 = vld [vmem:[%s768_s2 + $0x10] sm:$0xff]  ;;  %v596_v44 = vld [vmem:[%s767_s0 + $0x28] ss:$16 sps:$4 sm:$0xff]   ;;  %98 = vperm.xlu0 %551, %v88_v41  }
  0x10   :  { %501 = vmatpush3.bf16.msra.mxu0 %v567_v15  ;;  %103 = vperm.xlu1 %552, %v89_v40   ;;  %v90_v43 = vld [vmem:[%s768_s2 + $0x18] sm:$0xff] }
  0x11   :  { %529 = vmatpush3.bf16.msra.mxu1 %v568_v16  ;;  %502 = vmatprep.subr.bf16.mxu0 %v569_v17 }
  0x12   :  { %530 = vmatprep.subr.bf16.mxu1 %v570_v18 }
  0x14   :  { %503 = vmatpush3.bf16.msra.mxu0 %v571_v19  ;;  %108 = vperm.xlu1 %552, %v90_v43  }
  0x15   :  { %531 = vmatpush3.bf16.msra.mxu1 %v572_v20  ;;  %504 = vmatprep.subr.bf16.mxu0 %v573_v21 }
  0x16   :  { %532 = vmatprep.subr.bf16.mxu1 %v574_v22 }
  0x18   :  { %505 = vmatpush3.bf16.msra.mxu0 %v575_v23 }
  0x19   :  { %533 = vmatpush3.bf16.msra.mxu1 %v576_v24  ;;  %506 = vmatprep.subr.bf16.mxu0 %v577_v25 }
  0x1a   :  { %534 = vmatprep.subr.bf16.mxu1 %v578_v26 }
  0x1c   :  { %507 = vmatpush3.bf16.msra.mxu0 %v579_v27 }
  0x1d   :  { %535 = vmatpush3.bf16.msra.mxu1 %v580_v28  ;;  %508 = vmatprep.subr.bf16.mxu0 %v581_v29 }
  0x1e   :  { %536 = vmatprep.subr.bf16.mxu1 %v582_v30 }
  0x20   :  { %509 = vmatpush3.bf16.msra.mxu0 %v583_v31 }
  0x21   :  { %537 = vmatpush3.bf16.msra.mxu1 %v584_v32 }
  0x23   :  { %376 = vmatmul.mubr.bf16.vlgmr.msra.gmra.mrb[0].mxu0 %v585_v33 }
  0x24   :  { %425 = vmatmul.mubr.bf16.vlgmr.msra.gmra.mrb[0].mxu1 %v588_v35  ;;  %383 = vmatprep.mubr.bf16.mxu0 %v591_v37 }
  0x25   :  { %432 = vmatprep.mubr.bf16.mxu1 %v593_v38 }
  0x2b   :  { %384 = vmatmul.mubr.bf16.gmra.mrb[4].mxu0 %v595_v42 }
  0x2c   :  { %433 = vmatmul.mubr.bf16.gmra.mrb[4].mxu1 %v596_v44 }
  0x89   :  { %v94_v45 = vpop.permute.xlu0 %93 }
  0x8e   :  { %v99_v47 = vpop.permute.xlu0 %98 }
  0x8f   :  { %v104_v62 = vpop.permute.xlu1 %103 }
  0x93   :  { %v109_v14 = vpop.permute.xlu1 %108 }
  0xf6   :  { %v510_v46 = vpop.f32.mrb[0].mxu0 }
  0xf7   :  { %v538_v48 = vpop.f32.mrb[0].mxu1  ;;  %v511_v49 = vpop.f32.mrb[1].mxu0 }
  0xf8   :  { %v512_v50 = vadd.f32 %v511_v49, %v510_v46  ;;  %v539_v51 = vpop.f32.mrb[1].mxu1  ;;  %v513_v52 = vpop.f32.mrb[2].mxu0 }
  0xf9   :  { %v540_v53 = vadd.f32 %v539_v51, %v538_v48  ;;  %v541_v54 = vpop.f32.mrb[2].mxu1  ;;  %v514_v55 = vpop.f32.mrb[3].mxu0 }
  0xfa   :  { %v378_v56 = vadd.f32 %v512_v50, %v94_v45  ;;  %v515_v57 = vadd.f32 %v514_v55, %v513_v52  ;;  %v542_v58 = vpop.f32.mrb[3].mxu1 }
  0xfb   :  { %v543_v59 = vadd.f32 %v542_v58, %v541_v54 }
  0xfc   :  { %v427_v60 = vadd.f32 %v540_v53, %v378_v56  ;;  %v381_v61 = vadd.f32 %v515_v57, %v99_v47 }
  0xfe   :  { %v441_v63 = vmax.f32 %v427_v60, 0.0  ;;  %v430_v0 = vadd.f32 %v543_v59, %v381_v61  ;;  %v516_v1 = vpop.f32.mrb[4].mxu0 }
  0xff   :  { %v544_v2 = vpop.f32.mrb[4].mxu1  ;;  %v517_v3 = vpop.f32.mrb[5].mxu0 }
 0x100   :  { %446 = vst.msk [vmem:[%s769_s3] sm:$0xff] %vm445_vm0, %v441_v63  ;;  %v442_v4 = vmax.f32 %v430_v0, 0.0  ;;  %v518_v5 = vadd.f32 %v517_v3, %v516_v1  ;;  %v545_v6 = vpop.f32.mrb[5].mxu1  ;;  %v519_v7 = vpop.f32.mrb[6].mxu0 }
 0x101   :  { %v546_v8 = vadd.f32 %v545_v6, %v544_v2  ;;  %v547_v9 = vpop.f32.mrb[6].mxu1  ;;  %v520_v10 = vpop.f32.mrb[7].mxu0 }
 0x102   :  { %447 = vst.msk [vmem:[%s769_s3 + $0x8] sm:$0xff] %vm445_vm0, %v442_v4  ;;  %v386_v11 = vadd.f32 %v518_v5, %v104_v62  ;;  %v521_v12 = vadd.f32 %v520_v10, %v519_v7  ;;  %v548_v13 = vpop.f32.mrb[7].mxu1 }
 0x103   :  { %v549_v15 = vadd.f32 %v548_v13, %v547_v9 }
 0x104   :  { %v435_v16 = vadd.f32 %v546_v8, %v386_v11  ;;  %v389_v17 = vadd.f32 %v521_v12, %v109_v14 }
 0x106   :  { %v443_v18 = vmax.f32 %v435_v16, 0.0  ;;  %v438_v19 = vadd.f32 %v549_v15, %v389_v17 }
 0x108   :  { %448 = vst.msk [vmem:[%s769_s3 + $0x10] sm:$0xff] %vm445_vm0, %v443_v18  ;;  %v444_v20 = vmax.f32 %v438_v19, 0.0 }
 0x10a   :  { %449 = vst.msk [vmem:[%s769_s3 + $0x18] sm:$0xff] %vm445_vm0, %v444_v20 }

// kernel: som_autoencoder_forward.10
= control target key start
LH: loop header
LB: loop body
LE: loop exit
PB: predicated region body
PF: predicated region fallthrough
CT: control target
= control target key end

     0   :  { %v363_v1 = vmov 0.0   ;;  %vm364_vm0 = vmmov 0   ;;  %v365_v3 = vmov 0   ;;  %vm190_vm1 = vcmask 261120   ;;  %s464_s1 = inlined_call_operand.vmem [shape: bf16[1,288,32], index: 1, kind: input, shape index: {}]   ;;  %s465_s0 = inlined_call_operand.vmem [shape: bf16[1,16,288], index: 0, kind: input, shape index: {}]   ;;  %s466_s2 = inlined_call_operand.vmem [shape: f32[16,1], index: 2, kind: input, shape index: {}]   ;;  %s467_s3 = inlined_call_operand.vmem [shape: f32[1,16,32], index: 3, kind: output, shape index: {}]  }
   0x1   :  { %v341_v0 = vld [vmem:[%s464_s1 + $0x40] sm:$0xff]   ;;  %329 = vmatprep.subr.bf16.mxu1 %v363_v1  ;;  %333 = vmatprep.mubr.msk.bf16.mxu1 %vm364_vm0, %v363_v1  ;;  %v343_v4 = vld [vmem:[%s464_s1 + $0x48] sm:$0xff]   ;;  %v345_v6 = vld [vmem:[%s464_s1 + $0x50] sm:$0xff]  }
   0x2   :  { %v342_v2 = vld [vmem:[%s464_s1] sm:$0xff]   ;;  %340 = vset.pattern.permute.xlu0 %v365_v3  ;;  %304 = vmatprep.subr.bf16.mxu0 %v341_v0  ;;  %v344_v5 = vld [vmem:[%s464_s1 + $0x8] sm:$0xff]   ;;  %v346_v7 = vld [vmem:[%s464_s1 + $0x10] sm:$0xff]  }
   0x3   :  { %305 = vmatpush3.bf16.msra.mxu0 %v342_v2  ;;  %v347_v8 = vld [vmem:[%s464_s1 + $0x58] sm:$0xff]   ;;  %v349_v10 = vld [vmem:[%s464_s1 + $0x60] sm:$0xff]   ;;  %v351_v13 = vld [vmem:[%s464_s1 + $0x68] sm:$0xff]  }
   0x4   :  { %306 = vmatprep.subr.bf16.mxu0 %v343_v4  ;;  %v348_v9 = vld [vmem:[%s464_s1 + $0x18] sm:$0xff]   ;;  %v355_v11 = vld [vmem:[%s464_s1 + $0x80] sm:$0xff]   ;;  %v352_v14 = vld [vmem:[%s464_s1 + $0x28] sm:$0xff]  }
   0x5   :  { %v350_v12 = vld [vmem:[%s464_s1 + $0x20] sm:$0xff]   ;;  %330 = vmatpush3.bf16.msra.mxu1 %v355_v11  ;;  %v361_v16 = vld [vmem:[%s464_s1 + $0x88] sm:$0xff]   ;;  %v353_v17 = vld [vmem:[%s464_s1 + $0x70] sm:$0xff]  }
   0x6   :  { %331 = vmatprep.subr.bf16.mxu1 %v363_v1  ;;  %v360_v15 = vld [vmem:[%s465_s0 + $0x4] ss:$12 sps:$4 sm:$0xff]   ;;  %v362_v18 = vld [vmem:[%s465_s0 + $0x8] ss:$12 sps:$4 sm:$0xff]   ;;  %v356_v22 = vld [vmem:[%s464_s1 + $0x78] sm:$0xff]  }
   0x7   :  { %307 = vmatpush3.bf16.msra.mxu0 %v344_v5  ;;  %226 = vmatprep.mubr.bf16.mxu0 %v360_v15  ;;  %v55_v19 = vld [vmem:[%s466_s2] sm:$0xff]  ;;  %v56_v20 = vld [vmem:[%s466_s2 + $0x8] sm:$0xff]  ;;  %v354_v21 = vld [vmem:[%s464_s1 + $0x30] sm:$0xff]  }
   0x8   :  { %308 = vmatprep.subr.bf16.mxu0 %v345_v6  ;;  %59 = vperm.xlu0 %340, %v55_v19   ;;  %v357_v23 = vld [vmem:[%s464_s1 + $0x38] sm:$0xff]   ;;  %v358_v24 = vld [vmem:[%s465_s0] ss:$12 sps:$4 sm:$0xff]  }
   0x9   :  { %332 = vmatpush3.bf16.msra.mxu1 %v361_v16 }
   0xb   :  { %309 = vmatpush3.bf16.msra.mxu0 %v346_v7 }
   0xc   :  { %310 = vmatprep.subr.bf16.mxu0 %v347_v8  ;;  %334 = vmatmul.mubr.msk.bf16.vlgmr.msra.gmra.mrb[0].mxu1 %vm190_vm1, %v362_v18 }
   0xd   :  { %64 = vperm.xlu0 %340, %v56_v20  }
   0xf   :  { %311 = vmatpush3.bf16.msra.mxu0 %v348_v9 }
  0x10   :  { %312 = vmatprep.subr.bf16.mxu0 %v349_v10 }
  0x13   :  { %313 = vmatpush3.bf16.msra.mxu0 %v350_v12 }
  0x14   :  { %314 = vmatprep.subr.bf16.mxu0 %v351_v13 }
  0x17   :  { %315 = vmatpush3.bf16.msra.mxu0 %v352_v14 }
  0x18   :  { %316 = vmatprep.subr.bf16.mxu0 %v353_v17 }
  0x1b   :  { %317 = vmatpush3.bf16.msra.mxu0 %v354_v21 }
  0x1c   :  { %318 = vmatprep.subr.bf16.mxu0 %v356_v22 }
  0x1f   :  { %319 = vmatpush3.bf16.msra.mxu0 %v357_v23 }
  0x22   :  { %227 = vmatmul.mubr.bf16.vlgmr.msra.gmra.mrb[0].mxu0 %v358_v24 }
  0x87   :  { %v60_v29 = vpop.permute.xlu0 %59 }
  0x8c   :  { %v65_v37 = vpop.permute.xlu0 %64 }
  0xdf   :  { %v269_v25 = vpop.f32.mrb[0].mxu1 }
  0xe0   :  { %v335_v26 = vpop.f32.mrb[1].mxu1 }
  0xe1   :  { %v272_v27 = vpop.f32.mrb[2].mxu1 }
  0xe2   :  { %v336_v28 = vpop.f32.mrb[3].mxu1 }
  0xf5   :  { %v320_v30 = vpop.f32.mrb[0].mxu0 }
  0xf6   :  { %v321_v31 = vpop.f32.mrb[1].mxu0 }
  0xf7   :  { %v322_v32 = vadd.f32 %v321_v31, %v320_v30  ;;  %v323_v33 = vpop.f32.mrb[2].mxu0 }
  0xf8   :  { %v324_v34 = vpop.f32.mrb[3].mxu0 }
  0xf9   :  { %v229_v35 = vadd.f32 %v322_v32, %v60_v29  ;;  %v325_v36 = vadd.f32 %v324_v34, %v323_v33 }
  0xfb   :  { %v270_v38 = vadd.f32 %v269_v25, %v229_v35  ;;  %v232_v39 = vadd.f32 %v325_v36, %v65_v37 }
  0xfd   :  { %276 = vst.msk [vmem:[%s467_s3] sm:$0xff] %vm190_vm1, %v270_v38  ;;  %v273_v40 = vadd.f32 %v272_v27, %v232_v39 }
  0xff   :  { %277 = vst.msk [vmem:[%s467_s3 + $0x8] sm:$0xff] %vm190_vm1, %v273_v40 }

// kernel: som_autoencoder_forward.11
= control target key start
LH: loop header
LB: loop body
LE: loop exit
PB: predicated region body
PF: predicated region fallthrough
CT: control target
= control target key end

     0   :  { %s3020_s12 = smov 0   ;;  %s3610_s0 = inlined_call_operand.vmem [shape: f32[32,16], index: 0, kind: input, shape index: {}]   ;;  %s3611_s1 = inlined_call_operand.vmem [shape: f32[32,16,512], index: 1, kind: input, shape index: {}]   ;;  %s3612_s2 = inlined_call_operand.vmem [shape: f32[32,1,512], index: 2, kind: input, shape index: {}]   ;;  %s3613_s3 = inlined_call_operand.vmem [shape: f32[32,16], index: 3, kind: output, shape index: {}]  }
   0x1 LB: > { %s2662_s13 = sadd.s32 4294967295, %s2963_s12   ;;  %p2666_p0 = scmp.ge.s32.totalorder %s2963_s12, 1  ;;  %s2963_s12 = sphi %s3020_s12, %s13_s12  }
   0x2   : > { %p138_p1 = scmp.lt.s32.totalorder %s2963_s12, 3 }
   0x4   : > { %p139_p2 = pnand %p2666_p0, %p138_p1 }
   0x5   : > { %s2667_s14 = sshll.u32 (!%p139_p2), %s2662_s13, 1  ;;  %v3040_v2 = vmov (!%p139_p2), 0   ;;  %v3042_v3 = vmov (!%p139_p2), 0   ;;  %v3044_v4 = vmov (!%p139_p2), inf   ;;  %v3046_v5 = vmov (!%p139_p2), inf   ;;  %s3048_s22 = smov (!%p139_p2), 0  }
   0x6   : > { %142 = sbr.rel (%p139_p2) target bundleno = 1032 (0x408), region = 32  ;;  %p163_p3 = scmp.lt.s32.totalorder (!%p139_p2), %s2667_s14, 3 }
   0xd   : > { %s3623_s14 = smov (!%p163_p3, %s2667_s14), 3 }
   0xe   : > { %s2668_s15 = sshll.u32 %s3623_s14, 3 }
   0xf   : > { %s166_s18 = scalar_lea.vmem %s3610_s0, %s2668_s15  ;;  %s3034_s21 = scalar_lea.vmem %s3613_s3, %s2668_s15 }
  0x10   : > { %v3036_v0 = vld [vmem:[%s166_s18] sm:$0xff]  ;;  %v3038_v1 = vld [vmem:[%s166_s18 + $0x8] sm:$0xff] }
  0x11 LB: >> { %vm200_vm0 = vcmask 130048   ;;  %v2997_v6 = vmov 0.0   ;;  %s2712_s23 = sshll.u32 %s2983_s22, 6  ;;  %s2673_s27 = sshll.u32 %s2983_s22, 2  ;;  %s2983_s22 = sphi %s3048_s22, %s181_s22   ;;  %v2979_v5 = vphi %v3046_v5, %v3619_v5   ;;  %v2975_v4 = vphi %v3044_v4, %v3618_v4   ;;  %v2971_v3 = vphi %v3042_v3, %v3617_v3   ;;  %v2967_v2 = vphi %v3040_v2, %v3616_v2  }
  0x12   : >> { %275 = vmatprep.mubr.f32.mxu0 %v2997_v6  ;;  %815 = vmatprep.mubr.f32.mxu1 %v2997_v6  ;;  %v202_v7 = vsel %vm200_vm0, %v3036_v0, 0  ;;  %v205_v8 = vsel %vm200_vm0, %v3038_v1, 0  ;;  %s188_s26 = scalar_lea.vmem %s3611_s1, %s2712_s23  ;;  %s198_s30 = scalar_lea.vmem %s3612_s2, %s2673_s27 }
  0x13   : >> { %v3072_v9 = vand.u32 4294901760, %v202_v7  ;;  %v3074_v10 = vand.u32 4294901760, %v205_v8  ;;  %v190_v11 = vld [vmem:[%s188_s26 + $0x8] sm:$0xff]  ;;  %v192_v13 = vld [vmem:[%s188_s26 + $0x18] sm:$0xff]  ;;  %v189_v19 = vld [vmem:[%s188_s26] sm:$0xff]  ;;  %s2674_s4 = sshll.u32 %s2983_s22, 9 }
  0x14   : >> { %v194_v12 = vld [vmem:[%s188_s26 + $0x28] sm:$0xff]  ;;  %v207_v15 = vand.u32 4294901760, %v190_v11  ;;  %v196_v17 = vld [vmem:[%s188_s26 + $0x38] sm:$0xff]  ;;  %v747_v18 = vand.u32 4294901760, %v192_v13  ;;  %v193_v20 = vld [vmem:[%s188_s26 + $0x20] sm:$0xff]  ;;  %v209_v23 = vand.u32 4294901760, %v189_v19 }
  0x15   : >> { %v3080_v14 = vsub.f32 %v202_v7, %v3072_v9  ;;  %v211_v16 = vand.u32 4294901760, %v194_v12  ;;  %v3083_v21 = vsub.f32 %v205_v8, %v3074_v10  ;;  %v751_v22 = vand.u32 4294901760, %v196_v17  ;;  %v191_v25 = vld [vmem:[%s188_s26 + $0x10] sm:$0xff]  ;;  %s181_s22 = sadd.s32 1, %s2983_s22  }
  0x16   : >> { %v213_v24 = vand.u32 4294901760, %v193_v20  ;;  %v195_v26 = vld [vmem:[%s188_s26 + $0x30] sm:$0xff]  ;;  %v3090_v29 = vsub.f32 %v190_v11, %v207_v15  ;;  %v3094_v31 = vsub.f32 %v192_v13, %v747_v18  ;;  %v3102_v35 = vsub.f32 %v189_v19, %v209_v23  ;;  %p178_p4 = scmp.ge.s32.totalorder %s181_s22, 32  }
  0x17   : >> { %v3086_v27 = vand.u32 4294901760, %v3080_v14  ;;  %v3088_v28 = vpack.c.bf16 %v211_v16, %v207_v15  ;;  %v3092_v30 = vsub.f32 %v194_v12, %v211_v16  ;;  %v3096_v32 = vpack.c.bf16 %v751_v22, %v747_v18  ;;  %s3278_s5 = smov (%p178_p4), 0  }
  0x18   : >> { %v3098_v33 = vsub.f32 %v196_v17, %v751_v22  ;;  %v3100_v34 = vpack.c.bf16 %v213_v24, %v209_v23  ;;  %v3105_v36 = vsub.f32 %v193_v20, %v213_v24  ;;  %v749_v37 = vand.u32 4294901760, %v191_v25 }
  0x19   : >> { %2715 = vmatprep.subr.bf16.mxu0 %v3088_v28  ;;  %v753_v38 = vand.u32 4294901760, %v195_v26  ;;  %v279_v39 = vsub.f32 %v3080_v14, %v3086_v27  ;;  %2739 = vmatprep.subr.bf16.mxu1 %v3096_v32  ;;  %v3112_v40 = vand.u32 4294901760, %v3083_v21  ;;  %v300_v41 = vand.u32 4294901760, %v3090_v29 }
  0x1a   : >> { %2717 = vmatpush1.bf16.msra.mxu0 %v3100_v34  ;;  %v312_v42 = vand.u32 4294901760, %v3092_v30  ;;  %v840_v43 = vand.u32 4294901760, %v3094_v31  ;;  %v3119_v45 = vsub.f32 %v191_v25, %v749_v37  ;;  %v852_v52 = vand.u32 4294901760, %v3098_v33 }
  0x1b   : >> { %v3117_v44 = vpack.c.bf16 %v753_v38, %v749_v37  ;;  %v3121_v46 = vsub.f32 %v195_v26, %v753_v38  ;;  %v280_v47 = vand.u32 4294901760, %v279_v39  ;;  %v290_v48 = vsub.f32 %v3083_v21, %v3112_v40 }
  0x1c   : >> { %v301_v49 = vsub.f32 %v3090_v29, %v300_v41  ;;  %v313_v50 = vsub.f32 %v3092_v30, %v312_v42  ;;  %v841_v51 = vsub.f32 %v3094_v31, %v840_v43  ;;  %v306_v53 = vand.u32 4294901760, %v3102_v35 }
  0x1d   : >> { %2741 = vmatpush1.bf16.msra.mxu1 %v3117_v44  ;;  %281 = vmatmul.mubr.f32.vlgmr.msra.gmra.mrb[0].mxu0 %v280_v47  ;;  %v318_v54 = vand.u32 4294901760, %v3105_v36  ;;  %v846_v55 = vand.u32 4294901760, %v3119_v45  ;;  %v291_v56 = vand.u32 4294901760, %v290_v48  ;;  %v853_v60 = vsub.f32 %v3098_v33, %v852_v52 }
  0x1e   : >> { %286 = vmatprep.mubr.f32.mxu0 %v2997_v6  ;;  %v302_v57 = vand.u32 4294901760, %v301_v49  ;;  %v314_v58 = vand.u32 4294901760, %v313_v50  ;;  %v842_v59 = vand.u32 4294901760, %v841_v51  ;;  %v307_v61 = vsub.f32 %v3102_v35, %v306_v53 }
  0x1f   : >> { %v319_v62 = vsub.f32 %v3105_v36, %v318_v54  ;;  %v847_v63 = vsub.f32 %v3119_v45, %v846_v55  ;;  %v858_v8 = vand.u32 4294901760, %v3121_v46  ;;  %v854_v11 = vand.u32 4294901760, %v853_v60 }
  0x20   : >> { %821 = vmatmul.mubr.f32.vlgmr.msra.gmra.mrb[0].mxu1 %v280_v47  ;;  %v2718_v7 = vpack.c.bf16 %v314_v58, %v302_v57  ;;  %v308_v12 = vand.u32 4294901760, %v307_v61  ;;  %v2722_v17 = vpack.c.bf16 %v3092_v30, %v3090_v29  ;;  %v2746_v22 = vpack.c.bf16 %v3098_v33, %v3094_v31  ;;  %v199_v31 = vld [vmem:[%s198_s30] sm:$0xf] }
  0x21   : >> { %826 = vmatprep.mubr.f32.mxu1 %v2997_v6  ;;  %292 = vmatmul.mubr.f32.gmra.mrb[2].mxu0 %v291_v56  ;;  %v320_v13 = vand.u32 4294901760, %v319_v62  ;;  %v848_v15 = vand.u32 4294901760, %v847_v63  ;;  %v859_v16 = vsub.f32 %v3121_v46, %v858_v8  ;;  %v2742_v18 = vpack.c.bf16 %v854_v11, %v842_v59 }
  0x22   : >> { %2719 = vmatprep.subr.bf16.mxu0 %v2718_v7  ;;  %382 = vmatprep.mubr.f32.mxu0 %v2997_v6  ;;  %v2724_v24 = vpack.c.bf16 %v3105_v36, %v3102_v35  ;;  %v2748_v25 = vpack.c.bf16 %v3121_v46, %v3119_v45  ;;  %v2730_v26 = vpack.c.bf16 %v312_v42, %v300_v41 }
  0x23   : >> { %v2720_v19 = vpack.c.bf16 %v320_v13, %v308_v12  ;;  %v860_v20 = vand.u32 4294901760, %v859_v16  ;;  %2743 = vmatprep.subr.bf16.mxu1 %v2742_v18  ;;  %v2754_v30 = vpack.c.bf16 %v852_v52, %v840_v43  ;;  %v2732_v29 = vpack.c.bf16 %v318_v54, %v306_v53 }
  0x24   : >> { %832 = vmatmul.mubr.f32.gmra.mrb[2].mxu1 %v291_v56 }
  0x25   : >> { %2721 = vmatpush1.bf16.msra.mxu0 %v2720_v19  ;;  %v2744_v23 = vpack.c.bf16 %v860_v20, %v848_v15  ;;  %922 = vmatprep.mubr.f32.mxu1 %v2997_v6 }
  0x26   : >> { %2723 = vmatprep.subr.bf16.mxu0 %v2722_v17 }
  0x27   : >> { %2745 = vmatpush1.bf16.msra.mxu1 %v2744_v23 }
  0x28   : >> { %384 = vmatmul.mubr.f32.vlgmr.msra.gmra.mrb[0].mxu0 %v3072_v9  ;;  %2747 = vmatprep.subr.bf16.mxu1 %v2746_v22 }
  0x29   : >> { %389 = vmatprep.mubr.f32.mxu0 %v2997_v6  ;;  %2725 = vmatpush1.bf16.msra.mxu0 %v2724_v24 }
  0x2a   : >> { %924 = vmatmul.mubr.f32.vlgmr.msra.gmra.mrb[0].mxu1 %v3072_v9  ;;  %2727 = vmatprep.subr.bf16.mxu0 %v3088_v28 }
  0x2b   : >> { %929 = vmatprep.mubr.f32.mxu1 %v2997_v6  ;;  %2749 = vmatpush1.bf16.msra.mxu1 %v2748_v25 }
  0x2c   : >> { %391 = vmatmul.mubr.f32.gmra.mrb[2].mxu0 %v3074_v10  ;;  %2751 = vmatprep.subr.bf16.mxu1 %v3096_v32 }
  0x2d   : >> { %469 = vmatprep.mubr.f32.mxu0 %v2997_v6 }
  0x2e   : >> { %931 = vmatmul.mubr.f32.gmra.mrb[2].mxu1 %v3074_v10 }
  0x2f   : >> { %1009 = vmatprep.mubr.f32.mxu1 %v2997_v6 }
  0x30   : >> { %472 = vmatmul.mubr.f32.vlgmr.msra.gmra.mrb[0].mxu0 %v3080_v14 }
  0x31   : >> { %477 = vmatprep.mubr.f32.mxu0 %v2997_v6  ;;  %2729 = vmatpush1.bf16.msra.mxu0 %v3100_v34 }
  0x32   : >> { %2731 = vmatprep.subr.bf16.mxu0 %v2730_v26  ;;  %1012 = vmatmul.mubr.f32.vlgmr.msra.gmra.mrb[0].mxu1 %v3080_v14  ;;  %v2756_v14 = vpack.c.bf16 %v858_v8, %v846_v55 }
  0x33   : >> { %1017 = vmatprep.mubr.f32.mxu1 %v2997_v6  ;;  %2753 = vmatpush1.bf16.msra.mxu1 %v3117_v44 }
  0x34   : >> { %480 = vmatmul.mubr.f32.gmra.mrb[2].mxu0 %v3083_v21  ;;  %2755 = vmatprep.subr.bf16.mxu1 %v2754_v30 }
  0x35   : >> { %554 = vmatprep.mubr.f32.mxu0 %v2997_v6 }
  0x36   : >> { %1020 = vmatmul.mubr.f32.gmra.mrb[2].mxu1 %v3083_v21  ;;  %v1296_v21 = vlaneseq }
  0x37   : >> { %1094 = vmatprep.mubr.f32.mxu1 %v2997_v6 }
  0x38   : >> { %558 = vmatmul.mubr.f32.vlgmr.msra.gmra.mrb[0].mxu0 %v3086_v27  ;;  %v3213_v11 = vand.u32 127, %v1296_v21 }
  0x39   : >> { %563 = vmatprep.mubr.f32.mxu0 %v2997_v6  ;;  %2733 = vmatpush1.bf16.msra.mxu0 %v2732_v29 }
  0x3a   : >> { %2735 = vmatprep.subr.bf16.mxu0 %v3088_v28  ;;  %1098 = vmatmul.mubr.f32.vlgmr.msra.gmra.mrb[0].mxu1 %v3086_v27  ;;  %v1297_v27 = vshrl.u32 %v1296_v21, 7  ;;  %v3216_v12 = vadd.s32 128, %v3213_v11  ;;  %v3219_v13 = vadd.s32 256, %v3213_v11  ;;  %v3222_v15 = vadd.s32 384, %v3213_v11 }
  0x3b   : >> { %1103 = vmatprep.mubr.f32.mxu1 %v2997_v6  ;;  %2757 = vmatpush1.bf16.msra.mxu1 %v2756_v14 }
  0x3c   : >> { %567 = vmatmul.mubr.f32.gmra.mrb[2].mxu0 %v3112_v40  ;;  %2759 = vmatprep.subr.bf16.mxu1 %v3096_v32  ;;  %v1298_v28 = vsub.s32 0, %v1297_v27  ;;  %v1302_v32 = vsub.s32 1, %v1297_v27  ;;  %v1306_v33 = vsub.s32 2, %v1297_v27 }
  0x3d   : >> { %649 = vmatprep.mubr.f32.mxu0 %v2997_v6 }
  0x3e   : >> { %1107 = vmatmul.mubr.f32.gmra.mrb[2].mxu1 %v3112_v40  ;;  %v1303_v37 = vrot.slane %v199_v31, %v1302_v32  ;;  %v1307_v38 = vrot.slane %v199_v31, %v1306_v33 }
  0x3f   : >> { %1189 = vmatprep.mubr.f32.mxu1 %v2997_v6 }
  0x40   : >> { %651 = vmatmul.mubr.f32.vlgmr.msra.gmra.mrb[0].mxu0 %v3072_v9 }
  0x41   : >> { %656 = vmatprep.mubr.f32.mxu0 %v2997_v6  ;;  %2737 = vmatpush1.bf16.msra.mxu0 %v3100_v34  ;;  %v1310_v34 = vsub.s32 3, %v1297_v27 }
  0x42   : >> { %1191 = vmatmul.mubr.f32.vlgmr.msra.gmra.mrb[0].mxu1 %v3072_v9 }
  0x43   : >> { %1196 = vmatprep.mubr.f32.mxu1 %v2997_v6  ;;  %2761 = vmatpush1.bf16.msra.mxu1 %v3117_v44  ;;  %v1311_v40 = vrot.slane %v199_v31, %v1310_v34 }
  0x44   : >> { %658 = vmatmul.mubr.f32.gmra.mrb[2].mxu0 %v3074_v10 }
  0x45   : >> { %732 = vmatprep.mubr.f32.mxu0 %v2997_v6 }
  0x46   : >> { %1198 = vmatmul.mubr.f32.gmra.mrb[2].mxu1 %v3074_v10 }
  0x47   : >> { %1272 = vmatprep.mubr.f32.mxu1 %v2997_v6 }
  0x48   : >> { %734 = vmatmul.mubr.f32.vlgmr.msra.gmra.mrb[0].mxu0 %v3072_v9 }
  0x49   : >> { %739 = vmatprep.mubr.f32.mxu0 %v2997_v6 }
  0x4a   : >> { %1274 = vmatmul.mubr.f32.vlgmr.msra.gmra.mrb[0].mxu1 %v3072_v9  ;;  %v1299_v9 = vrot.slane %v199_v31, %v1298_v28 }
  0x4b   : >> { %1279 = vmatprep.mubr.f32.mxu1 %v2997_v6 }
  0x4c   : >> { %741 = vmatmul.mubr.f32.gmra.mrb[2].mxu0 %v3074_v10 }
  0x4e   : >> { %1281 = vmatmul.mubr.f32.gmra.mrb[2].mxu1 %v3074_v10 }
 0x11b   : >> { %v735_v35 = vpop.f32.mrb[0].mxu0 }
 0x11c   : >> { %v1287_v36 = vmul.f32 2.0, %v735_v35  ;;  %v737_v6 = vpop.f32.mrb[1].mxu0 }
 0x11d   : >> { %v1288_v39 = vmul.f32 2.0, %v737_v6  ;;  %v1275_v10 = vpop.f32.mrb[0].mxu1 }
 0x11e   : >> { %v1316_v41 = vsub.f32 %v1299_v9, %v1287_v36  ;;  %v1289_v42 = vmul.f32 2.0, %v1275_v10  ;;  %v1277_v43 = vpop.f32.mrb[1].mxu1 }
 0x11f   : >> { %v742_v44 = vpop.f32.mrb[2].mxu0  ;;  %v1317_v45 = vsub.f32 %v1303_v37, %v1288_v39  ;;  %v1290_v46 = vmul.f32 2.0, %v1277_v43 }
 0x120   : >> { %v1291_v47 = vmul.f32 2.0, %v742_v44  ;;  %v744_v48 = vpop.f32.mrb[3].mxu0  ;;  %v1318_v49 = vsub.f32 %v1307_v38, %v1289_v42 }
 0x121   : >> { %v1292_v50 = vmul.f32 2.0, %v744_v48  ;;  %v1319_v51 = vsub.f32 %v1311_v40, %v1290_v46  ;;  %v1282_v52 = vpop.f32.mrb[2].mxu1 }
 0x122   : >> { %v1320_v53 = vsub.f32 %v1299_v9, %v1291_v47  ;;  %v1293_v54 = vmul.f32 2.0, %v1282_v52  ;;  %v1284_v55 = vpop.f32.mrb[3].mxu1  ;;  %v1324_v56 = vmin.f32 %v1316_v41, %v1318_v49  ;;  %v1396_v47 = vstv %s2674_s4 }
 0x123   : >> { %v1321_v57 = vsub.f32 %v1303_v37, %v1292_v50  ;;  %v1294_v58 = vmul.f32 2.0, %v1284_v55  ;;  %v1325_v59 = vmin.f32 %v1317_v45, %v1319_v51 }
 0x124   : >> { %v1322_v60 = vsub.f32 %v1307_v38, %v1293_v54 }
 0x125   : >> { %v1323_v61 = vsub.f32 %v1311_v40, %v1294_v58  ;;  %v1326_v62 = vmin.f32 %v1324_v56, %v1325_v59 }
 0x126   : >> { %v1329_v63 = vmin.f32 %v1320_v53, %v1322_v60 }
 0x127   : >> { %1327 = vmin.xlane.f32.xlu0 %v1326_v62  ;;  %v1330_v7 = vmin.f32 %v1321_v57, %v1323_v61 }
 0x129   : >> { %v1331_v8 = vmin.f32 %v1329_v63, %v1330_v7 }
 0x12b   : >> { %1332 = vmin.xlane.f32.xlu0 %v1331_v8 }
 0x1b4   : >> { %v3224_v16 = vpop.xlane.xlu0 %1327 }
 0x1b5   : >> { %vm1339_vm1 = vcmp.eq.f32.partialorder %v1316_v41, %v3224_v16  ;;  %vm1340_vm2 = vcmp.eq.f32.partialorder %v1317_v45, %v3224_v16  ;;  %vm1341_vm3 = vcmp.eq.f32.partialorder %v1318_v49, %v3224_v16  ;;  %vm1342_vm4 = vcmp.eq.f32.partialorder %v1319_v51, %v3224_v16 }
 0x1b6   : >> { %v1347_v17 = vsel %vm1339_vm1, %v3213_v11, 512  ;;  %v1348_v18 = vsel %vm1340_vm2, %v3216_v12, 512  ;;  %v1349_v19 = vsel %vm1341_vm3, %v3219_v13, 512  ;;  %v1350_v20 = vsel %vm1342_vm4, %v3222_v15, 512 }
 0x1b7   : >> { %vm1355_vm5 = vcmp.lt.s32.totalorder %v1347_v17, %v1349_v19  ;;  %vm1357_vm6 = vcmp.lt.s32.totalorder %v1348_v18, %v1350_v20  ;;  %vm1399_vm7 = vcmp.lt.f32.partialorder %v3224_v16, %v2979_v5 }
 0x1b8   : >> { %v1333_v22 = vpop.xlane.xlu0 %1332  ;;  %v1356_v23 = vsel %vm1355_vm5, %v1347_v17, %v1349_v19  ;;  %v1358_v24 = vsel %vm1357_vm6, %v1348_v18, %v1350_v20  ;;  %v1401_v25 = vsel %vm1399_vm7, %v3224_v16, %v2979_v5  }
 0x1b9   : >> { %vm1359_vm8 = vcmp.lt.s32.totalorder %v1356_v23, %v1358_v24  ;;  %vm1343_vm9 = vcmp.eq.f32.partialorder %v1320_v53, %v1333_v22  ;;  %vm1344_vm10 = vcmp.eq.f32.partialorder %v1321_v57, %v1333_v22  ;;  %vm1345_vm11 = vcmp.eq.f32.partialorder %v1322_v60, %v1333_v22 }
 0x1ba   : >> { %v1360_v26 = vsel %vm1359_vm8, %v1356_v23, %v1358_v24  ;;  %vm1346_vm12 = vcmp.eq.f32.partialorder %v1323_v61, %v1333_v22  ;;  %v1351_v30 = vsel %vm1343_vm9, %v3213_v11, 512  ;;  %v1352_v29 = vsel %vm1344_vm10, %v3216_v12, 512 }
 0x1bb   : >> { %v1362_v14 = vshra.s32 %v1360_v26, 16  ;;  %v1353_v21 = vsel %vm1345_vm11, %v3219_v13, 512  ;;  %v1354_v27 = vsel %vm1346_vm12, %v3222_v15, 512  ;;  %vm1400_vm15 = vcmp.lt.f32.partialorder %v1333_v22, %v2975_v4 }
 0x1bc   : >> { %vm1375_vm13 = vcmp.lt.s32.totalorder %v1351_v30, %v1353_v21  ;;  %vm1377_vm14 = vcmp.lt.s32.totalorder %v1352_v29, %v1354_v27  ;;  %v1402_v33 = vsel %vm1400_vm15, %v1333_v22, %v2975_v4   ;;  %v1361_v36 = vand.u32 65535, %v1360_v26 }
 0x1bd   : >> { %v1364_v28 = vcvt.s32.f32 %v1362_v14  ;;  %v1376_v31 = vsel %vm1375_vm13, %v1351_v30, %v1353_v21  ;;  %v1378_v32 = vsel %vm1377_vm14, %v1352_v29, %v1354_v27  ;;  %v3618_v4 = vmov %v1402_v33 }
 0x1be   : >> { %vm1379_vm1 = vcmp.lt.s32.totalorder %v1376_v31, %v1378_v32  ;;  %v1363_v37 = vcvt.s32.f32 %v1361_v36  ;;  %v3619_v5 = vmov %v1401_v25  ;;  %v3276_v57 = vmov (%p178_p4), 0.0  }
 0x1bf   : >> { %1365 = vmin.xlane.f32.xlu1 %v1364_v28  ;;  %v1380_v34 = vsel %vm1379_vm1, %v1376_v31, %v1378_v32  ;;  %v3274_v5 = vmov (%p178_p4), 0.0  }
 0x1c0   : >> { %v1382_v35 = vshra.s32 %v1380_v34, 16  ;;  %v1381_v38 = vand.u32 65535, %v1380_v34 }
 0x1c2   : >> { %v1384_v9 = vcvt.s32.f32 %v1382_v35  ;;  %v1383_v40 = vcvt.s32.f32 %v1381_v38 }
 0x1c4   : >> { %1385 = vmin.xlane.f32.xlu1 %v1384_v9 }
 0x24c   : >> { %v1366_v6 = vpop.xlane.xlu1 %1365 }
 0x24d   : >> { %vm1367_vm2 = vcmp.eq.f32.partialorder %v1364_v28, %v1366_v6  ;;  %v1372_v42 = vcvt.f32.s32 %v1366_v6 }
 0x24e   : >> { %v1368_v39 = vsel %vm1367_vm2, %v1363_v37, inf }
 0x24f   : >> { %1369 = vmin.xlane.f32.xlu0 %v1368_v39  ;;  %v1373_v44 = vshll.u32 %v1372_v42, 16 }
 0x251   : >> { %v1386_v10 = vpop.xlane.xlu1 %1385 }
 0x252   : >> { %vm1387_vm3 = vcmp.eq.f32.partialorder %v1384_v9, %v1386_v10  ;;  %v1392_v46 = vcvt.f32.s32 %v1386_v10 }
 0x253   : >> { %v1388_v41 = vsel %vm1387_vm3, %v1383_v40, inf }
 0x254   : >> { %1389 = vmin.xlane.f32.xlu1 %v1388_v41  ;;  %v1393_v51 = vshll.u32 %v1392_v46, 16 }
 0x2dc   : >> { %v1370_v43 = vpop.xlane.xlu0 %1369 }
 0x2dd   : >> { %v1371_v45 = vcvt.f32.s32 %v1370_v43 }
 0x2df   : >> { %v1374_v48 = vadd.s32 %v1373_v44, %v1371_v45 }
 0x2e1   : >> { %v1397_v49 = vadd.s32 %v1396_v47, %v1374_v48  ;;  %v1390_v50 = vpop.xlane.xlu1 %1389 }
 0x2e2   : >> { %v1391_v52 = vcvt.f32.s32 %v1390_v50 }
 0x2e3   : >> { %v3254_v3 = vsel %vm1399_vm7, %v1397_v49, %v2971_v3  }
 0x2e4   : >> { %v3614_v53 = vmov %v3254_v3  ;;  %v1394_v54 = vadd.s32 %v1393_v51, %v1391_v52  ;;  %180 = sbr.rel (!%p178_p4) target bundleno = 17 (0x11), region = 79 }
 0x2e5   : >> { %v3617_v3 = vmov %v3614_v53 }
 0x2e6   : >> { %v1398_v55 = vadd.s32 %v1396_v47, %v1394_v54 }
 0x2e8   : >> { %v3259_v2 = vsel %vm1400_vm15, %v1398_v55, %v2967_v2  }
 0x2e9   : >> { %v3615_v56 = vmov %v3259_v2 }
 0x2ea   : >> { %v3616_v2 = vmov %v3615_v56 }
 0x2eb LB: >> { %s2713_s6 = sshll.u32 %s2995_s5, 6  ;;  %s2677_s7 = sshll.u32 %s2995_s5, 9  ;;  %v2998_v18 = vmov 1.0   ;;  %v2999_v22 = vmov 0.0   ;;  %s2995_s5 = sphi %s3278_s5, %s1410_s5   ;;  %v2991_v57 = vphi %v3276_v57, %v3621_v57   ;;  %v2987_v5 = vphi %v3274_v5, %v3620_v5  }
 0x2ec   : >> { %s3294_s10 = scalar_lea.vmem %s3611_s1, %s2713_s6  ;;  %v3296_v0 = vstv %s2677_s7  ;;  %s1410_s5 = sadd.s32 1, %s2995_s5  }
 0x2ed   : >> { %v1417_v1 = vld [vmem:[%s3294_s10 + $0x8] sm:$0xff]  ;;  %v1416_v3 = vld [vmem:[%s3294_s10] sm:$0xff]  ;;  %v3303_v4 = vadd.s32 %v3296_v0, %v3216_v12  ;;  %v3307_v58 = vadd.s32 %v3296_v0, %v3213_v11  ;;  %v3346_v28 = vadd.s32 %v3296_v0, %v3222_v15  ;;  %v1419_v43 = vld [vmem:[%s3294_s10 + $0x18] sm:$0xff]  ;;  %p1407_p5 = scmp.ge.s32.totalorder %s1410_s5, 32  }
 0x2ee   : >> { %v1421_v2 = vld [vmem:[%s3294_s10 + $0x28] sm:$0xff]  ;;  %v1459_v59 = vand.u32 4294901760, %v1417_v1  ;;  %v1420_v61 = vld [vmem:[%s3294_s10 + $0x20] sm:$0xff]  ;;  %v1461_v62 = vand.u32 4294901760, %v1416_v3  ;;  %v1423_v44 = vld [vmem:[%s3294_s10 + $0x38] sm:$0xff] }
 0x2ef   : >> { %v1463_v60 = vand.u32 4294901760, %v1421_v2  ;;  %v1465_v63 = vand.u32 4294901760, %v1420_v61  ;;  %vm1436_vm4 = vcmp.eq.s32.totalorder %v3303_v4, %v3614_v53  ;;  %vm1435_vm5 = vcmp.eq.s32.totalorder %v3307_v58, %v3614_v53  ;;  %v3379_v49 = vld [vmem:[%s3294_s10 + $0x10] sm:$0xff] }
 0x2f0   : >> { %vm1440_vm6 = vcmp.eq.s32.totalorder %v3303_v4, %v3615_v56  ;;  %v3318_v8 = vsub.f32 %v1416_v3, %v1461_v62  ;;  %v1559_v16 = vsub.f32 %v1417_v1, %v1459_v59  ;;  %2686 = vmatprep.mubr.msk.f32.mxu1 %vm1436_vm4, %v2998_v18  ;;  %v2679_v23 = vsel %vm1436_vm4, 1.0, %v2999_v22  ;;  %v3382_v50 = vld [vmem:[%s3294_s10 + $0x30] sm:$0xff] }
 0x2f1   : >> { %v3316_v7 = vpack.c.bf16 %v1463_v60, %v1459_v59  ;;  %v1571_v17 = vsub.f32 %v1421_v2, %v1463_v60  ;;  %v3324_v19 = vpack.c.bf16 %v1465_v63, %v1461_v62  ;;  %v3326_v20 = vsub.f32 %v1420_v61, %v1465_v63 }
 0x2f2   : >> { %v2678_v24 = vsel %vm1435_vm5, 1.0, %v2999_v22  ;;  %v1560_v25 = vand.u32 4294901760, %v1559_v16  ;;  %v3337_v30 = vsub.f32 %v2679_v23, %v2679_v23  ;;  %v1566_v29 = vand.u32 4294901760, %v3318_v8 }
 0x2f3   : >> { %2763 = vmatprep.subr.bf16.mxu0 %v3316_v7  ;;  %v1572_v26 = vand.u32 4294901760, %v1571_v17  ;;  %v1578_v14 = vand.u32 4294901760, %v3326_v20  ;;  %v3342_v21 = vsub.f32 %v2678_v24, %v2678_v24  ;;  %v2770_v27 = vpack.c.bf16 %v1571_v17, %v1559_v16 }
 0x2f4   : >> { %2765 = vmatpush1.bf16.xpose.msra.mxu0 %v3324_v19  ;;  %v1561_v31 = vsub.f32 %v1559_v16, %v1560_v25  ;;  %v1529_v33 = vand.u32 4294901760, %v3337_v30  ;;  %v1567_v34 = vsub.f32 %v3318_v8, %v1566_v29  ;;  %v2683_v36 = vsel %vm1440_vm6, 1.0, %v2999_v22 }
 0x2f5   : >> { %v1573_v32 = vsub.f32 %v1571_v17, %v1572_v26  ;;  %v1579_v35 = vsub.f32 %v3326_v20, %v1578_v14  ;;  %v1535_v9 = vand.u32 4294901760, %v3342_v21  ;;  %2771 = vmatprep.subr.bf16.mxu0 %v2770_v27  ;;  %vm1439_vm7 = vcmp.eq.s32.totalorder %v3307_v58, %v3615_v56 }
 0x2f6   : >> { %v1562_v6 = vand.u32 4294901760, %v1561_v31  ;;  %v1530_v38 = vsub.f32 %v3337_v30, %v1529_v33  ;;  %v1568_v39 = vand.u32 4294901760, %v1567_v34  ;;  %v3366_v41 = vsub.f32 %v2683_v36, %v2683_v36 }
 0x2f7   : >> { %v1574_v37 = vand.u32 4294901760, %v1573_v32  ;;  %v1580_v10 = vand.u32 4294901760, %v1579_v35  ;;  %v1536_v40 = vsub.f32 %v3342_v21, %v1535_v9  ;;  %v2682_v42 = vsel %vm1439_vm7, 1.0, %v2999_v22 }
 0x2f8   : >> { %v1531_v46 = vand.u32 4294901760, %v1530_v38  ;;  %v2772_v47 = vpack.c.bf16 %v3326_v20, %v3318_v8  ;;  %v3376_v48 = vsub.f32 %v2682_v42, %v2682_v42  ;;  %v1544_v54 = vand.u32 4294901760, %v3366_v41 }
 0x2f9   : >> { %v2766_v45 = vpack.c.bf16 %v1574_v37, %v1562_v6  ;;  %v2768_v51 = vpack.c.bf16 %v1580_v10, %v1568_v39  ;;  %v1537_v52 = vand.u32 4294901760, %v1536_v40  ;;  %v2778_v55 = vpack.c.bf16 %v1572_v26, %v1560_v25 }
 0x2fa   : >> { %v3387_v1 = vadd.s32 %v3296_v0, %v3219_v13  ;;  %1532 = vmatprep.mubr.f32.mxu0 %v1531_v46  ;;  %v1550_v2 = vand.u32 4294901760, %v3376_v48  ;;  %v2013_v3 = vand.u32 4294901760, %v1419_v43  ;;  %v2017_v59 = vand.u32 4294901760, %v1423_v44 }
 0x2fb   : >> { %2767 = vmatprep.subr.bf16.mxu1 %v2766_v45  ;;  %1538 = vmatmul.mubr.f32.vlgmr.msra.gmra.mrb[0].mxu0 %v1537_v52  ;;  %v1545_v60 = vsub.f32 %v3366_v41, %v1544_v54  ;;  %v2015_v61 = vand.u32 4294901760, %v3379_v49  ;;  %v2019_v62 = vand.u32 4294901760, %v3382_v50  ;;  %vm1438_vm8 = vcmp.eq.s32.totalorder %v3346_v28, %v3614_v53 }
 0x2fc   : >> { %2769 = vmatpush1.bf16.xpose.msra.mxu1 %v2768_v51  ;;  %2773 = vmatpush1.bf16.xpose.msra.mxu0 %v2772_v47  ;;  %v1551_v0 = vsub.f32 %v3376_v48, %v1550_v2  ;;  %v3401_v63 = vsub.f32 %v1419_v43, %v2013_v3  ;;  %v3403_v17 = vsub.f32 %v1423_v44, %v2017_v59  ;;  %v2681_v24 = vsel %vm1438_vm8, 1.0, %v2999_v22 }
 0x2fd   : >> { %2775 = vmatprep.subr.bf16.mxu1 %v3316_v7  ;;  %v1546_v16 = vand.u32 4294901760, %v1545_v60  ;;  %2779 = vmatprep.subr.bf16.mxu0 %v2778_v55  ;;  %vm1437_vm9 = vcmp.eq.s32.totalorder %v3387_v1, %v3614_v53  ;;  %v3413_v25 = vsub.f32 %v3379_v49, %v2015_v61  ;;  %v3416_v26 = vsub.f32 %v3382_v50, %v2019_v62 }
 0x2fe   : >> { %v1552_v20 = vand.u32 4294901760, %v1551_v0  ;;  %v2114_v23 = vand.u32 4294901760, %v3401_v63  ;;  %v2126_v27 = vand.u32 4294901760, %v3403_v17  ;;  %v2780_v31 = vpack.c.bf16 %v1578_v14, %v1566_v29 }
 0x2ff   : >> { %1547 = vmatprep.mubr.f32.mxu0 %v1546_v16  ;;  %v3428_v35 = vsub.f32 %v2681_v24, %v2681_v24  ;;  %v2680_v36 = vsel %vm1437_vm9, 1.0, %v2999_v22  ;;  %vm1442_vm10 = vcmp.eq.s32.totalorder %v3346_v28, %v3615_v56  ;;  %v3440_v8 = vpack.c.bf16 %v2017_v59, %v2013_v3 }
 0x300   : >> { %1553 = vmatmul.mubr.f32.gmra.mrb[2].mxu0 %v1552_v20  ;;  %v2115_v32 = vsub.f32 %v3401_v63, %v2114_v23  ;;  %v2127_v34 = vsub.f32 %v3403_v17, %v2126_v27  ;;  %v2120_v29 = vand.u32 4294901760, %v3413_v25  ;;  %v2132_v14 = vand.u32 4294901760, %v3416_v26 }
 0x301   : >> { %1731 = vmatprep.mubr.f32.mxu0 %v3337_v30  ;;  %v2685_v6 = vsel %vm1442_vm10, 1.0, %v2999_v22  ;;  %vm1441_vm11 = vcmp.eq.s32.totalorder %v3387_v1, %v3615_v56  ;;  %v3457_v39 = vsub.f32 %v2680_v36, %v2680_v36  ;;  %v2083_v10 = vand.u32 4294901760, %v3428_v35 }
 0x302   : >> { %v2116_v37 = vand.u32 4294901760, %v2115_v32  ;;  %v2128_v38 = vand.u32 4294901760, %v2127_v34  ;;  %v3461_v40 = vsub.f32 %v2685_v6, %v2685_v6  ;;  %v2684_v42 = vsel %vm1441_vm11, 1.0, %v2999_v22 }
 0x303   : >> { %2687 = vmatmul.mubr.msk.f32.vlgmr.msra.gmra.mrb[0].mxu1 %vm1435_vm5, %v2998_v18  ;;  %v2133_v43 = vsub.f32 %v3416_v26, %v2132_v14  ;;  %v2089_v44 = vand.u32 4294901760, %v3457_v39  ;;  %v2103_v45 = vsub.f32 %v2684_v42, %v2684_v42  ;;  %v2788_v30 = vpack.c.bf16 %v2019_v62, %v2015_v61 }
 0x304   : >> { %2777 = vmatpush1.bf16.xpose.msra.mxu1 %v3324_v19  ;;  %2688 = vmatprep.mubr.msk.f32.mxu1 %vm1440_vm6, %v2998_v18  ;;  %v2790_v22 = vpack.c.bf16 %v2128_v38, %v2116_v37  ;;  %v2098_v46 = vand.u32 4294901760, %v3461_v40  ;;  %v2794_v47 = vpack.c.bf16 %v3403_v17, %v3401_v63  ;;  %v2796_v55 = vpack.c.bf16 %v3416_v26, %v3413_v25 }
 0x305   : >> { %1734 = vmatmul.mubr.f32.vlgmr.msra.gmra.mrb[4].mxu0 %v3342_v21  ;;  %2783 = vmatprep.subr.bf16.mxu1 %v3316_v7  ;;  %v2121_v7 = vsub.f32 %v3413_v25, %v2120_v29  ;;  %v2134_v50 = vand.u32 4294901760, %v2133_v43  ;;  %v2090_v51 = vsub.f32 %v3457_v39, %v2089_v44  ;;  %v2104_v21 = vand.u32 4294901760, %v2103_v45 }
 0x306   : >> { %2781 = vmatpush1.bf16.xpose.msra.mxu0 %v2780_v31  ;;  %1740 = vmatprep.mubr.f32.mxu0 %v3366_v41  ;;  %v2804_v4 = vpack.c.bf16 %v2132_v14, %v2120_v29 }
 0x307   : >> { %2689 = vmatmul.mubr.msk.f32.gmra.mrb[2].mxu1 %vm1439_vm7, %v2998_v18  ;;  %2787 = vmatprep.subr.bf16.mxu0 %v3440_v8  ;;  %v2122_v49 = vand.u32 4294901760, %v2121_v7  ;;  %v2091_v52 = vand.u32 4294901760, %v2090_v51 }
 0x308   : >> { %1819 = vmatprep.mubr.f32.mxu1 %v1529_v33  ;;  %v2084_v33 = vsub.f32 %v3428_v35, %v2083_v10 }
 0x309   : >> { %1743 = vmatmul.mubr.f32.gmra.mrb[6].mxu0 %v3376_v48  ;;  %v2792_v41 = vpack.c.bf16 %v2134_v50, %v2122_v49 }
 0x30a   : >> { %2690 = vmatprep.mubr.msk.f32.mxu0 %vm1436_vm4, %v2998_v18 }
 0x30b   : >> { %1823 = vmatmul.mubr.f32.vlgmr.msra.gmra.mrb[4].mxu1 %v1535_v9  ;;  %v2099_v9 = vsub.f32 %v3461_v40, %v2098_v46 }
 0x30c   : >> { %2785 = vmatpush1.bf16.xpose.msra.mxu1 %v3324_v19  ;;  %1830 = vmatprep.mubr.f32.mxu1 %v1544_v54  ;;  %v2085_v19 = vand.u32 4294901760, %v2084_v33  ;;  %v2105_v54 = vsub.f32 %v2103_v45, %v2104_v21 }
 0x30d   : >> { %2691 = vmatmul.mubr.msk.f32.vlgmr.msra.gmra.mrb[8].mxu0 %vm1435_vm5, %v2998_v18  ;;  %2791 = vmatprep.subr.bf16.mxu1 %v2790_v22  ;;  %v2100_v48 = vand.u32 4294901760, %v2099_v9 }
 0x30e   : >> { %2789 = vmatpush1.bf16.xpose.msra.mxu0 %v2788_v30  ;;  %2692 = vmatprep.mubr.msk.f32.mxu0 %vm1440_vm6, %v2998_v18  ;;  %v2106_v3 = vand.u32 4294901760, %v2105_v54 }
 0x30f   : >> { %1834 = vmatmul.mubr.f32.gmra.mrb[6].mxu1 %v1550_v2  ;;  %2795 = vmatprep.subr.bf16.mxu0 %v2794_v47  ;;  %v2802_v2 = vpack.c.bf16 %v2126_v27, %v2114_v23 }
 0x310   : >> { %2694 = vmatprep.mubr.msk.f32.mxu1 %vm1436_vm4, %v2998_v18 }
 0x311   : >> { %2693 = vmatmul.mubr.msk.f32.gmra.mrb[10].mxu0 %vm1439_vm7, %v2998_v18 }
 0x312   : >> { %2086 = vmatprep.mubr.f32.mxu0 %v2085_v19 }
 0x313   : >> { %2695 = vmatmul.mubr.msk.f32.vlgmr.msra.gmra.mrb[8].mxu1 %vm1435_vm5, %v2998_v18 }
 0x314   : >> { %2793 = vmatpush1.bf16.xpose.msra.mxu1 %v2792_v41  ;;  %2696 = vmatprep.mubr.msk.f32.mxu1 %vm1440_vm6, %v2998_v18 }
 0x315   : >> { %2092 = vmatmul.mubr.f32.vlgmr.msra.gmra.mrb[12].mxu0 %v2091_v52  ;;  %2799 = vmatprep.subr.bf16.mxu1 %v3440_v8 }
 0x316   : >> { %2797 = vmatpush1.bf16.xpose.msra.mxu0 %v2796_v55  ;;  %2101 = vmatprep.mubr.f32.mxu0 %v2100_v48 }
 0x317   : >> { %2697 = vmatmul.mubr.msk.f32.gmra.mrb[10].mxu1 %vm1439_vm7, %v2998_v18  ;;  %2803 = vmatprep.subr.bf16.mxu0 %v2802_v2 }
 0x318   : >> { %2698 = vmatprep.mubr.msk.f32.mxu1 %vm1438_vm8, %v2998_v18 }
 0x319   : >> { %2107 = vmatmul.mubr.f32.gmra.mrb[14].mxu0 %v2106_v3 }
 0x31a   : >> { %2285 = vmatprep.mubr.f32.mxu0 %v3428_v35 }
 0x31b   : >> { %2699 = vmatmul.mubr.msk.f32.vlgmr.msra.gmra.mrb[12].mxu1 %vm1437_vm9, %v2998_v18 }
 0x31c   : >> { %2801 = vmatpush1.bf16.xpose.msra.mxu1 %v2788_v30  ;;  %2700 = vmatprep.mubr.msk.f32.mxu1 %vm1442_vm10, %v2998_v18 }
 0x31d   : >> { %2288 = vmatmul.mubr.f32.vlgmr.msra.gmra.mrb[16].mxu0 %v3457_v39  ;;  %2807 = vmatprep.subr.bf16.mxu1 %v3440_v8 }
 0x31e   : >> { %2805 = vmatpush1.bf16.xpose.msra.mxu0 %v2804_v4  ;;  %2294 = vmatprep.mubr.f32.mxu0 %v3461_v40 }
 0x31f   : >> { %2701 = vmatmul.mubr.msk.f32.gmra.mrb[14].mxu1 %vm1441_vm11, %v2998_v18 }
 0x320   : >> { %2373 = vmatprep.mubr.f32.mxu1 %v2083_v10 }
 0x321   : >> { %2297 = vmatmul.mubr.f32.gmra.mrb[18].mxu0 %v2103_v45 }
 0x322   : >> { %2702 = vmatprep.mubr.msk.f32.mxu0 %vm1438_vm8, %v2998_v18 }
 0x323   : >> { %2377 = vmatmul.mubr.f32.vlgmr.msra.gmra.mrb[16].mxu1 %v2089_v44 }
 0x324   : >> { %2809 = vmatpush1.bf16.xpose.msra.mxu1 %v2788_v30  ;;  %2384 = vmatprep.mubr.f32.mxu1 %v2098_v46 }
 0x325   : >> { %2703 = vmatmul.mubr.msk.f32.vlgmr.msra.gmra.mrb[20].mxu0 %vm1437_vm9, %v2998_v18 }
 0x326   : >> { %2704 = vmatprep.mubr.msk.f32.mxu0 %vm1442_vm10, %v2998_v18 }
 0x327   : >> { %2388 = vmatmul.mubr.f32.gmra.mrb[18].mxu1 %v2104_v21 }
 0x328   : >> { %2706 = vmatprep.mubr.msk.f32.mxu1 %vm1438_vm8, %v2998_v18 }
 0x329   : >> { %2705 = vmatmul.mubr.msk.f32.gmra.mrb[22].mxu0 %vm1441_vm11, %v2998_v18 }
 0x32b   : >> { %2707 = vmatmul.mubr.msk.f32.vlgmr.msra.gmra.mrb[20].mxu1 %vm1437_vm9, %v2998_v18 }
 0x32c   : >> { %2708 = vmatprep.mubr.msk.f32.mxu1 %vm1442_vm10, %v2998_v18 }
 0x32f   : >> { %2709 = vmatmul.mubr.msk.f32.gmra.mrb[22].mxu1 %vm1441_vm11, %v2998_v18 }
 0x3ce   : >> { %v1539_v58 = vpop.f32.mrb[0].mxu0 }
 0x3cf   : >> { %v1541_v59 = vpop.f32.mrb[1].mxu0 }
 0x3d3   : >> { %v1554_v60 = vpop.f32.mrb[2].mxu0 }
 0x3d4   : >> { %v1556_v61 = vpop.f32.mrb[3].mxu0 }
 0x3d6   : >> { %v1646_v62 = vpop.f32.mrb[0].mxu1 }
 0x3d7   : >> { %v1647_v0 = vadd.f32 %v1646_v62, %v1539_v58  ;;  %v1648_v63 = vpop.f32.mrb[1].mxu1 }
 0x3d8   : >> { %v1735_v16 = vpop.f32.mrb[4].mxu0 }
 0x3d9   : >> { %v1736_v17 = vadd.f32 %v1735_v16, %v1647_v0  ;;  %v1737_v20 = vpop.f32.mrb[5].mxu0 }
 0x3da   : >> { %v1653_v23 = vpop.f32.mrb[2].mxu1 }
 0x3db   : >> { %v1654_v24 = vadd.f32 %v1653_v23, %v1554_v60  ;;  %v1655_v25 = vpop.f32.mrb[3].mxu1 }
 0x3dc   : >> { %v1744_v28 = vpop.f32.mrb[6].mxu0 }
 0x3dd   : >> { %v1745_v26 = vadd.f32 %v1744_v28, %v1654_v24  ;;  %v1746_v27 = vpop.f32.mrb[7].mxu0 }
 0x3de   : >> { %v1824_v31 = vpop.f32.mrb[4].mxu1 }
 0x3df   : >> { %v1825_v32 = vadd.f32 %v1824_v31, %v1736_v17  ;;  %v1826_v1 = vpop.f32.mrb[5].mxu1 }
 0x3e0   : >> { %v1919_v18 = vpop.f32.mrb[8].mxu0 }
 0x3e1   : >> { %v1920_v34 = vadd.f32 %v1919_v18, %v1825_v32  ;;  %v1921_v35 = vpop.f32.mrb[9].mxu0 }
 0x3e2   : >> { %v1835_v36 = vpop.f32.mrb[6].mxu1 }
 0x3e3   : >> { %v1836_v8 = vadd.f32 %v1835_v36, %v1745_v26  ;;  %v1837_v29 = vpop.f32.mrb[7].mxu1 }
 0x3e4   : >> { %v1926_v14 = vpop.f32.mrb[10].mxu0 }
 0x3e5   : >> { %v1927_v6 = vadd.f32 %v1926_v14, %v1836_v8  ;;  %v1928_v37 = vpop.f32.mrb[11].mxu0 }
 0x3e6   : >> { %v2002_v38 = vpop.f32.mrb[8].mxu1 }
 0x3e7   : >> { %v2003_v39 = vadd.f32 %v2002_v38, %v1920_v34  ;;  %v2004_v10 = vpop.f32.mrb[9].mxu1 }
 0x3e8   : >> { %v2093_v40 = vpop.f32.mrb[12].mxu0 }
 0x3e9   : >> { %v2094_v42 = vadd.f32 %v2093_v40, %v2003_v39  ;;  %v2095_v7 = vpop.f32.mrb[13].mxu0 }
 0x3ea   : >> { %v2009_v43 = vpop.f32.mrb[10].mxu1 }
 0x3eb   : >> { %v2010_v22 = vadd.f32 %v2009_v43, %v1927_v6  ;;  %v2011_v44 = vpop.f32.mrb[11].mxu1 }
 0x3ec   : >> { %v2108_v45 = vpop.f32.mrb[14].mxu0 }
 0x3ed   : >> { %v2109_v30 = vadd.f32 %v2108_v45, %v2010_v22  ;;  %v2110_v33 = vpop.f32.mrb[15].mxu0 }
 0x3ee   : >> { %v2200_v46 = vpop.f32.mrb[12].mxu1 }
 0x3ef   : >> { %v2201_v47 = vadd.f32 %v2200_v46, %v2094_v42  ;;  %v2202_v49 = vpop.f32.mrb[13].mxu1 }
 0x3f0   : >> { %v2289_v50 = vpop.f32.mrb[16].mxu0 }
 0x3f1   : >> { %v2290_v51 = vadd.f32 %v2289_v50, %v2201_v47  ;;  %v2291_v21 = vpop.f32.mrb[17].mxu0 }
 0x3f2   : >> { %v2207_v19 = vpop.f32.mrb[14].mxu1 }
 0x3f3   : >> { %v2208_v9 = vadd.f32 %v2207_v19, %v2109_v30  ;;  %v2209_v41 = vpop.f32.mrb[15].mxu1 }
 0x3f4   : >> { %v2298_v52 = vpop.f32.mrb[18].mxu0 }
 0x3f5   : >> { %v2299_v54 = vadd.f32 %v2298_v52, %v2208_v9  ;;  %v2300_v55 = vpop.f32.mrb[19].mxu0 }
 0x3f6   : >> { %v2378_v48 = vpop.f32.mrb[16].mxu1 }
 0x3f7   : >> { %v2379_v2 = vadd.f32 %v2378_v48, %v2290_v51  ;;  %v2380_v3 = vpop.f32.mrb[17].mxu1 }
 0x3f8   : >> { %v2473_v4 = vpop.f32.mrb[20].mxu0 }
 0x3f9   : >> { %v2474_v58 = vadd.f32 %v2473_v4, %v2379_v2  ;;  %v2475_v59 = vpop.f32.mrb[21].mxu0 }
 0x3fa   : >> { %v2389_v60 = vpop.f32.mrb[18].mxu1 }
 0x3fb   : >> { %v2390_v61 = vadd.f32 %v2389_v60, %v2299_v54  ;;  %v2391_v62 = vpop.f32.mrb[19].mxu1 }
 0x3fc   : >> { %v2480_v0 = vpop.f32.mrb[22].mxu0 }
 0x3fd   : >> { %v2481_v63 = vadd.f32 %v2480_v0, %v2390_v61  ;;  %v2482_v16 = vpop.f32.mrb[23].mxu0 }
 0x3fe   : >> { %v2556_v17 = vpop.f32.mrb[20].mxu1 }
 0x3ff   : >> { %v2557_v20 = vadd.f32 %v2556_v17, %v2474_v58  ;;  %v2558_v23 = vpop.f32.mrb[21].mxu1 }
 0x401   : >> { %v2567_v24 = vadd.f32 %v2991_v57, %v2557_v20   ;;  %1409 = sbr.rel (!%p1407_p5) target bundleno = 747 (0x2eb), region = 90 }
 0x402   : >> { %v2563_v25 = vpop.f32.mrb[22].mxu1 }
 0x403   : >> { %v2564_v28 = vadd.f32 %v2563_v25, %v2481_v63  ;;  %v2565_v26 = vpop.f32.mrb[23].mxu1  ;;  %v3621_v57 = vmov %v2567_v24  ;;  %2570 = vst.msk [vmem:[%s3034_s21] sm:$0xff] (%p1407_p5), %vm200_vm0, %v2567_v24 }
 0x405   : >> { %v2568_v27 = vadd.f32 %v2987_v5, %v2564_v28  }
 0x407   : >> { %v3620_v5 = vmov %v2568_v27  ;;  %2571 = vst.msk [vmem:[%s3034_s21 + $0x8] sm:$0xff] (%p1407_p5), %vm200_vm0, %v2568_v27 }
 0x408 PF: > { %s13_s12 = sadd.s32 1, %s2963_s12  }
 0x409   : > { %p10_p6 = scmp.ge.s32.totalorder %s13_s12, 4  }
 0x40b   :  { %12 = sbr.rel (!%p10_p6) target bundleno = 1 (0x1), region = 101 }

// kernel: som_autoencoder_forward.12
= control target key start
LH: loop header
LB: loop body
LE: loop exit
PB: predicated region body
PF: predicated region fallthrough
CT: control target
= control target key end

     0   :  { %v253_v0 = vmov 0   ;;  %vm133_vm0 = vcmask 130048   ;;  %vm193_vm1 = vcmask 261120   ;;  %s337_s1 = inlined_call_operand.vmem [shape: bf16[1,144,32], index: 1, kind: input, shape index: {}]   ;;  %s338_s0 = inlined_call_operand.vmem [shape: bf16[1,32,144], index: 0, kind: input, shape index: {}]   ;;  %s339_s2 = inlined_call_operand.vmem [shape: f32[32,1], index: 2, kind: input, shape index: {}]   ;;  %s340_s3 = inlined_call_operand.vmem [shape: f32[1,32,32], index: 3, kind: output, shape index: {}]  }
   0x1   :  { %140 = vmatprep.subr.bf16.mxu0 %v253_v0  ;;  %217 = vmatprep.subr.bf16.mxu1 %v253_v0  ;;  %v238_v1 = vld [vmem:[%s337_s1] sm:$0xff]   ;;  %v239_v2 = vld [vmem:[%s337_s1 + $0x8] sm:$0xff]   ;;  %v240_v3 = vld [vmem:[%s337_s1 + $0x10] sm:$0xff]  }
   0x2   :  { %237 = vset.pattern.permute.xlu1 %v253_v0  ;;  %236 = vset.pattern.permute.xlu0 %v253_v0  ;;  %v241_v4 = vld [vmem:[%s337_s1 + $0x18] sm:$0xff]   ;;  %v249_v5 = vld [vmem:[%s338_s0 + $0x4] ss:$8 sps:$4 sm:$0xff]   ;;  %v39_v7 = vld [vmem:[%s339_s2 + $0x10] sm:$0xff] }
   0x3   :  { %141 = vmatpush1.bf16.msra.mxu0 %v238_v1  ;;  %226 = vmatpush1.bf16.msra.mxu1 %v238_v1  ;;  %v252_v6 = vld [vmem:[%s338_s0 + $0x14] ss:$8 sps:$4 sm:$0xff]   ;;  %v37_v8 = vld [vmem:[%s339_s2] sm:$0xff]  ;;  %v38_v11 = vld [vmem:[%s339_s2 + $0x8] sm:$0xff] }
   0x4   :  { %142 = vmatprep.subr.bf16.mxu0 %v253_v0  ;;  %218 = vmatprep.subr.bf16.mxu1 %v253_v0  ;;  %v40_v9 = vld [vmem:[%s339_s2 + $0x18] sm:$0xff]  ;;  %v242_v10 = vld [vmem:[%s337_s1 + $0x20] sm:$0xff]   ;;  %v243_v12 = vld [vmem:[%s337_s1 + $0x28] sm:$0xff]  }
   0x5   :  { %215 = vmatprep.mubr.msk.bf16.mxu0 %vm133_vm0, %v249_v5  ;;  %53 = vperm.xlu1 %237, %v39_v7   ;;  %v244_v13 = vld [vmem:[%s337_s1 + $0x30] sm:$0xff]   ;;  %v245_v14 = vld [vmem:[%s337_s1 + $0x38] sm:$0xff]   ;;  %v246_v15 = vld [vmem:[%s337_s1 + $0x40] sm:$0xff]  }
   0x6   :  { %216 = vmatprep.mubr.msk.bf16.mxu1 %vm133_vm0, %v252_v6  ;;  %43 = vperm.xlu0 %236, %v37_v8   ;;  %v247_v16 = vld [vmem:[%s338_s0] ss:$8 sps:$4 sm:$0xff]   ;;  %v250_v17 = vld [vmem:[%s338_s0 + $0x10] ss:$8 sps:$4 sm:$0xff]  }
   0x7   :  { %143 = vmatpush1.bf16.msra.mxu0 %v239_v2  ;;  %227 = vmatpush1.bf16.msra.mxu1 %v239_v2 }
   0x8   :  { %144 = vmatprep.subr.bf16.mxu0 %v253_v0  ;;  %219 = vmatprep.subr.bf16.mxu1 %v253_v0 }
   0x9   :  { %58 = vperm.xlu1 %237, %v40_v9  }
   0xa   :  { %48 = vperm.xlu0 %236, %v38_v11  }
   0xb   :  { %145 = vmatpush1.bf16.msra.mxu0 %v240_v3  ;;  %228 = vmatpush1.bf16.msra.mxu1 %v240_v3 }
   0xc   :  { %146 = vmatprep.subr.bf16.mxu0 %v253_v0  ;;  %220 = vmatprep.subr.bf16.mxu1 %v253_v0 }
   0xf   :  { %147 = vmatpush1.bf16.msra.mxu0 %v241_v4  ;;  %229 = vmatpush1.bf16.msra.mxu1 %v241_v4 }
  0x10   :  { %148 = vmatprep.subr.bf16.mxu0 %v253_v0  ;;  %221 = vmatprep.subr.bf16.mxu1 %v253_v0 }
  0x13   :  { %149 = vmatpush1.bf16.msra.mxu0 %v242_v10  ;;  %230 = vmatpush1.bf16.msra.mxu1 %v242_v10 }
  0x14   :  { %150 = vmatprep.subr.bf16.mxu0 %v253_v0  ;;  %222 = vmatprep.subr.bf16.mxu1 %v253_v0 }
  0x17   :  { %151 = vmatpush1.bf16.msra.mxu0 %v243_v12  ;;  %231 = vmatpush1.bf16.msra.mxu1 %v243_v12 }
  0x18   :  { %152 = vmatprep.subr.bf16.mxu0 %v253_v0  ;;  %223 = vmatprep.subr.bf16.mxu1 %v253_v0 }
  0x1b   :  { %153 = vmatpush1.bf16.msra.mxu0 %v244_v13  ;;  %232 = vmatpush1.bf16.msra.mxu1 %v244_v13 }
  0x1c   :  { %154 = vmatprep.subr.bf16.mxu0 %v253_v0  ;;  %224 = vmatprep.subr.bf16.mxu1 %v253_v0 }
  0x1f   :  { %155 = vmatpush1.bf16.msra.mxu0 %v245_v14  ;;  %233 = vmatpush1.bf16.msra.mxu1 %v245_v14 }
  0x20   :  { %156 = vmatprep.subr.bf16.mxu0 %v253_v0  ;;  %225 = vmatprep.subr.bf16.mxu1 %v253_v0 }
  0x23   :  { %157 = vmatpush1.bf16.msra.mxu0 %v246_v15  ;;  %234 = vmatpush1.bf16.msra.mxu1 %v246_v15 }
  0x26   :  { %173 = vmatmul.mubr.bf16.vlgmr.msra.gmra.mrb[0].mxu0 %v247_v16  ;;  %181 = vmatmul.mubr.bf16.vlgmr.msra.gmra.mrb[0].mxu1 %v250_v17 }
  0x84   :  { %v54_v18 = vpop.permute.xlu1 %53 }
  0x85   :  { %v44_v19 = vpop.permute.xlu0 %43 }
  0x88   :  { %v59_v20 = vpop.permute.xlu1 %58 }
  0x89   :  { %v49_v21 = vpop.permute.xlu0 %48 }
  0xf9   :  { %v174_v22 = vpop.f32.mrb[0].mxu0  ;;  %v182_v23 = vpop.f32.mrb[0].mxu1 }
  0xfa   :  { %v175_v24 = vadd.f32 %v174_v22, %v44_v19  ;;  %v183_v25 = vadd.f32 %v182_v23, %v54_v18  ;;  %v176_v26 = vpop.f32.mrb[1].mxu0  ;;  %v184_v27 = vpop.f32.mrb[1].mxu1 }
  0xfb   :  { %v177_v28 = vpop.f32.mrb[2].mxu0  ;;  %v185_v29 = vpop.f32.mrb[2].mxu1 }
  0xfc   :  { %v189_v30 = vmax.f32 %v175_v24, 0.0  ;;  %v191_v31 = vmax.f32 %v183_v25, 0.0  ;;  %v178_v32 = vadd.f32 %v177_v28, %v49_v21  ;;  %v186_v33 = vadd.f32 %v185_v29, %v59_v20  ;;  %v179_v34 = vpop.f32.mrb[3].mxu0  ;;  %v187_v35 = vpop.f32.mrb[3].mxu1 }
  0xfe   :  { %194 = vst.msk [vmem:[%s340_s3] sm:$0xff] %vm193_vm1, %v189_v30  ;;  %196 = vst.msk [vmem:[%s340_s3 + $0x10] sm:$0xff] %vm193_vm1, %v191_v31  ;;  %v190_v36 = vmax.f32 %v178_v32, 0.0  ;;  %v192_v37 = vmax.f32 %v186_v33, 0.0 }
 0x100   :  { %195 = vst.msk [vmem:[%s340_s3 + $0x8] sm:$0xff] %vm193_vm1, %v190_v36  ;;  %197 = vst.msk [vmem:[%s340_s3 + $0x18] sm:$0xff] %vm193_vm1, %v192_v37 }

// kernel: som_autoencoder_forward.13
= control target key start
LH: loop header
LB: loop body
LE: loop exit
PB: predicated region body
PF: predicated region fallthrough
CT: control target
= control target key end

     0   :  { %s618_s12 = smov 0   ;;  %s620_s13 = smov 0   ;;  %s671_s0 = inlined_call_operand.vmem [shape: bf16[4,32,128], index: 0, kind: input, shape index: {}]   ;;  %s672_s1 = inlined_call_operand.vmem [shape: bf16[4,128,32], index: 1, kind: input, shape index: {}]   ;;  %s673_s2 = inlined_call_operand.vmem [shape: f32[32,1], index: 2, kind: input, shape index: {}]   ;;  %s674_s3 = inlined_call_operand.vmem [shape: f32[4,32,32], index: 3, kind: output, shape index: {}]  }
   0x1   :  { %s622_s14 = smov 0  }
   0x2 LB: > { %s25_s15 = sadd.s32 1, %s591_s13  ;;  %p484_p0 = scmp.ge.s32.totalorder %s595_s14, 1  ;;  %s595_s14 = sphi %s622_s14, %s13_s14   ;;  %s591_s13 = sphi %s620_s13, %s676_s13   ;;  %s587_s12 = sphi %s618_s12, %s675_s12  }
   0x3   : > { %p27_p1 = scmp.ge.s32.totalorder %s25_s15, 4  ;;  %p166_p2 = scmp.lt.s32.totalorder %s595_s14, 5 }
   0x5   : > { %s678_s15 = smov (%p27_p1, %s25_s15), 0  ;;  %p167_p3 = pnand %p484_p0, %p166_p2 }
   0x6   : > { %p201_p4 = scmp.lt.s32.totalorder (!%p167_p3), %s587_s12, 3  ;;  %v245_v0 = vld [vmem:[%s673_s2 + $0x10] sm:$0xff] (!%p167_p3)  ;;  %v243_v1 = vld [vmem:[%s673_s2] sm:$0xff] (!%p167_p3)  ;;  %v597_v2 = vmov (!%p167_p3), 0   ;;  %v246_v3 = vld [vmem:[%s673_s2 + $0x18] sm:$0xff] (!%p167_p3)  ;;  %vm380_vm0 = vcmask (!%p167_p3), 261120  }
   0x7   : > { %170 = sbr.rel (%p167_p3) target bundleno = 270 (0x10e), region = 32  ;;  %562 = vset.pattern.permute.xlu1 (!%p167_p3), %v597_v2  ;;  %561 = vset.pattern.permute.xlu0 (!%p167_p3), %v597_v2  ;;  %v244_v4 = vld [vmem:[%s673_s2 + $0x8] sm:$0xff] (!%p167_p3) }
   0x8   : > { %259 = vperm.xlu1 (!%p167_p3), %562, %v245_v0   ;;  %249 = vperm.xlu0 (!%p167_p3), %561, %v243_v1  }
   0xc   : > { %264 = vperm.xlu1 (!%p167_p3), %562, %v246_v3   ;;  %254 = vperm.xlu0 (!%p167_p3), %561, %v244_v4  }
   0xe   : > { %s680_s12 = smov (!%p201_p4, %s587_s12), 3 }
   0xf   : > { %s504_s24 = sshll.u32 %s680_s12, 6  ;;  %s503_s28 = sshll.u32 %s680_s12, 4 }
  0x10   : > { %s213_s27 = scalar_lea.vmem %s672_s1, %s504_s24  ;;  %s205_s4 = scalar_lea.vmem %s671_s0, %s503_s28 }
  0x11   : > { %v563_v5 = vld [vmem:[%s213_s27] sm:$0xff]   ;;  %v564_v6 = vld [vmem:[%s213_s27 + $0x8] sm:$0xff]   ;;  %v565_v7 = vld [vmem:[%s213_s27 + $0x10] sm:$0xff]   ;;  %s505_s5 = sshll.u32 %s680_s12, 5 }
  0x12   : > { %516 = vmatprep.subr.bf16.mxu0 %v563_v5  ;;  %v566_v8 = vld [vmem:[%s213_s27 + $0x18] sm:$0xff]   ;;  %v571_v9 = vld [vmem:[%s205_s4] sm:$0xff]   ;;  %v568_v11 = vld [vmem:[%s213_s27 + $0x28] sm:$0xff]   ;;  %s221_s8 = scalar_lea.vmem %s674_s3, %s505_s5 }
  0x13   : > { %517 = vmatpush3.bf16.msra.mxu0 %v563_v5  ;;  %532 = vmatprep.mubr.bf16.mxu0 %v571_v9  ;;  %v567_v10 = vld [vmem:[%s213_s27 + $0x20] sm:$0xff]   ;;  %v569_v12 = vld [vmem:[%s213_s27 + $0x30] sm:$0xff]   ;;  %v570_v13 = vld [vmem:[%s213_s27 + $0x38] sm:$0xff]  }
  0x14   : > { %518 = vmatprep.subr.bf16.mxu0 %v564_v6  ;;  %v572_v14 = vld [vmem:[%s205_s4 + $0x8] sm:$0xff]  }
  0x17   : > { %519 = vmatpush3.bf16.msra.mxu0 %v564_v6 }
  0x18   : > { %520 = vmatprep.subr.bf16.mxu0 %v565_v7 }
  0x1b   : > { %521 = vmatpush3.bf16.msra.mxu0 %v565_v7 }
  0x1c   : > { %522 = vmatprep.subr.bf16.mxu0 %v566_v8 }
  0x1f   : > { %523 = vmatpush3.bf16.msra.mxu0 %v566_v8 }
  0x20   : > { %524 = vmatprep.subr.bf16.mxu0 %v567_v10 }
  0x23   : > { %525 = vmatpush3.bf16.msra.mxu0 %v567_v10 }
  0x24   : > { %526 = vmatprep.subr.bf16.mxu0 %v568_v11 }
  0x27   : > { %527 = vmatpush3.bf16.msra.mxu0 %v568_v11 }
  0x28   : > { %528 = vmatprep.subr.bf16.mxu0 %v569_v12 }
  0x2b   : > { %529 = vmatpush3.bf16.msra.mxu0 %v569_v12 }
  0x2c   : > { %530 = vmatprep.subr.bf16.mxu0 %v570_v13 }
  0x2f   : > { %531 = vmatpush3.bf16.msra.mxu0 %v570_v13 }
  0x32   : > { %533 = vmatmul.mubr.bf16.vlgmr.msra.gmra.mrb[0].mxu0 %v572_v14 }
  0x87   : > { %v260_v15 = vpop.permute.xlu1 %259  ;;  %v250_v16 = vpop.permute.xlu0 %249 }
  0x8b   : > { %v265_v20 = vpop.permute.xlu1 %264  ;;  %v255_v23 = vpop.permute.xlu0 %254 }
 0x105   : > { %v534_v17 = vpop.f32.mrb[0].mxu0 }
 0x106   : > { %v370_v18 = vadd.f32 %v534_v17, %v260_v15  ;;  %v361_v19 = vpop.f32.mrb[1].mxu0 }
 0x107   : > { %v362_v21 = vadd.f32 %v361_v19, %v250_v16  ;;  %v535_v22 = vpop.f32.mrb[2].mxu0 }
 0x108   : > { %v378_v24 = vmax.f32 %v370_v18, 0.0  ;;  %v373_v25 = vadd.f32 %v535_v22, %v265_v20  ;;  %v364_v26 = vpop.f32.mrb[3].mxu0 }
 0x109   : > { %v376_v27 = vmax.f32 %v362_v21, 0.0  ;;  %v365_v28 = vadd.f32 %v364_v26, %v255_v23 }
 0x10a   : > { %383 = vst.msk [vmem:[%s221_s8 + $0x10] sm:$0xff] %vm380_vm0, %v378_v24  ;;  %v379_v29 = vmax.f32 %v373_v25, 0.0 }
 0x10b   : > { %381 = vst.msk [vmem:[%s221_s8] sm:$0xff] %vm380_vm0, %v376_v27  ;;  %v377_v30 = vmax.f32 %v365_v28, 0.0 }
 0x10c   : > { %384 = vst.msk [vmem:[%s221_s8 + $0x18] sm:$0xff] %vm380_vm0, %v379_v29 }
 0x10d   : > { %382 = vst.msk [vmem:[%s221_s8 + $0x8] sm:$0xff] %vm380_vm0, %v377_v30 }
 0x10e PF: > { %s13_s14 = sadd.s32 1, %s595_s14   ;;  %s675_s12 = smov %s591_s13 }
 0x10f   : > { %p10_p5 = scmp.ge.s32.totalorder %s13_s14, 6   ;;  %s676_s13 = smov %s678_s15 }
 0x111   :  { %12 = sbr.rel (!%p10_p5) target bundleno = 2 (0x2), region = 65 }

// kernel: som_autoencoder_forward.14
= control target key start
LH: loop header
LB: loop body
LE: loop exit
PB: predicated region body
PF: predicated region fallthrough
CT: control target
= control target key end

     0   :  { %s617_s12 = smov 0   ;;  %s619_s13 = smov 0   ;;  %s670_s0 = inlined_call_operand.vmem [shape: bf16[4,32,128], index: 0, kind: input, shape index: {}]   ;;  %s671_s1 = inlined_call_operand.vmem [shape: bf16[4,128,128], index: 1, kind: input, shape index: {}]   ;;  %s672_s2 = inlined_call_operand.vmem [shape: f32[32,1], index: 2, kind: input, shape index: {}]   ;;  %s673_s3 = inlined_call_operand.vmem [shape: f32[4,32,128], index: 3, kind: output, shape index: {}]  }
   0x1   :  { %s621_s14 = smov 0  }
   0x2 LB: > { %s25_s15 = sadd.s32 1, %s590_s13  ;;  %p483_p0 = scmp.ge.s32.totalorder %s594_s14, 1  ;;  %s594_s14 = sphi %s621_s14, %s13_s14   ;;  %s590_s13 = sphi %s619_s13, %s675_s13   ;;  %s586_s12 = sphi %s617_s12, %s674_s12  }
   0x3   : > { %p27_p1 = scmp.ge.s32.totalorder %s25_s15, 4  ;;  %p166_p2 = scmp.lt.s32.totalorder %s594_s14, 5 }
   0x5   : > { %s677_s15 = smov (%p27_p1, %s25_s15), 0  ;;  %p167_p3 = pnand %p483_p0, %p166_p2 }
   0x6   : > { %p201_p4 = scmp.lt.s32.totalorder (!%p167_p3), %s586_s12, 3  ;;  %v245_v0 = vld [vmem:[%s672_s2 + $0x10] sm:$0xff] (!%p167_p3)  ;;  %v243_v1 = vld [vmem:[%s672_s2] sm:$0xff] (!%p167_p3)  ;;  %v596_v2 = vmov (!%p167_p3), 0   ;;  %v246_v3 = vld [vmem:[%s672_s2 + $0x18] sm:$0xff] (!%p167_p3) }
   0x7   : > { %170 = sbr.rel (%p167_p3) target bundleno = 270 (0x10e), region = 32  ;;  %561 = vset.pattern.permute.xlu1 (!%p167_p3), %v596_v2  ;;  %560 = vset.pattern.permute.xlu0 (!%p167_p3), %v596_v2  ;;  %v244_v4 = vld [vmem:[%s672_s2 + $0x8] sm:$0xff] (!%p167_p3) }
   0x8   : > { %259 = vperm.xlu1 (!%p167_p3), %561, %v245_v0   ;;  %249 = vperm.xlu0 (!%p167_p3), %560, %v243_v1  }
   0xc   : > { %264 = vperm.xlu1 (!%p167_p3), %561, %v246_v3   ;;  %254 = vperm.xlu0 (!%p167_p3), %560, %v244_v4  }
   0xe   : > { %s679_s12 = smov (!%p201_p4, %s586_s12), 3 }
   0xf   : > { %s503_s24 = sshll.u32 %s679_s12, 6  ;;  %s502_s28 = sshll.u32 %s679_s12, 4 }
  0x10   : > { %s213_s27 = scalar_lea.vmem %s671_s1, %s503_s24  ;;  %s205_s4 = scalar_lea.vmem %s670_s0, %s502_s28 }
  0x11   : > { %v562_v5 = vld [vmem:[%s213_s27] sm:$0xff]   ;;  %v563_v6 = vld [vmem:[%s213_s27 + $0x8] sm:$0xff]   ;;  %v564_v7 = vld [vmem:[%s213_s27 + $0x10] sm:$0xff]   ;;  %s504_s5 = sshll.u32 %s679_s12, 5 }
  0x12   : > { %515 = vmatprep.subr.bf16.mxu0 %v562_v5  ;;  %v565_v8 = vld [vmem:[%s213_s27 + $0x18] sm:$0xff]   ;;  %v570_v9 = vld [vmem:[%s205_s4] sm:$0xff]   ;;  %v567_v11 = vld [vmem:[%s213_s27 + $0x28] sm:$0xff]   ;;  %s221_s8 = scalar_lea.vmem %s673_s3, %s504_s5 }
  0x13   : > { %516 = vmatpush3.bf16.msra.mxu0 %v562_v5  ;;  %531 = vmatprep.mubr.bf16.mxu0 %v570_v9  ;;  %v566_v10 = vld [vmem:[%s213_s27 + $0x20] sm:$0xff]   ;;  %v568_v12 = vld [vmem:[%s213_s27 + $0x30] sm:$0xff]   ;;  %v569_v13 = vld [vmem:[%s213_s27 + $0x38] sm:$0xff]  }
  0x14   : > { %517 = vmatprep.subr.bf16.mxu0 %v563_v6  ;;  %v571_v14 = vld [vmem:[%s205_s4 + $0x8] sm:$0xff]  }
  0x17   : > { %518 = vmatpush3.bf16.msra.mxu0 %v563_v6 }
  0x18   : > { %519 = vmatprep.subr.bf16.mxu0 %v564_v7 }
  0x1b   : > { %520 = vmatpush3.bf16.msra.mxu0 %v564_v7 }
  0x1c   : > { %521 = vmatprep.subr.bf16.mxu0 %v565_v8 }
  0x1f   : > { %522 = vmatpush3.bf16.msra.mxu0 %v565_v8 }
  0x20   : > { %523 = vmatprep.subr.bf16.mxu0 %v566_v10 }
  0x23   : > { %524 = vmatpush3.bf16.msra.mxu0 %v566_v10 }
  0x24   : > { %525 = vmatprep.subr.bf16.mxu0 %v567_v11 }
  0x27   : > { %526 = vmatpush3.bf16.msra.mxu0 %v567_v11 }
  0x28   : > { %527 = vmatprep.subr.bf16.mxu0 %v568_v12 }
  0x2b   : > { %528 = vmatpush3.bf16.msra.mxu0 %v568_v12 }
  0x2c   : > { %529 = vmatprep.subr.bf16.mxu0 %v569_v13 }
  0x2f   : > { %530 = vmatpush3.bf16.msra.mxu0 %v569_v13 }
  0x32   : > { %532 = vmatmul.mubr.bf16.vlgmr.msra.gmra.mrb[0].mxu0 %v571_v14 }
  0x87   : > { %v260_v15 = vpop.permute.xlu1 %259  ;;  %v250_v16 = vpop.permute.xlu0 %249 }
  0x8b   : > { %v265_v20 = vpop.permute.xlu1 %264  ;;  %v255_v23 = vpop.permute.xlu0 %254 }
 0x105   : > { %v533_v17 = vpop.f32.mrb[0].mxu0 }
 0x106   : > { %v370_v18 = vadd.f32 %v533_v17, %v260_v15  ;;  %v361_v19 = vpop.f32.mrb[1].mxu0 }
 0x107   : > { %v362_v21 = vadd.f32 %v361_v19, %v250_v16  ;;  %v534_v22 = vpop.f32.mrb[2].mxu0 }
 0x108   : > { %v378_v24 = vmax.f32 %v370_v18, 0.0  ;;  %v373_v25 = vadd.f32 %v534_v22, %v265_v20  ;;  %v364_v26 = vpop.f32.mrb[3].mxu0 }
 0x109   : > { %v376_v27 = vmax.f32 %v362_v21, 0.0  ;;  %v365_v28 = vadd.f32 %v364_v26, %v255_v23 }
 0x10a   : > { %382 = vst [vmem:[%s221_s8 + $0x10] sm:$0xff] %v378_v24  ;;  %v379_v29 = vmax.f32 %v373_v25, 0.0 }
 0x10b   : > { %380 = vst [vmem:[%s221_s8] sm:$0xff] %v376_v27  ;;  %v377_v30 = vmax.f32 %v365_v28, 0.0 }
 0x10c   : > { %383 = vst [vmem:[%s221_s8 + $0x18] sm:$0xff] %v379_v29 }
 0x10d   : > { %381 = vst [vmem:[%s221_s8 + $0x8] sm:$0xff] %v377_v30 }
 0x10e PF: > { %s13_s14 = sadd.s32 1, %s594_s14   ;;  %s674_s12 = smov %s590_s13 }
 0x10f   : > { %p10_p5 = scmp.ge.s32.totalorder %s13_s14, 6   ;;  %s675_s13 = smov %s677_s15 }
 0x111   :  { %12 = sbr.rel (!%p10_p5) target bundleno = 2 (0x2), region = 65 }

// kernel: squeeze.73
= control target key start
LH: loop header
LB: loop body
LE: loop exit
PB: predicated region body
PF: predicated region fallthrough
CT: control target
= control target key end

     0   :  { %vm57_vm0 = vcmask 1047556   ;;  %s232_s14 = smov 112   ;;  %s233_s15 = smov 80   ;;  %vm21_vm1 = vcmask 130048   ;;  %s399_s0 = inlined_call_operand.vmem [shape: f32[1,3,512], index: 0, kind: input, shape index: {}]   ;;  %s400_s1 = inlined_call_operand.vmem [shape: f32[3,2,16,16], index: 1, kind: output, shape index: {}]  }
   0x1   :  { %v189_v0 = vld [vmem:[%s399_s0 + $0xc] sm:$0xf]  ;;  %v190_v1 = vld [vmem:[%s399_s0 + $0x8] sm:$0xf]  ;;  %v191_v2 = vld [vmem:[%s399_s0 + $0x4] sm:$0xf] }
   0x2   :  { %8 = vst [vmem:[#allocation0 + $0x18] sm:$0xf] %v189_v0  ;;  %13 = vst [vmem:[#allocation0 + $0x10] sm:$0xf] %v190_v1  ;;  %v18_v3 = vld [vmem:[%s399_s0] sm:$0xf] }
   0x3   :  { %17 = vst [vmem:[#allocation0 + $0x8] sm:$0xf] %v191_v2  ;;  %19 = vst [vmem:[#allocation0] sm:$0xf] %v18_v3  ;;  %s231_s0 = smov 96   ;;  %s234_s5 = smov 64  }
   0x4   :  { %s235_s12 = smov 48   ;;  %s236_s13 = smov 32  }
   0x9   :  { %v37_v24 = vld [vmem:[#allocation0 + $0x10] sm:$0x7]   ;;  %v46_v25 = vld [vmem:[#allocation0 + $0x18] sm:$0x7]  }
   0xa   :  { %v86_v4 = vld [vmem:[#allocation0 + $0x2] ss:$8 sm:$0xf]   ;;  %v54_v7 = vld [vmem:[#allocation0] ss:$8 sm:$0xf]  }
   0xb   :  { %v67_v5 = vld [vmem:[#allocation0 + $0x2] ss:$8 sm:$0xf]   ;;  %87 = vrot.lane.b32.xlu1 %v86_v4, %s231_s0  ;;  %v56_v8 = vld [vmem:[#allocation0 - $0x1f] ss:$8 sm:$0xf0]  }
   0xc   :  { %68 = vrot.lane.b32.xlu0 %v67_v5, %s232_s14  ;;  %v105_v6 = vld [vmem:[#allocation0 + $0x2] ss:$8 sm:$0xf]   ;;  %v73_v9 = vld [vmem:[#allocation0] ss:$8 sm:$0xf]   ;;  %v58_v10 = vsel %vm57_vm0, %v56_v8, %v54_v7 }
   0xd   :  { %v75_v11 = vld [vmem:[#allocation0 - $0x1f] ss:$8 sm:$0xf0]   ;;  %v92_v12 = vld [vmem:[#allocation0] ss:$8 sm:$0xf]  }
   0xe   :  { %v94_v13 = vld [vmem:[#allocation0 - $0x1f] ss:$8 sm:$0xf0]   ;;  %v77_v14 = vsel %vm57_vm0, %v75_v11, %v73_v9  ;;  %v111_v16 = vld [vmem:[#allocation0] ss:$8 sm:$0xf]  }
   0xf   :  { %106 = vrot.lane.b32.xlu1 %v105_v6, %s233_s15  ;;  %v96_v15 = vsel %vm57_vm0, %v94_v13, %v92_v12  ;;  %v113_v17 = vld [vmem:[#allocation0 - $0x1f] ss:$8 sm:$0xf0]   ;;  %v124_v18 = vld [vmem:[#allocation0 + $0x2] ss:$8 sm:$0xf]  }
  0x10   :  { %59 = vrot.lane.b32.xlu0 %v58_v10, %s232_s14  ;;  %v115_v19 = vsel %vm57_vm0, %v113_v17, %v111_v16  ;;  %v130_v20 = vld [vmem:[#allocation0] ss:$8 sm:$0xf]   ;;  %v132_v21 = vld [vmem:[#allocation0 - $0x1f] ss:$8 sm:$0xf0]  }
  0x11   :  { %v20_v22 = vld [vmem:[#allocation0] sm:$0x7]   ;;  %v28_v23 = vld [vmem:[#allocation0 + $0x8] sm:$0x7]   ;;  %197 = vst.msk [vmem:[%s400_s1 + $0x10] sm:$0x1] %vm21_vm1, %v37_v24   ;;  %v134_v27 = vsel %vm57_vm0, %v132_v21, %v130_v20 }
  0x12   :  { %22 = vst.msk [vmem:[%s400_s1] sm:$0x1] %vm21_vm1, %v20_v22   ;;  %192 = vst.msk [vmem:[%s400_s1 + $0x1f] sm:$0x2] %vm21_vm1, %v20_v22  }
  0x13   :  { %78 = vrot.lane.b32.xlu1 %v77_v14, %s231_s0  ;;  %193 = vst.msk [vmem:[%s400_s1 + $0x3e] sm:$0x4] %vm21_vm1, %v20_v22   ;;  %194 = vst.msk [vmem:[%s400_s1 + $0x8] sm:$0x1] %vm21_vm1, %v28_v23   ;;  %s237_s0 = smov 16  }
  0x14   :  { %97 = vrot.lane.b32.xlu0 %v96_v15, %s233_s15  ;;  %195 = vst.msk [vmem:[%s400_s1 + $0x27] sm:$0x2] %vm21_vm1, %v28_v23   ;;  %196 = vst.msk [vmem:[%s400_s1 + $0x46] sm:$0x4] %vm21_vm1, %v28_v23  }
  0x15   :  { %198 = vst.msk [vmem:[%s400_s1 + $0x2f] sm:$0x2] %vm21_vm1, %v37_v24   ;;  %199 = vst.msk [vmem:[%s400_s1 + $0x4e] sm:$0x4] %vm21_vm1, %v37_v24  }
  0x16   :  { %200 = vst.msk [vmem:[%s400_s1 + $0x18] sm:$0x1] %vm21_vm1, %v46_v25   ;;  %201 = vst.msk [vmem:[%s400_s1 + $0x37] sm:$0x2] %vm21_vm1, %v46_v25  }
  0x17   :  { %125 = vrot.lane.b32.xlu1 %v124_v18, %s234_s5  ;;  %202 = vst.msk [vmem:[%s400_s1 + $0x56] sm:$0x4] %vm21_vm1, %v46_v25   ;;  %v143_v26 = vld [vmem:[#allocation0 + $0x2] ss:$8 sm:$0xf]  }
  0x18   :  { %116 = vrot.lane.b32.xlu0 %v115_v19, %s234_s5  ;;  %v149_v28 = vld [vmem:[#allocation0] ss:$8 sm:$0xf]   ;;  %v151_v29 = vld [vmem:[#allocation0 - $0x1f] ss:$8 sm:$0xf0]  }
  0x19   :  { %v162_v30 = vld [vmem:[#allocation0 + $0x2] ss:$8 sm:$0xf]   ;;  %v153_v31 = vsel %vm57_vm0, %v151_v29, %v149_v28  ;;  %v168_v32 = vld [vmem:[#allocation0] ss:$8 sm:$0xf]  }
  0x1a   :  { %v170_v33 = vld [vmem:[#allocation0 - $0x1f] ss:$8 sm:$0xf0]   ;;  %v181_v34 = vld [vmem:[#allocation0 + $0x2] ss:$8 sm:$0xf]  }
  0x1b   :  { %144 = vrot.lane.b32.xlu1 %v143_v26, %s235_s12  ;;  %v172_v35 = vsel %vm57_vm0, %v170_v33, %v168_v32 }
  0x1c   :  { %135 = vrot.lane.b32.xlu0 %v134_v27, %s235_s12 }
  0x1f   :  { %163 = vrot.lane.b32.xlu1 %v162_v30, %s236_s13 }
  0x20   :  { %154 = vrot.lane.b32.xlu0 %v153_v31, %s236_s13 }
  0x23   :  { %182 = vrot.lane.b32.xlu1 %v181_v34, %s237_s0 }
  0x24   :  { %173 = vrot.lane.b32.xlu0 %v172_v35, %s237_s0 }
  0x7d   :  { %v88_v36 = vpop.permute.xlu1 %87  }
  0x7e   :  { %v69_v37 = vpop.permute.xlu0 %68   ;;  %208 = vst.msk [vmem:[%s400_s1 + $0x42] ss:$8 sm:$0xf] %vm21_vm1, %v88_v36  }
  0x7f   :  { %205 = vst.msk [vmem:[%s400_s1 + $0x41] ss:$8 sm:$0xf] %vm21_vm1, %v69_v37  }
  0x81   :  { %v107_v38 = vpop.permute.xlu1 %106  }
  0x82   :  { %v60_v39 = vpop.permute.xlu0 %59   ;;  %211 = vst.msk [vmem:[%s400_s1 + $0x43] ss:$8 sm:$0xf] %vm21_vm1, %v107_v38  }
  0x83   :  { %203 = vst.msk [vmem:[%s400_s1 + $0x1] ss:$8 sm:$0xf] %vm21_vm1, %v60_v39   ;;  %204 = vst.msk [vmem:[%s400_s1 + $0x1] ss:$8 sm:$0xf0] %vm21_vm1, %v60_v39  }
  0x85   :  { %v79_v40 = vpop.permute.xlu1 %78  }
  0x86   :  { %v98_v41 = vpop.permute.xlu0 %97   ;;  %206 = vst.msk [vmem:[%s400_s1 + $0x2] ss:$8 sm:$0xf] %vm21_vm1, %v79_v40   ;;  %207 = vst.msk [vmem:[%s400_s1 + $0x2] ss:$8 sm:$0xf0] %vm21_vm1, %v79_v40  }
  0x87   :  { %209 = vst.msk [vmem:[%s400_s1 + $0x3] ss:$8 sm:$0xf] %vm21_vm1, %v98_v41   ;;  %210 = vst.msk [vmem:[%s400_s1 + $0x3] ss:$8 sm:$0xf0] %vm21_vm1, %v98_v41  }
  0x89   :  { %v126_v42 = vpop.permute.xlu1 %125  }
  0x8a   :  { %v117_v43 = vpop.permute.xlu0 %116   ;;  %214 = vst.msk [vmem:[%s400_s1 + $0x44] ss:$8 sm:$0xf] %vm21_vm1, %v126_v42  }
  0x8b   :  { %212 = vst.msk [vmem:[%s400_s1 + $0x4] ss:$8 sm:$0xf] %vm21_vm1, %v117_v43   ;;  %213 = vst.msk [vmem:[%s400_s1 + $0x4] ss:$8 sm:$0xf0] %vm21_vm1, %v117_v43  }
  0x8d   :  { %v145_v44 = vpop.permute.xlu1 %144  }
  0x8e   :  { %v136_v45 = vpop.permute.xlu0 %135   ;;  %217 = vst.msk [vmem:[%s400_s1 + $0x45] ss:$8 sm:$0xf] %vm21_vm1, %v145_v44  }
  0x8f   :  { %215 = vst.msk [vmem:[%s400_s1 + $0x5] ss:$8 sm:$0xf] %vm21_vm1, %v136_v45   ;;  %216 = vst.msk [vmem:[%s400_s1 + $0x5] ss:$8 sm:$0xf0] %vm21_vm1, %v136_v45  }
  0x91   :  { %v164_v46 = vpop.permute.xlu1 %163  }
  0x92   :  { %v155_v47 = vpop.permute.xlu0 %154   ;;  %220 = vst.msk [vmem:[%s400_s1 + $0x46] ss:$8 sm:$0xf] %vm21_vm1, %v164_v46  }
  0x93   :  { %218 = vst.msk [vmem:[%s400_s1 + $0x6] ss:$8 sm:$0xf] %vm21_vm1, %v155_v47   ;;  %219 = vst.msk [vmem:[%s400_s1 + $0x6] ss:$8 sm:$0xf0] %vm21_vm1, %v155_v47  }
  0x95   :  { %v183_v48 = vpop.permute.xlu1 %182  }
  0x96   :  { %v174_v49 = vpop.permute.xlu0 %173   ;;  %223 = vst.msk [vmem:[%s400_s1 + $0x47] ss:$8 sm:$0xf] %vm21_vm1, %v183_v48  }
  0x97   :  { %221 = vst.msk [vmem:[%s400_s1 + $0x7] ss:$8 sm:$0xf] %vm21_vm1, %v174_v49   ;;  %222 = vst.msk [vmem:[%s400_s1 + $0x7] ss:$8 sm:$0xf0] %vm21_vm1, %v174_v49  }

// kernel: sub.1
= control target key start
LH: loop header
LB: loop body
LE: loop exit
PB: predicated region body
PF: predicated region fallthrough
CT: control target
= control target key end

     0   :  { %3 = vsyncpa [#allocation1], 0  ;;  %s212_s0 = inlined_call_operand.vmem [shape: f32[2,4,4,16], index: 0, kind: input, shape index: {}]   ;;  %s213_s1 = inlined_call_operand.vmem [shape: f32[2,4,4,16], index: 1, kind: input, shape index: {}]   ;;  %s214_s2 = inlined_call_operand.hbm [shape: f32[2,4,4,16], index: 2, kind: output, shape index: {}]  }
   0x1   :  { %v4_v0 = vld [vmem:[%s212_s0] sm:$0xf]  ;;  %v93_v3 = vld [vmem:[%s212_s0 + $0x10] sm:$0xf]  ;;  %v95_v5 = vld [vmem:[%s212_s0 + $0x4] sm:$0xf] }
   0x2   :  { %v5_v1 = vld [vmem:[%s213_s1] sm:$0xf]  ;;  %v94_v4 = vld [vmem:[%s213_s1 + $0x10] sm:$0xf]  ;;  %v96_v7 = vld [vmem:[%s213_s1 + $0x4] sm:$0xf] }
   0x3   :  { %v8_v2 = vsub.f32 %v4_v0, %v5_v1  ;;  %v17_v6 = vsub.f32 %v93_v3, %v94_v4  ;;  %v97_v8 = vld [vmem:[%s212_s0 + $0x14] sm:$0xf]  ;;  %v27_v10 = vsub.f32 %v95_v5, %v96_v7  ;;  %v99_v12 = vld [vmem:[%s212_s0 + $0x8] sm:$0xf]  ;;  %v101_v14 = vld [vmem:[%s212_s0 + $0x18] sm:$0xf] }
   0x4   :  { %v98_v9 = vld [vmem:[%s213_s1 + $0x14] sm:$0xf]  ;;  %v100_v13 = vld [vmem:[%s213_s1 + $0x8] sm:$0xf]  ;;  %v102_v16 = vld [vmem:[%s213_s1 + $0x18] sm:$0xf] }
   0x5   :  { %10 = vst [vmem:[#allocation0] sm:$0xf] %v8_v2  ;;  %v37_v11 = vsub.f32 %v97_v8, %v98_v9  ;;  %20 = vst [vmem:[#allocation0 + $0x10] sm:$0xf] %v17_v6  ;;  %v47_v15 = vsub.f32 %v99_v12, %v100_v13  ;;  %v103_v17 = vld [vmem:[%s212_s0 + $0xc] sm:$0xf]  ;;  %v57_v19 = vsub.f32 %v101_v14, %v102_v16 }
   0x6   :  { %v104_v18 = vld [vmem:[%s213_s1 + $0xc] sm:$0xf]  ;;  %30 = vst [vmem:[#allocation0 + $0x4] sm:$0xf] %v27_v10  ;;  %v105_v21 = vld [vmem:[%s212_s0 + $0x1c] sm:$0xf] }
   0x7   :  { %40 = vst [vmem:[#allocation0 + $0x14] sm:$0xf] %v37_v11  ;;  %v67_v20 = vsub.f32 %v103_v17, %v104_v18  ;;  %v106_v22 = vld [vmem:[%s213_s1 + $0x1c] sm:$0xf]  ;;  %50 = vst [vmem:[#allocation0 + $0x8] sm:$0xf] %v47_v15 }
   0x8   :  { %v77_v23 = vsub.f32 %v105_v21, %v106_v22  ;;  %s134_s1 = smov [#allocation0]   ;;  %60 = vst [vmem:[#allocation0 + $0x18] sm:$0xf] %v57_v19 }
   0x9   :  { %s84_s12 = sshll.u32 %s134_s1, 4  ;;  %70 = vst [vmem:[#allocation0 + $0xc] sm:$0xf] %v67_v20  ;;  %s85_s12 = int_to_ptr.vmem [resolvable:$true] %s84_s12 }
   0xa   :  { %80 = vst [vmem:[#allocation0 + $0x1c] sm:$0xf] %v77_v23  ;;  %s110_s13 = scalar_lea.vmem %s85_s12, 512  ;;  %p115_p1 = scmp.lt.s32.totalorder %s85_s12, %s85_s12 }
   0xb   :  { %p111_p0 = scmp.ne.s32.totalorder %s85_s12, %s110_s13  ;;  %p116_p2 = scmp.lt.s32.totalorder %s110_s13, %s110_s13 }
   0xd   :  { %p117_p3 = por %p116_p2, %p115_p1 }
   0xf   :  { %p118_p4 = pnand %p117_p3, %p111_p0 }
  0x11   :  { %121 = shalt.err (!%p118_p4)
}
  0x12   :  { %s122_s16 = scalar_lea.hbm %s214_s2, 512 }
  0x13   :  { %p123_p5 = scmp.ne.s32.totalorder %s214_s2, %s122_s16  ;;  %p126_p6 = scmp.lt.u32.totalorder %s122_s16, %s214_s2 }
  0x15   :  { %p128_p7 = pnand %p126_p6, %p123_p5 }
  0x17   :  { %131 = shalt.err (!%p128_p7)
}
  0x18   :  { %s135_s21 = smov 64   ;;  %s136_s22 = smov 4  }
  0x19   :  { %90 = dma.vmem_to_hbm [thread:$0]  %s85_s12, 512, %s214_s2, [#allocation1], %s135_s21, %s135_s21, %s136_s22  }
  0x1a   :  { %132 = dma.done.wait [#allocation1], 512  }
  0x1b   :  { %133 = vsyncadd [#allocation1], 4294966784 }
  0x1c   :  { %92 = vsyncpa [#allocation1], 1 }

// kernel: som_autoencoder_forward.15
= control target key start
LH: loop header
LB: loop body
LE: loop exit
PB: predicated region body
PF: predicated region fallthrough
CT: control target
= control target key end

     0   :  { %s1049_s12 = smov 0   ;;  %s1051_s13 = smov 0   ;;  %s1239_s0 = inlined_call_operand.vmem [shape: bf16[1,3,288], index: 0, kind: input, shape index: {}]   ;;  %s1240_s1 = inlined_call_operand.vmem [shape: bf16[1,288,512], index: 1, kind: input, shape index: {}]   ;;  %s1241_s2 = inlined_call_operand.vmem [shape: f32[3,1], index: 2, kind: input, shape index: {}]   ;;  %s1242_s3 = inlined_call_operand.vmem [shape: f32[1,3,512], index: 3, kind: output, shape index: {}]  }
   0x1   :  { %s1053_s14 = smov 0   ;;  %s1055_s15 = smov 0  }
   0x2   :  { %s1057_s16 = smov 0  }
   0x3 LB: > { %s22_s17 = sadd.s32 1, %s1021_s15  ;;  %p67_p1 = scmp.ne.s32.totalorder %s1013_s13, %s1009_s12  ;;  %s1025_s16 = sphi %s1057_s16, %s13_s16   ;;  %s1021_s15 = sphi %s1055_s15, %s1246_s15   ;;  %s1017_s14 = sphi %s1053_s14, %s1245_s14   ;;  %s1013_s13 = sphi %s1051_s13, %s1244_s13   ;;  %s1009_s12 = sphi %s1049_s12, %s1243_s12  }
   0x4   : > { %p23_p0 = scmp.ge.s32.totalorder %s22_s17, 2  ;;  %p68_p2 = scmp.eq.s32.totalorder %s1025_s16, 0 }
   0x5   : > { %s60_s19 = sadd.s32 1, %s1013_s13  ;;  %p837_p5 = scmp.ge.s32.totalorder %s1025_s16, 2 }
   0x6   : > { %s1248_s17 = smov (%p23_p0, %s22_s17), 0  ;;  %p69_p3 = por %p68_p2, %p67_p1 }
   0x7   : > { %s56_s18 = ssub.s32 %s1021_s15, %s1248_s17  ;;  %153 = sbr.rel (%p837_p5) target bundleno = 36 (0x24), region = 24 }
   0x8   : > { %p58_p4 = scmp.eq.s32.totalorder %s56_s18, 0 }
   0xa   : > { %s1084_s20 = scalar_select %p58_p4, %s1013_s13, %s60_s19  }
   0xe   : > { %156 = sbr.rel (!%p69_p3) target bundleno = 36 (0x24), region = 28  ;;  %s158_s21 = sand.u32 (%p69_p3), 1, %s1013_s13  }
   0xf   : > { %s882_s22 = sshll.u32 (%p69_p3), %s1021_s15, 3  ;;  %s887_s23 = smul.u32 (%p69_p3), 288, %s158_s21 }
  0x10   : > { %s1092_s26 = scalar_lea.vmem (%p69_p3), %s1240_s1, %s882_s22 }
  0x11   : > { %v263_v0 = vld [vmem:[%s1092_s26] sm:$0xff] (%p69_p3)  ;;  %v265_v1 = vld [vmem:[%s1092_s26 + $0x10] sm:$0xff] (%p69_p3)  ;;  %s1100_s27 = scalar_lea.vmem (%p69_p3), [#allocation2], %s887_s23 }
  0x12   : > { %v267_v2 = vld [vmem:[%s1092_s26 + $0x20] sm:$0xff] (%p69_p3)  ;;  %v269_v3 = vld [vmem:[%s1092_s26 + $0x30] sm:$0xff] (%p69_p3)  ;;  %264 = vst [vmem:[%s1100_s27] sm:$0xff] (%p69_p3), %v263_v0  ;;  %266 = vst [vmem:[%s1100_s27 + $0x8] sm:$0xff] (%p69_p3), %v265_v1 }
  0x13   : > { %v271_v4 = vld [vmem:[%s1092_s26 + $0x40] sm:$0xff] (%p69_p3)  ;;  %v273_v5 = vld [vmem:[%s1092_s26 + $0x50] sm:$0xff] (%p69_p3)  ;;  %268 = vst [vmem:[%s1100_s27 + $0x10] sm:$0xff] (%p69_p3), %v267_v2  ;;  %270 = vst [vmem:[%s1100_s27 + $0x18] sm:$0xff] (%p69_p3), %v269_v3 }
  0x14   : > { %272 = vst [vmem:[%s1100_s27 + $0x20] sm:$0xff] (%p69_p3), %v271_v4  ;;  %274 = vst [vmem:[%s1100_s27 + $0x28] sm:$0xff] (%p69_p3), %v273_v5  ;;  %v275_v6 = vld [vmem:[%s1092_s26 + $0x60] sm:$0xff] (%p69_p3)  ;;  %v277_v7 = vld [vmem:[%s1092_s26 + $0x70] sm:$0xff] (%p69_p3) }
  0x15   : > { %v279_v8 = vld [vmem:[%s1092_s26 + $0x80] sm:$0xff]  ;;  %276 = vst [vmem:[%s1100_s27 + $0x30] sm:$0xff] %v275_v6  ;;  %278 = vst [vmem:[%s1100_s27 + $0x38] sm:$0xff] %v277_v7  ;;  %v281_v9 = vld [vmem:[%s1092_s26 + $0x90] sm:$0xff] }
  0x16   : > { %280 = vst [vmem:[%s1100_s27 + $0x40] sm:$0xff] %v279_v8  ;;  %v283_v10 = vld [vmem:[%s1092_s26 + $0xa0] sm:$0xff]  ;;  %v285_v11 = vld [vmem:[%s1092_s26 + $0xb0] sm:$0xff]  ;;  %282 = vst [vmem:[%s1100_s27 + $0x48] sm:$0xff] %v281_v9 }
  0x17   : > { %284 = vst [vmem:[%s1100_s27 + $0x50] sm:$0xff] %v283_v10  ;;  %286 = vst [vmem:[%s1100_s27 + $0x58] sm:$0xff] %v285_v11  ;;  %v287_v12 = vld [vmem:[%s1092_s26 + $0xc0] sm:$0xff]  ;;  %v289_v13 = vld [vmem:[%s1092_s26 + $0xd0] sm:$0xff] }
  0x18   : > { %v291_v14 = vld [vmem:[%s1092_s26 + $0xe0] sm:$0xff]  ;;  %288 = vst [vmem:[%s1100_s27 + $0x60] sm:$0xff] %v287_v12  ;;  %290 = vst [vmem:[%s1100_s27 + $0x68] sm:$0xff] %v289_v13  ;;  %v293_v15 = vld [vmem:[%s1092_s26 + $0xf0] sm:$0xff] }
  0x19   : > { %292 = vst [vmem:[%s1100_s27 + $0x70] sm:$0xff] %v291_v14  ;;  %v295_v16 = vld [vmem:[%s1092_s26 + $0x100] sm:$0xff]  ;;  %v297_v17 = vld [vmem:[%s1092_s26 + $0x110] sm:$0xff]  ;;  %294 = vst [vmem:[%s1100_s27 + $0x78] sm:$0xff] %v293_v15 }
  0x1a   : > { %296 = vst [vmem:[%s1100_s27 + $0x80] sm:$0xff] %v295_v16  ;;  %298 = vst [vmem:[%s1100_s27 + $0x88] sm:$0xff] %v297_v17  ;;  %v299_v18 = vld [vmem:[%s1092_s26 + $0x120] sm:$0xff]  ;;  %v301_v19 = vld [vmem:[%s1092_s26 + $0x130] sm:$0xff] }
  0x1b   : > { %v303_v20 = vld [vmem:[%s1092_s26 + $0x140] sm:$0xff]  ;;  %300 = vst [vmem:[%s1100_s27 + $0x90] sm:$0xff] %v299_v18  ;;  %302 = vst [vmem:[%s1100_s27 + $0x98] sm:$0xff] %v301_v19  ;;  %v305_v21 = vld [vmem:[%s1092_s26 + $0x150] sm:$0xff] }
  0x1c   : > { %304 = vst [vmem:[%s1100_s27 + $0xa0] sm:$0xff] %v303_v20  ;;  %v307_v22 = vld [vmem:[%s1092_s26 + $0x160] sm:$0xff]  ;;  %v309_v23 = vld [vmem:[%s1092_s26 + $0x170] sm:$0xff]  ;;  %306 = vst [vmem:[%s1100_s27 + $0xa8] sm:$0xff] %v305_v21 }
  0x1d   : > { %308 = vst [vmem:[%s1100_s27 + $0xb0] sm:$0xff] %v307_v22  ;;  %310 = vst [vmem:[%s1100_s27 + $0xb8] sm:$0xff] %v309_v23  ;;  %v311_v24 = vld [vmem:[%s1092_s26 + $0x180] sm:$0xff]  ;;  %v313_v25 = vld [vmem:[%s1092_s26 + $0x190] sm:$0xff] }
  0x1e   : > { %v315_v26 = vld [vmem:[%s1092_s26 + $0x1a0] sm:$0xff]  ;;  %312 = vst [vmem:[%s1100_s27 + $0xc0] sm:$0xff] %v311_v24  ;;  %314 = vst [vmem:[%s1100_s27 + $0xc8] sm:$0xff] %v313_v25  ;;  %v317_v27 = vld [vmem:[%s1092_s26 + $0x1b0] sm:$0xff] }
  0x1f   : > { %316 = vst [vmem:[%s1100_s27 + $0xd0] sm:$0xff] %v315_v26  ;;  %v319_v28 = vld [vmem:[%s1092_s26 + $0x1c0] sm:$0xff]  ;;  %v321_v29 = vld [vmem:[%s1092_s26 + $0x1d0] sm:$0xff]  ;;  %318 = vst [vmem:[%s1100_s27 + $0xd8] sm:$0xff] %v317_v27 }
  0x20   : > { %320 = vst [vmem:[%s1100_s27 + $0xe0] sm:$0xff] %v319_v28  ;;  %322 = vst [vmem:[%s1100_s27 + $0xe8] sm:$0xff] %v321_v29  ;;  %v323_v30 = vld [vmem:[%s1092_s26 + $0x1e0] sm:$0xff]  ;;  %v325_v31 = vld [vmem:[%s1092_s26 + $0x1f0] sm:$0xff] }
  0x21   : > { %v327_v32 = vld [vmem:[%s1092_s26 + $0x200] sm:$0xff]  ;;  %324 = vst [vmem:[%s1100_s27 + $0xf0] sm:$0xff] %v323_v30  ;;  %326 = vst [vmem:[%s1100_s27 + $0xf8] sm:$0xff] %v325_v31  ;;  %v329_v33 = vld [vmem:[%s1092_s26 + $0x210] sm:$0xff] }
  0x22   : > { %328 = vst [vmem:[%s1100_s27 + $0x100] sm:$0xff] %v327_v32  ;;  %v331_v34 = vld [vmem:[%s1092_s26 + $0x220] sm:$0xff]  ;;  %v333_v35 = vld [vmem:[%s1092_s26 + $0x230] sm:$0xff]  ;;  %330 = vst [vmem:[%s1100_s27 + $0x108] sm:$0xff] %v329_v33 }
  0x23   : > { %332 = vst [vmem:[%s1100_s27 + $0x110] sm:$0xff] %v331_v34  ;;  %334 = vst [vmem:[%s1100_s27 + $0x118] sm:$0xff] %v333_v35 }
  0x24 PF: > { %p840_p6 = scmp.ge.s32.totalorder %s1025_s16, 1  ;;  %p339_p7 = scmp.lt.s32.totalorder %s1025_s16, 3 }
  0x26   : > { %p340_p8 = pnand %p840_p6, %p339_p7 }
  0x27   : > { %s346_s28 = sand.u32 (!%p340_p8), 1, %s1009_s12   ;;  %v443_v36 = vlaneseq (!%p340_p8)  ;;  %v1027_v37 = vmov (!%p340_p8), 0   ;;  %v1028_v38 = vmov (!%p340_p8), 1983009808   ;;  %v432_v40 = vld [vmem:[%s1241_s2] sm:$0x7] (!%p340_p8) }
  0x28   : > { %343 = sbr.rel (%p340_p8) target bundleno = 329 (0x149), region = 66  ;;  %714 = vmatprep.mubr.bf16.mxu0 (!%p340_p8), %v1027_v37  ;;  %v441_v39 = vunpack.c.l.s4 (!%p340_p8), %v1028_v38  ;;  %931 = vset.pattern.permute.xlu0 (!%p340_p8), %v1027_v37  ;;  %v395_v42 = vld [vmem:[%s1239_s0] sm:$0x3f] (!%p340_p8)  ;;  %vm637_vm0 = vcmask (!%p340_p8), 261120   ;;  %s841_s8 = sshll.u32 (!%p340_p8), %s1017_s14, 1 }
  0x29   : > { %s888_s29 = smul.u32 (!%p340_p8), 288, %s346_s28  ;;  %v444_v41 = vshrl.u32 (!%p340_p8), %v443_v36, 7  ;;  %435 = vperm.xlu0 (!%p340_p8), %931, %v432_v40   ;;  %v439_v62 = vcombine.high (!%p340_p8), %v395_v42, %v395_v42  ;;  %p387_p9 = scmp.lt.s32.totalorder (!%p340_p8), %s841_s8, 3 }
  0x2a   : > { %v442_v43 = vunpack.c.0.s8 (!%p340_p8), %v441_v39 }
  0x2b   : > { %s1177_s7 = scalar_lea.vmem (!%p340_p8), [#allocation2], %s888_s29 }
  0x2c   : > { %v932_v44 = vld [vmem:[%s1177_s7 + $0x4] ss:$8 sps:$4 sm:$0xff] (!%p340_p8)   ;;  %v934_v45 = vld [vmem:[%s1177_s7] ss:$8 sps:$4 sm:$0xff] (!%p340_p8)   ;;  %v445_v46 = vsub.s32 (!%p340_p8), %v442_v43, %v444_v41  ;;  %v935_v47 = vld [vmem:[%s1177_s7 + $0x14] ss:$8 sps:$4 sm:$0xff] (!%p340_p8)  }
  0x2d   : > { %641 = vmatprep.subr.bf16.mxu1 (!%p340_p8), %v932_v44  ;;  %v937_v48 = vld [vmem:[%s1177_s7 + $0x10] ss:$8 sps:$4 sm:$0xff] (!%p340_p8)   ;;  %v938_v50 = vld [vmem:[%s1177_s7 + $0x24] ss:$8 sps:$4 sm:$0xff] (!%p340_p8)   ;;  %v940_v52 = vld [vmem:[%s1177_s7 + $0x20] ss:$8 sps:$4 sm:$0xff] (!%p340_p8)  }
  0x2e   : > { %642 = vmatpush1.bf16.msra.mxu1 (!%p340_p8), %v934_v45  ;;  %v1183_v49 = vrot.slane (!%p340_p8), %v395_v42, %v445_v46  ;;  %v941_v53 = vld [vmem:[%s1177_s7 + $0x34] ss:$8 sps:$4 sm:$0xff] (!%p340_p8)   ;;  %v943_v54 = vld [vmem:[%s1177_s7 + $0x30] ss:$8 sps:$4 sm:$0xff] (!%p340_p8)   ;;  %v944_v55 = vld [vmem:[%s1177_s7 + $0x44] ss:$8 sps:$4 sm:$0xff] (!%p340_p8)   ;;  %v453_v3 = vrot.slane (!%p340_p8), %v439_v62, %v445_v46 }
  0x2f   : > { %643 = vmatprep.subr.bf16.mxu1 %v935_v47  ;;  %v946_v56 = vld [vmem:[%s1177_s7 + $0x40] ss:$8 sps:$4 sm:$0xff]   ;;  %v947_v57 = vld [vmem:[%s1177_s7 + $0x54] ss:$8 sps:$4 sm:$0xff]   ;;  %v949_v58 = vld [vmem:[%s1177_s7 + $0x50] ss:$8 sps:$4 sm:$0xff]  }
  0x30   : > { %v454_v51 = vcombine.high %v1183_v49, %v1183_v49  ;;  %v974_v59 = vld [vmem:[%s1177_s7 + $0x104] ss:$8 sps:$4 sm:$0xff]   ;;  %v978_v61 = vld [vmem:[%s1177_s7 + $0x100] ss:$8 sps:$4 sm:$0xff]   ;;  %v980_v63 = vld [vmem:[%s1177_s7 + $0x114] ss:$8 sps:$4 sm:$0xff]  }
  0x31   : > { %v950_v60 = vld [vmem:[%s1177_s7 + $0x64] ss:$8 sps:$4 sm:$0xff]   ;;  %682 = vmatprep.subr.bf16.mxu0 %v974_v59  ;;  %v952_v0 = vld [vmem:[%s1177_s7 + $0x60] ss:$8 sps:$4 sm:$0xff]   ;;  %v984_v1 = vld [vmem:[%s1177_s7 + $0x110] ss:$8 sps:$4 sm:$0xff]  }
  0x32   : > { %644 = vmatpush1.bf16.msra.mxu1 %v937_v48  ;;  %673 = vmatprep.mubr.bf16.mxu1 %v454_v51  ;;  %v953_v2 = vld [vmem:[%s1177_s7 + $0x74] ss:$8 sps:$4 sm:$0xff]   ;;  %v955_v4 = vld [vmem:[%s1177_s7 + $0x70] ss:$8 sps:$4 sm:$0xff]   ;;  %v956_v5 = vld [vmem:[%s1177_s7 + $0x84] ss:$8 sps:$4 sm:$0xff]  }
  0x33   : > { %645 = vmatprep.subr.bf16.mxu1 %v938_v50  ;;  %683 = vmatpush1.bf16.msra.mxu0 %v978_v61  ;;  %v958_v6 = vld [vmem:[%s1177_s7 + $0x80] ss:$8 sps:$4 sm:$0xff]   ;;  %v959_v7 = vld [vmem:[%s1177_s7 + $0x94] ss:$8 sps:$4 sm:$0xff]   ;;  %v961_v8 = vld [vmem:[%s1177_s7 + $0x90] ss:$8 sps:$4 sm:$0xff]  }
  0x34   : > { %684 = vmatprep.subr.bf16.mxu0 %v980_v63  ;;  %v962_v9 = vld [vmem:[%s1177_s7 + $0xa4] ss:$8 sps:$4 sm:$0xff]   ;;  %v964_v10 = vld [vmem:[%s1177_s7 + $0xa0] ss:$8 sps:$4 sm:$0xff]   ;;  %v965_v11 = vld [vmem:[%s1177_s7 + $0xb4] ss:$8 sps:$4 sm:$0xff]  }
  0x35   : > { %v967_v12 = vld [vmem:[%s1177_s7 + $0xb0] ss:$8 sps:$4 sm:$0xff]   ;;  %v968_v13 = vld [vmem:[%s1177_s7 + $0xc4] ss:$8 sps:$4 sm:$0xff]   ;;  %v970_v14 = vld [vmem:[%s1177_s7 + $0xc0] ss:$8 sps:$4 sm:$0xff]  }
  0x36   : > { %646 = vmatpush1.bf16.msra.mxu1 %v940_v52  ;;  %v971_v15 = vld [vmem:[%s1177_s7 + $0xd4] ss:$8 sps:$4 sm:$0xff]   ;;  %v973_v16 = vld [vmem:[%s1177_s7 + $0xd0] ss:$8 sps:$4 sm:$0xff]   ;;  %v976_v17 = vld [vmem:[%s1177_s7 + $0xe4] ss:$8 sps:$4 sm:$0xff]  }
  0x37   : > { %647 = vmatprep.subr.bf16.mxu1 %v941_v53  ;;  %685 = vmatpush1.bf16.msra.mxu0 %v984_v1  ;;  %v979_v18 = vld [vmem:[%s1177_s7 + $0xe0] ss:$8 sps:$4 sm:$0xff]   ;;  %v982_v19 = vld [vmem:[%s1177_s7 + $0xf4] ss:$8 sps:$4 sm:$0xff]   ;;  %v985_v20 = vld [vmem:[%s1177_s7 + $0xf0] ss:$8 sps:$4 sm:$0xff]  }
  0x38   : > { %s1250_s8 = smov (!%p387_p9, %s841_s8), 3 }
  0x39   : > { %s842_s9 = sshll.u32 %s1250_s8, 2 }
  0x3a   : > { %648 = vmatpush1.bf16.msra.mxu1 %v943_v54  ;;  %879 = vmatmul.mubr.msk.bf16.vlgmr.msra.gmra.mrb[0].mxu0 %vm637_vm0, %v453_v3  ;;  %s392_s12 = scalar_lea.vmem %s1242_s3, %s842_s9 }
  0x3b   : > { %649 = vmatprep.subr.bf16.mxu1 %v944_v55 }
  0x3e   : > { %650 = vmatpush1.bf16.msra.mxu1 %v946_v56 }
  0x3f   : > { %651 = vmatprep.subr.bf16.mxu1 %v947_v57 }
  0x42   : > { %652 = vmatpush1.bf16.msra.mxu1 %v949_v58 }
  0x43   : > { %653 = vmatprep.subr.bf16.mxu1 %v950_v60 }
  0x46   : > { %654 = vmatpush1.bf16.msra.mxu1 %v952_v0 }
  0x47   : > { %655 = vmatprep.subr.bf16.mxu1 %v953_v2 }
  0x4a   : > { %656 = vmatpush1.bf16.msra.mxu1 %v955_v4 }
  0x4b   : > { %657 = vmatprep.subr.bf16.mxu1 %v956_v5 }
  0x4e   : > { %658 = vmatpush1.bf16.msra.mxu1 %v958_v6 }
  0x4f   : > { %659 = vmatprep.subr.bf16.mxu1 %v959_v7 }
  0x52   : > { %660 = vmatpush1.bf16.msra.mxu1 %v961_v8 }
  0x53   : > { %661 = vmatprep.subr.bf16.mxu1 %v962_v9 }
  0x56   : > { %662 = vmatpush1.bf16.msra.mxu1 %v964_v10 }
  0x57   : > { %663 = vmatprep.subr.bf16.mxu1 %v965_v11 }
  0x5a   : > { %664 = vmatpush1.bf16.msra.mxu1 %v967_v12 }
  0x5b   : > { %665 = vmatprep.subr.bf16.mxu1 %v968_v13 }
  0x5e   : > { %666 = vmatpush1.bf16.msra.mxu1 %v970_v14 }
  0x5f   : > { %667 = vmatprep.subr.bf16.mxu1 %v971_v15 }
  0x62   : > { %668 = vmatpush1.bf16.msra.mxu1 %v973_v16 }
  0x63   : > { %669 = vmatprep.subr.bf16.mxu1 %v976_v17 }
  0x66   : > { %670 = vmatpush1.bf16.msra.mxu1 %v979_v18 }
  0x67   : > { %671 = vmatprep.subr.bf16.mxu1 %v982_v19 }
  0x6a   : > { %672 = vmatpush1.bf16.msra.mxu1 %v985_v20 }
  0x6d   : > { %674 = vmatmul.mubr.bf16.vlgmr.msra.gmra.mrb[0].mxu1 %v1183_v49 }
  0xa8   : > { %v436_v25 = vpop.permute.xlu0 %435 }
 0x10d   : > { %v716_v21 = vpop.f32.mrb[0].mxu0 }
 0x10e   : > { %v718_v22 = vpop.f32.mrb[1].mxu0 }
 0x10f   : > { %v720_v23 = vpop.f32.mrb[2].mxu0 }
 0x110   : > { %v721_v24 = vpop.f32.mrb[3].mxu0 }
 0x140   : > { %v675_v26 = vpop.f32.mrb[0].mxu1 }
 0x141   : > { %v676_v27 = vadd.f32 %v675_v26, %v436_v25  ;;  %v677_v28 = vpop.f32.mrb[1].mxu1 }
 0x142   : > { %v678_v29 = vadd.f32 %v677_v28, %v436_v25  ;;  %v679_v30 = vpop.f32.mrb[2].mxu1 }
 0x143   : > { %v717_v31 = vadd.f32 %v716_v21, %v676_v27  ;;  %v680_v32 = vpop.f32.mrb[3].mxu1 }
 0x144   : > { %v719_v33 = vadd.f32 %v718_v22, %v678_v29 }
 0x146   : > { %v725_v34 = vcombine.low %v717_v31, %v719_v33 }
 0x148   : > { %727 = vst [vmem:[%s392_s12] sm:$0x77] %v725_v34 }
 0x149 PF: > { %s13_s16 = sadd.s32 1, %s1025_s16   ;;  %s1243_s12 = smov %s1013_s13 }
 0x14a   : > { %p10_p10 = scmp.ge.s32.totalorder %s13_s16, 4   ;;  %s1244_s13 = smov %s1084_s20 }
 0x14b   : > { %s1245_s14 = smov %s1021_s15  ;;  %s1246_s15 = smov %s1248_s17 }
 0x14c   :  { %12 = sbr.rel (!%p10_p10) target bundleno = 3 (0x3), region = 108 }

</bundles_post_ra>
